<compile_context>
chip_gen: v6e
topology: v6e:2x2x1
jax: 0.10.0
libtpu: 0.0.40
codegen_flags: <defaults>
</compile_context>

<pallas_src>
import math
from functools import partial

import numpy as np
import jax
import jax.numpy as jnp
from jax.experimental import pallas as pl
from jax.experimental.pallas import tpu as pltpu


# ----------------------------------------------------------------------------
# Fused Pallas kernel: 4 GRU layers (wavefront) + FC
# ----------------------------------------------------------------------------
def gru_encoder_kernel(x_ref, w_in0_ref, b_in0_ref, w_big_ref, b_big_ref,
                       fcw_ref, fcb_ref, out_ref, gi0_ref, *, T, L, H, Bp):
    """x_ref      : (T*Bp, D)     time-major, batch padded to Bp rows / step
       w_in0_ref  : (D, 4*L*H)    layer-0 input weights in gate-major layout
       b_in0_ref  : (1, 4*L*H)    layer-0 b_ih + all-layer b_ih/b_hh (folded)
       w_big_ref  : (L*H, 4*L*H)  block-structured recurrent + inter-layer W
       b_big_ref  : (1, 4*L*H)    all-layer b_ih (l>=1) + b_hh (drain steps)
       fcw_ref    : (L*H, O)      FC weight, nonzero only in last layer rows
       fcb_ref    : (1, O)
       out_ref    : (Bp, O)
       gi0_ref    : VMEM scratch (T*Bp, 4*L*H) hoisted layer-0 projections
    """
    LH = L * H

    # Hoisted layer-0 input projection for the whole (padded) sequence,
    # one matmul outside the recurrence.
    gi0_ref[...] = (jnp.dot(x_ref[...], w_in0_ref[...],
                            preferred_element_type=jnp.float32)
                    + b_in0_ref[...])

    # Stacked per-layer hidden state: columns [h_0 | h_1 | ... | h_{L-1}].
    h_all = jnp.zeros((Bp, LH), jnp.float32)

    # Lane index -> used to build the per-step "layer active" wavefront mask.
    lane = jax.lax.broadcasted_iota(jnp.int32, (Bp, LH), 1)

    # Wavefront recurrence: T + L - 1 serial steps, one fused matmul each.
    for s in range(T + L - 1):          # static unroll (T is small)
        big = jnp.dot(h_all, w_big_ref[...],
                      preferred_element_type=jnp.float32)       # (Bp, 4*LH)
        if s < T:
            big = big + gi0_ref[pl.ds(s * Bp, Bp), :]   # sublane-tile aligned
        else:
            big = big + b_big_ref[...]                  # drain: biases only
        # Gate-major blocks are whole 128-lane tiles -> aligned slices.
        r = jax.nn.sigmoid(big[:, 0 * LH:1 * LH])
        z = jax.nn.sigmoid(big[:, 1 * LH:2 * LH])
        n = jnp.tanh(big[:, 2 * LH:3 * LH] + r * big[:, 3 * LH:4 * LH])
        h_new = (1.0 - z) * n + z * h_all

        if L - 1 <= s < T:
            h_all = h_new               # steady state: all layers active
        else:
            # warmup / drain: freeze layers that are not on the wavefront
            # (layer l active iff l <= s and s - l < T).
            active = (lane >= (s - T + 1) * H) & (lane < (s + 1) * H)
            h_all = jnp.where(active, h_new, h_all)

    # Fused FC: fcw rows outside the last layer's column block are zero.
    out_ref[...] = (jnp.dot(h_all, fcw_ref[...],
                            preferred_element_type=jnp.float32)
                    + fcb_ref[...])


# ----------------------------------------------------------------------------
# Wrapper
# ----------------------------------------------------------------------------
def gru_encoder(x_btd, fused):
    """Matches GRUEncoder.forward: x (B, T, D) batch-first -> (B, output_dim)."""
    B, T, D = x_btd.shape
    L = fused["num_layers"]
    H = fused["hidden_dim"]
    LH = L * H
    G = 4 * LH
    O = fused["fc_b"].shape[1]
    Bp = ((B + 7) // 8) * 8             # pad batch to the 8-row sublane group

    # Time-major, batch-padded layout: row t*Bp + b = x[b, t, :].
    # TODO(synk): absorb this transpose/pad into kernel indexing if B*T*D
    # ever becomes large enough for the extra HBM pass to matter.
    x_tm = jnp.transpose(x_btd, (1, 0, 2)).astype(jnp.float32)
    xp = jnp.zeros((T, Bp, D), jnp.float32).at[:, :B, :].set(x_tm)
    xp = xp.reshape(T * Bp, D)

    full = lambda shape: pl.BlockSpec(shape, lambda: (0,) * len(shape))
    args = (xp, fused["w_in0_big"], fused["b_in0_big"], fused["w_big"],
            fused["b_big"], fused["fc_w_ext"], fused["fc_b"])

    out = pl.pallas_call(
        partial(gru_encoder_kernel, T=T, L=L, H=H, Bp=Bp),
        out_shape=jax.ShapeDtypeStruct((Bp, O), jnp.float32),
        in_specs=[full(a.shape) for a in args],
        out_specs=full((Bp, O)),
        scratch_shapes=[pltpu.VMEM((T * Bp, G), jnp.float32)],
    )(*args)
    return out[:B]


# ----------------------------------------------------------------------------
# Deterministic PyTorch-style parameters (nn.GRU / nn.Linear shapes,
# gate order r, z, n).
# ----------------------------------------------------------------------------
def make_params(key, input_dim, hidden_dim, output_dim, num_layers):
    k = 1.0 / math.sqrt(hidden_dim)
    H = hidden_dim
    layers = []
    for layer_idx in range(num_layers):
        d_in = input_dim if layer_idx == 0 else hidden_dim
        key, *ks = jax.random.split(key, 5)
        layers.append(dict(
            w_ih=jax.random.uniform(ks[0], (3 * H, d_in), jnp.float32, -k, k),
            w_hh=jax.random.uniform(ks[1], (3 * H, H), jnp.float32, -k, k),
            b_ih=jax.random.uniform(ks[2], (3 * H,), jnp.float32, -k, k),
            b_hh=jax.random.uniform(ks[3], (3 * H,), jnp.float32, -k, k),
        ))
    key, k1, k2 = jax.random.split(key, 3)
    fc_w = jax.random.uniform(k1, (output_dim, hidden_dim), jnp.float32, -k, k)
    fc_b = jax.random.uniform(k2, (output_dim,), jnp.float32, -k, k)
    return dict(layers=layers, fc_w=fc_w, fc_b=fc_b)


# ----------------------------------------------------------------------------
# Pack per-layer PyTorch weights into the wavefront / gate-major layout.
#
#   state   h_all  : (Bp, L*H)    columns [h_0 | h_1 | ... | h_{L-1}]
#   matmul  output : (Bp, 4*L*H)  blocks [R | Z | GN | HN], each L*H wide,
#                                 layer l occupies lanes l*H:(l+1)*H.
#   R/Z = W_ir x + b_ir + W_hr h + b_hr     (summed directly)
#   GN  = W_in x + b_in                     (kept separate for the r gate)
#   HN  = W_hn h + b_hn
# ----------------------------------------------------------------------------
def build_fused(params, input_dim, hidden_dim, num_layers):
    H, L = hidden_dim, num_layers
    LH = L * H
    G = 4 * LH
    R, Z, GN, HN = 0, LH, 2 * LH, 3 * LH

    w_big = np.zeros((LH, G), np.float32)
    b_big = np.zeros((1, G), np.float32)
    w_in0 = np.zeros((input_dim, G), np.float32)
    b_in0 = np.zeros((1, G), np.float32)

    def gate(w, g):        # PyTorch (3H, d_in) -> (d_in, H) block for gate g
        return np.asarray(w)[g * H:(g + 1) * H, :].T

    for l, p in enumerate(params["layers"]):
        b_ih, b_hh = np.asarray(p["b_ih"]), np.asarray(p["b_hh"])
        rows_h = slice(l * H, (l + 1) * H)             # rows fed by h_l
        # hidden-to-hidden contributions
        w_big[rows_h, R + l * H:R + (l + 1) * H] = gate(p["w_hh"], 0)
        w_big[rows_h, Z + l * H:Z + (l + 1) * H] = gate(p["w_hh"], 1)
        w_big[rows_h, HN + l * H:HN + (l + 1) * H] = gate(p["w_hh"], 2)
        b_big[0, R + l * H:R + (l + 1) * H] += b_hh[0 * H:1 * H]
        b_big[0, Z + l * H:Z + (l + 1) * H] += b_hh[1 * H:2 * H]
        b_big[0, HN + l * H:HN + (l + 1) * H] += b_hh[2 * H:3 * H]
        if l == 0:
            # layer-0 input comes from x via the hoisted projection
            w_in0[:, R:R + H] = gate(p["w_ih"], 0)
            w_in0[:, Z:Z + H] = gate(p["w_ih"], 1)
            w_in0[:, GN:GN + H] = gate(p["w_ih"], 2)
            b_in0[0, R:R + H] += b_ih[0:H]
            b_in0[0, Z:Z + H] += b_ih[H:2 * H]
            b_in0[0, GN:GN + H] += b_ih[2 * H:3 * H]
        else:
            rows_prev = slice((l - 1) * H, l * H)      # rows fed by h_{l-1}
            w_big[rows_prev, R + l * H:R + (l + 1) * H] = gate(p["w_ih"], 0)
            w_big[rows_prev, Z + l * H:Z + (l + 1) * H] = gate(p["w_ih"], 1)
            w_big[rows_prev, GN + l * H:GN + (l + 1) * H] = gate(p["w_ih"], 2)
            b_big[0, R + l * H:R + (l + 1) * H] += b_ih[0:H]
            b_big[0, Z + l * H:Z + (l + 1) * H] += b_ih[H:2 * H]
            b_big[0, GN + l * H:GN + (l + 1) * H] += b_ih[2 * H:3 * H]

    # Fold the recurrent biases into the hoisted-projection bias so steps
    # with an input contribution (s < T) need no separate bias add.
    b_in0 += b_big

    fc_w_ext = np.zeros((LH, params["fc_w"].shape[0]), np.float32)
    fc_w_ext[(L - 1) * H:L * H, :] = np.asarray(params["fc_w"]).T
    fc_b = np.asarray(params["fc_b"])[None, :]

    return dict(
        w_in0_big=jnp.asarray(w_in0), b_in0_big=jnp.asarray(b_in0),
        w_big=jnp.asarray(w_big), b_big=jnp.asarray(b_big),
        fc_w_ext=jnp.asarray(fc_w_ext), fc_b=jnp.asarray(fc_b),
        num_layers=L, hidden_dim=H,
    )


# ----------------------------------------------------------------------------
# Pure-JAX reference on the raw PyTorch-layout params (validates both the
# kernel and the fused-weight packing).
# ----------------------------------------------------------------------------
def gru_encoder_ref(x_btd, params):
    B, T, _ = x_btd.shape
    H = params["layers"][0]["w_hh"].shape[1]
    seq = jnp.transpose(x_btd, (1, 0, 2)).astype(jnp.float32)   # (T, B, D)
    for p in params["layers"]:
        h = jnp.zeros((B, H), jnp.float32)
        ys = []
        for t in range(T):
            gi = seq[t] @ p["w_ih"].T + p["b_ih"]
            gh = h @ p["w_hh"].T + p["b_hh"]
            r = jax.nn.sigmoid(gi[:, :H] + gh[:, :H])
            z = jax.nn.sigmoid(gi[:, H:2 * H] + gh[:, H:2 * H])
            n = jnp.tanh(gi[:, 2 * H:] + r * gh[:, 2 * H:])
            h = (1.0 - z) * n + z * h
            ys.append(h)
        seq = jnp.stack(ys, axis=0)
    return seq[-1] @ params["fc_w"].T + params["fc_b"][None, :]


if __name__ == "__main__":
    B, T = 2, 8                 # batch, sequence length
    INPUT_DIM, HIDDEN_DIM, OUTPUT_DIM, NUM_LAYERS = 16, 32, 8, 4

    key = jax.random.PRNGKey(0)
    key, kx, kp = jax.random.split(key, 3)
    x = jax.random.normal(kx, (B, T, INPUT_DIM), jnp.float32)   # batch-first
    params = make_params(kp, INPUT_DIM, HIDDEN_DIM, OUTPUT_DIM, NUM_LAYERS)
    fused = build_fused(params, INPUT_DIM, HIDDEN_DIM, NUM_LAYERS)

    out = gru_encoder(x, fused)
    out = jax.block_until_ready(out)

    ref = gru_encoder_ref(x, params)
    assert out.shape == (B, OUTPUT_DIM)
    assert jnp.allclose(out, ref, atol=1e-4, rtol=1e-4), (
        f"mismatch: max abs diff {jnp.max(jnp.abs(out - ref))}")

    print("KERNEL_OK")
</pallas_src>

<mosaic_0001>
module attributes {stable_mosaic.version = 11 : i64} {
  func.func @gru_encoder_kernel(%arg0: memref<64x16xf32, #tpu.memory_space<vmem>>, %arg1: memref<16x512xf32, #tpu.memory_space<vmem>>, %arg2: memref<1x512xf32, #tpu.memory_space<vmem>>, %arg3: memref<128x512xf32, #tpu.memory_space<vmem>>, %arg4: memref<1x512xf32, #tpu.memory_space<vmem>>, %arg5: memref<128x8xf32, #tpu.memory_space<vmem>>, %arg6: memref<1x8xf32, #tpu.memory_space<vmem>>, %arg7: memref<8x8xf32, #tpu.memory_space<vmem>>, %arg8: memref<64x512xf32, #tpu.memory_space<vmem>>) attributes {dimension_semantics = [], scalar_prefetch = 0 : i64, scratch_operands = 1 : i64, tpu.core_type = #tpu.core_type<tc>} {
    %c0 = arith.constant 0 : index
    %c0_0 = arith.constant 0 : index
    %0 = vector.load %arg0[%c0, %c0_0] : memref<64x16xf32, #tpu.memory_space<vmem>>, vector<64x16xf32>
    %c0_1 = arith.constant 0 : index
    %c0_2 = arith.constant 0 : index
    %1 = vector.load %arg1[%c0_1, %c0_2] : memref<16x512xf32, #tpu.memory_space<vmem>>, vector<16x512xf32>
    %cst = arith.constant dense<0.000000e+00> : vector<64x512xf32>
    %2 = tpu.matmul %0, %1, %cst {dimension_numbers = #tpu.dot_dimension_numbers<[1], [0], [0], [1], [0, 0, 1, 1], [], []>} : vector<64x16xf32>, vector<16x512xf32>, vector<64x512xf32> -> vector<64x512xf32>
    %c0_3 = arith.constant 0 : index
    %c0_4 = arith.constant 0 : index
    %3 = vector.load %arg2[%c0_3, %c0_4] : memref<1x512xf32, #tpu.memory_space<vmem>>, vector<1x512xf32>
    %4 = vector.broadcast %3 : vector<1x512xf32> to vector<64x512xf32>
    %5 = arith.addf %2, %4 : vector<64x512xf32>
    %c0_5 = arith.constant 0 : index
    %c0_6 = arith.constant 0 : index
    %6 = vector.load %arg8[%c0_5, %c0_6] : memref<64x512xf32, #tpu.memory_space<vmem>>, vector<64x512xf32>
    tpu.vector_store %arg8[%c0_5, %c0_6], %5 {strides = array<i32>} : memref<64x512xf32, #tpu.memory_space<vmem>>, vector<64x512xf32>,
    %cst_7 = arith.constant 0.000000e+00 : f32
    %7 = vector.broadcast %cst_7 : f32 to vector<8x128xf32>
    %8 = tpu.iota {dimensions = array<i32: 1>} : vector<8x128xi32>
    %c0_8 = arith.constant 0 : index
    %c0_9 = arith.constant 0 : index
    %9 = vector.load %arg3[%c0_8, %c0_9] : memref<128x512xf32, #tpu.memory_space<vmem>>, vector<128x512xf32>
    %cst_10 = arith.constant dense<0.000000e+00> : vector<8x512xf32>
    %10 = tpu.matmul %7, %9, %cst_10 {dimension_numbers = #tpu.dot_dimension_numbers<[1], [0], [0], [1], [0, 0, 1, 1], [], []>} : vector<8x128xf32>, vector<128x512xf32>, vector<8x512xf32> -> vector<8x512xf32>
    %c0_11 = arith.constant 0 : index
    %c0_12 = arith.constant 0 : index
    %11 = vector.load %arg8[%c0_11, %c0_12] : memref<64x512xf32, #tpu.memory_space<vmem>>, vector<8x512xf32>
    %12 = arith.addf %10, %11 : vector<8x512xf32>
    %13 = vector.extract_strided_slice %12 {offsets = [0, 0], sizes = [8, 128], strides = [1, 1]} : vector<8x512xf32> to vector<8x128xf32>
    %14 = arith.negf %13 : vector<8x128xf32>
    %15 = math.exp %14 : vector<8x128xf32>
    %cst_13 = arith.constant 1.000000e+00 : f32
    %16 = vector.broadcast %cst_13 : f32 to vector<8x128xf32>
    %17 = arith.addf %16, %15 : vector<8x128xf32>
    %18 = arith.divf %16, %17 : vector<8x128xf32>
    %19 = vector.extract_strided_slice %12 {offsets = [0, 128], sizes = [8, 128], strides = [1, 1]} : vector<8x512xf32> to vector<8x128xf32>
    %20 = arith.negf %19 : vector<8x128xf32>
    %21 = math.exp %20 : vector<8x128xf32>
    %cst_14 = arith.constant 1.000000e+00 : f32
    %22 = vector.broadcast %cst_14 : f32 to vector<8x128xf32>
    %23 = arith.addf %22, %21 : vector<8x128xf32>
    %24 = arith.divf %22, %23 : vector<8x128xf32>
    %25 = vector.extract_strided_slice %12 {offsets = [0, 256], sizes = [8, 128], strides = [1, 1]} : vector<8x512xf32> to vector<8x128xf32>
    %26 = vector.extract_strided_slice %12 {offsets = [0, 384], sizes = [8, 128], strides = [1, 1]} : vector<8x512xf32> to vector<8x128xf32>
    %27 = arith.mulf %18, %26 : vector<8x128xf32>
    %28 = arith.addf %25, %27 : vector<8x128xf32>
    %29 = math.tanh %28 : vector<8x128xf32>
    %cst_15 = arith.constant 1.000000e+00 : f32
    %30 = vector.broadcast %cst_15 : f32 to vector<8x128xf32>
    %31 = arith.subf %30, %24 : vector<8x128xf32>
    %32 = arith.mulf %31, %29 : vector<8x128xf32>
    %33 = arith.mulf %24, %7 : vector<8x128xf32>
    %34 = arith.addf %32, %33 : vector<8x128xf32>
    %c-224_i32 = arith.constant -224 : i32
    %35 = vector.broadcast %c-224_i32 : i32 to vector<8x128xi32>
    %36 = arith.cmpi sge, %8, %35 : vector<8x128xi32>
    %c32_i32 = arith.constant 32 : i32
    %37 = vector.broadcast %c32_i32 : i32 to vector<8x128xi32>
    %38 = arith.cmpi slt, %8, %37 : vector<8x128xi32>
    %39 = arith.andi %36, %38 : vector<8x128xi1>
    %40 = arith.select %39, %34, %7 : vector<8x128xi1>, vector<8x128xf32>
    %c0_16 = arith.constant 0 : index
    %c0_17 = arith.constant 0 : index
    %41 = vector.load %arg3[%c0_16, %c0_17] : memref<128x512xf32, #tpu.memory_space<vmem>>, vector<128x512xf32>
    %cst_18 = arith.constant dense<0.000000e+00> : vector<8x512xf32>
    %42 = tpu.matmul %40, %41, %cst_18 {dimension_numbers = #tpu.dot_dimension_numbers<[1], [0], [0], [1], [0, 0, 1, 1], [], []>} : vector<8x128xf32>, vector<128x512xf32>, vector<8x512xf32> -> vector<8x512xf32>
    %c8 = arith.constant 8 : index
    %c0_19 = arith.constant 0 : index
    %43 = vector.load %arg8[%c8, %c0_19] : memref<64x512xf32, #tpu.memory_space<vmem>>, vector<8x512xf32>
    %44 = arith.addf %42, %43 : vector<8x512xf32>
    %45 = vector.extract_strided_slice %44 {offsets = [0, 0], sizes = [8, 128], strides = [1, 1]} : vector<8x512xf32> to vector<8x128xf32>
    %46 = arith.negf %45 : vector<8x128xf32>
    %47 = math.exp %46 : vector<8x128xf32>
    %cst_20 = arith.constant 1.000000e+00 : f32
    %48 = vector.broadcast %cst_20 : f32 to vector<8x128xf32>
    %49 = arith.addf %48, %47 : vector<8x128xf32>
    %50 = arith.divf %48, %49 : vector<8x128xf32>
    %51 = vector.extract_strided_slice %44 {offsets = [0, 128], sizes = [8, 128], strides = [1, 1]} : vector<8x512xf32> to vector<8x128xf32>
    %52 = arith.negf %51 : vector<8x128xf32>
    %53 = math.exp %52 : vector<8x128xf32>
    %cst_21 = arith.constant 1.000000e+00 : f32
    %54 = vector.broadcast %cst_21 : f32 to vector<8x128xf32>
    %55 = arith.addf %54, %53 : vector<8x128xf32>
    %56 = arith.divf %54, %55 : vector<8x128xf32>
    %57 = vector.extract_strided_slice %44 {offsets = [0, 256], sizes = [8, 128], strides = [1, 1]} : vector<8x512xf32> to vector<8x128xf32>
    %58 = vector.extract_strided_slice %44 {offsets = [0, 384], sizes = [8, 128], strides = [1, 1]} : vector<8x512xf32> to vector<8x128xf32>
    %59 = arith.mulf %50, %58 : vector<8x128xf32>
    %60 = arith.addf %57, %59 : vector<8x128xf32>
    %61 = math.tanh %60 : vector<8x128xf32>
    %cst_22 = arith.constant 1.000000e+00 : f32
    %62 = vector.broadcast %cst_22 : f32 to vector<8x128xf32>
    %63 = arith.subf %62, %56 : vector<8x128xf32>
    %64 = arith.mulf %63, %61 : vector<8x128xf32>
    %65 = arith.mulf %56, %40 : vector<8x128xf32>
    %66 = arith.addf %64, %65 : vector<8x128xf32>
    %c-192_i32 = arith.constant -192 : i32
    %67 = vector.broadcast %c-192_i32 : i32 to vector<8x128xi32>
    %68 = arith.cmpi sge, %8, %67 : vector<8x128xi32>
    %c64_i32 = arith.constant 64 : i32
    %69 = vector.broadcast %c64_i32 : i32 to vector<8x128xi32>
    %70 = arith.cmpi slt, %8, %69 : vector<8x128xi32>
    %71 = arith.andi %68, %70 : vector<8x128xi1>
    %72 = arith.select %71, %66, %40 : vector<8x128xi1>, vector<8x128xf32>
    %c0_23 = arith.constant 0 : index
    %c0_24 = arith.constant 0 : index
    %73 = vector.load %arg3[%c0_23, %c0_24] : memref<128x512xf32, #tpu.memory_space<vmem>>, vector<128x512xf32>
    %cst_25 = arith.constant dense<0.000000e+00> : vector<8x512xf32>
    %74 = tpu.matmul %72, %73, %cst_25 {dimension_numbers = #tpu.dot_dimension_numbers<[1], [0], [0], [1], [0, 0, 1, 1], [], []>} : vector<8x128xf32>, vector<128x512xf32>, vector<8x512xf32> -> vector<8x512xf32>
    %c16 = arith.constant 16 : index
    %c0_26 = arith.constant 0 : index
    %75 = vector.load %arg8[%c16, %c0_26] : memref<64x512xf32, #tpu.memory_space<vmem>>, vector<8x512xf32>
    %76 = arith.addf %74, %75 : vector<8x512xf32>
    %77 = vector.extract_strided_slice %76 {offsets = [0, 0], sizes = [8, 128], strides = [1, 1]} : vector<8x512xf32> to vector<8x128xf32>
    %78 = arith.negf %77 : vector<8x128xf32>
    %79 = math.exp %78 : vector<8x128xf32>
    %cst_27 = arith.constant 1.000000e+00 : f32
    %80 = vector.broadcast %cst_27 : f32 to vector<8x128xf32>
    %81 = arith.addf %80, %79 : vector<8x128xf32>
    %82 = arith.divf %80, %81 : vector<8x128xf32>
    %83 = vector.extract_strided_slice %76 {offsets = [0, 128], sizes = [8, 128], strides = [1, 1]} : vector<8x512xf32> to vector<8x128xf32>
    %84 = arith.negf %83 : vector<8x128xf32>
    %85 = math.exp %84 : vector<8x128xf32>
    %cst_28 = arith.constant 1.000000e+00 : f32
    %86 = vector.broadcast %cst_28 : f32 to vector<8x128xf32>
    %87 = arith.addf %86, %85 : vector<8x128xf32>
    %88 = arith.divf %86, %87 : vector<8x128xf32>
    %89 = vector.extract_strided_slice %76 {offsets = [0, 256], sizes = [8, 128], strides = [1, 1]} : vector<8x512xf32> to vector<8x128xf32>
    %90 = vector.extract_strided_slice %76 {offsets = [0, 384], sizes = [8, 128], strides = [1, 1]} : vector<8x512xf32> to vector<8x128xf32>
    %91 = arith.mulf %82, %90 : vector<8x128xf32>
    %92 = arith.addf %89, %91 : vector<8x128xf32>
    %93 = math.tanh %92 : vector<8x128xf32>
    %cst_29 = arith.constant 1.000000e+00 : f32
    %94 = vector.broadcast %cst_29 : f32 to vector<8x128xf32>
    %95 = arith.subf %94, %88 : vector<8x128xf32>
    %96 = arith.mulf %95, %93 : vector<8x128xf32>
    %97 = arith.mulf %88, %72 : vector<8x128xf32>
    %98 = arith.addf %96, %97 : vector<8x128xf32>
    %c-160_i32 = arith.constant -160 : i32
    %99 = vector.broadcast %c-160_i32 : i32 to vector<8x128xi32>
    %100 = arith.cmpi sge, %8, %99 : vector<8x128xi32>
    %c96_i32 = arith.constant 96 : i32
    %101 = vector.broadcast %c96_i32 : i32 to vector<8x128xi32>
    %102 = arith.cmpi slt, %8, %101 : vector<8x128xi32>
    %103 = arith.andi %100, %102 : vector<8x128xi1>
    %104 = arith.select %103, %98, %72 : vector<8x128xi1>, vector<8x128xf32>
    %c0_30 = arith.constant 0 : index
    %c0_31 = arith.constant 0 : index
    %105 = vector.load %arg3[%c0_30, %c0_31] : memref<128x512xf32, #tpu.memory_space<vmem>>, vector<128x512xf32>
    %cst_32 = arith.constant dense<0.000000e+00> : vector<8x512xf32>
    %106 = tpu.matmul %104, %105, %cst_32 {dimension_numbers = #tpu.dot_dimension_numbers<[1], [0], [0], [1], [0, 0, 1, 1], [], []>} : vector<8x128xf32>, vector<128x512xf32>, vector<8x512xf32> -> vector<8x512xf32>
    %c24 = arith.constant 24 : index
    %c0_33 = arith.constant 0 : index
    %107 = vector.load %arg8[%c24, %c0_33] : memref<64x512xf32, #tpu.memory_space<vmem>>, vector<8x512xf32>
    %108 = arith.addf %106, %107 : vector<8x512xf32>
    %109 = vector.extract_strided_slice %108 {offsets = [0, 0], sizes = [8, 128], strides = [1, 1]} : vector<8x512xf32> to vector<8x128xf32>
    %110 = arith.negf %109 : vector<8x128xf32>
    %111 = math.exp %110 : vector<8x128xf32>
    %cst_34 = arith.constant 1.000000e+00 : f32
    %112 = vector.broadcast %cst_34 : f32 to vector<8x128xf32>
    %113 = arith.addf %112, %111 : vector<8x128xf32>
    %114 = arith.divf %112, %113 : vector<8x128xf32>
    %115 = vector.extract_strided_slice %108 {offsets = [0, 128], sizes = [8, 128], strides = [1, 1]} : vector<8x512xf32> to vector<8x128xf32>
    %116 = arith.negf %115 : vector<8x128xf32>
    %117 = math.exp %116 : vector<8x128xf32>
    %cst_35 = arith.constant 1.000000e+00 : f32
    %118 = vector.broadcast %cst_35 : f32 to vector<8x128xf32>
    %119 = arith.addf %118, %117 : vector<8x128xf32>
    %120 = arith.divf %118, %119 : vector<8x128xf32>
    %121 = vector.extract_strided_slice %108 {offsets = [0, 256], sizes = [8, 128], strides = [1, 1]} : vector<8x512xf32> to vector<8x128xf32>
    %122 = vector.extract_strided_slice %108 {offsets = [0, 384], sizes = [8, 128], strides = [1, 1]} : vector<8x512xf32> to vector<8x128xf32>
    %123 = arith.mulf %114, %122 : vector<8x128xf32>
    %124 = arith.addf %121, %123 : vector<8x128xf32>
    %125 = math.tanh %124 : vector<8x128xf32>
    %cst_36 = arith.constant 1.000000e+00 : f32
    %126 = vector.broadcast %cst_36 : f32 to vector<8x128xf32>
    %127 = arith.subf %126, %120 : vector<8x128xf32>
    %128 = arith.mulf %127, %125 : vector<8x128xf32>
    %129 = arith.mulf %120, %104 : vector<8x128xf32>
    %130 = arith.addf %128, %129 : vector<8x128xf32>
    %c0_37 = arith.constant 0 : index
    %c0_38 = arith.constant 0 : index
    %131 = vector.load %arg3[%c0_37, %c0_38] : memref<128x512xf32, #tpu.memory_space<vmem>>, vector<128x512xf32>
    %cst_39 = arith.constant dense<0.000000e+00> : vector<8x512xf32>
    %132 = tpu.matmul %130, %131, %cst_39 {dimension_numbers = #tpu.dot_dimension_numbers<[1], [0], [0], [1], [0, 0, 1, 1], [], []>} : vector<8x128xf32>, vector<128x512xf32>, vector<8x512xf32> -> vector<8x512xf32>
    %c32 = arith.constant 32 : index
    %c0_40 = arith.constant 0 : index
    %133 = vector.load %arg8[%c32, %c0_40] : memref<64x512xf32, #tpu.memory_space<vmem>>, vector<8x512xf32>
    %134 = arith.addf %132, %133 : vector<8x512xf32>
    %135 = vector.extract_strided_slice %134 {offsets = [0, 0], sizes = [8, 128], strides = [1, 1]} : vector<8x512xf32> to vector<8x128xf32>
    %136 = arith.negf %135 : vector<8x128xf32>
    %137 = math.exp %136 : vector<8x128xf32>
    %cst_41 = arith.constant 1.000000e+00 : f32
    %138 = vector.broadcast %cst_41 : f32 to vector<8x128xf32>
    %139 = arith.addf %138, %137 : vector<8x128xf32>
    %140 = arith.divf %138, %139 : vector<8x128xf32>
    %141 = vector.extract_strided_slice %134 {offsets = [0, 128], sizes = [8, 128], strides = [1, 1]} : vector<8x512xf32> to vector<8x128xf32>
    %142 = arith.negf %141 : vector<8x128xf32>
    %143 = math.exp %142 : vector<8x128xf32>
    %cst_42 = arith.constant 1.000000e+00 : f32
    %144 = vector.broadcast %cst_42 : f32 to vector<8x128xf32>
    %145 = arith.addf %144, %143 : vector<8x128xf32>
    %146 = arith.divf %144, %145 : vector<8x128xf32>
    %147 = vector.extract_strided_slice %134 {offsets = [0, 256], sizes = [8, 128], strides = [1, 1]} : vector<8x512xf32> to vector<8x128xf32>
    %148 = vector.extract_strided_slice %134 {offsets = [0, 384], sizes = [8, 128], strides = [1, 1]} : vector<8x512xf32> to vector<8x128xf32>
    %149 = arith.mulf %140, %148 : vector<8x128xf32>
    %150 = arith.addf %147, %149 : vector<8x128xf32>
    %151 = math.tanh %150 : vector<8x128xf32>
    %cst_43 = arith.constant 1.000000e+00 : f32
    %152 = vector.broadcast %cst_43 : f32 to vector<8x128xf32>
    %153 = arith.subf %152, %146 : vector<8x128xf32>
    %154 = arith.mulf %153, %151 : vector<8x128xf32>
    %155 = arith.mulf %146, %130 : vector<8x128xf32>
    %156 = arith.addf %154, %155 : vector<8x128xf32>
    %c0_44 = arith.constant 0 : index
    %c0_45 = arith.constant 0 : index
    %157 = vector.load %arg3[%c0_44, %c0_45] : memref<128x512xf32, #tpu.memory_space<vmem>>, vector<128x512xf32>
    %cst_46 = arith.constant dense<0.000000e+00> : vector<8x512xf32>
    %158 = tpu.matmul %156, %157, %cst_46 {dimension_numbers = #tpu.dot_dimension_numbers<[1], [0], [0], [1], [0, 0, 1, 1], [], []>} : vector<8x128xf32>, vector<128x512xf32>, vector<8x512xf32> -> vector<8x512xf32>
    %c40 = arith.constant 40 : index
    %c0_47 = arith.constant 0 : index
    %159 = vector.load %arg8[%c40, %c0_47] : memref<64x512xf32, #tpu.memory_space<vmem>>, vector<8x512xf32>
    %160 = arith.addf %158, %159 : vector<8x512xf32>
    %161 = vector.extract_strided_slice %160 {offsets = [0, 0], sizes = [8, 128], strides = [1, 1]} : vector<8x512xf32> to vector<8x128xf32>
    %162 = arith.negf %161 : vector<8x128xf32>
    %163 = math.exp %162 : vector<8x128xf32>
    %cst_48 = arith.constant 1.000000e+00 : f32
    %164 = vector.broadcast %cst_48 : f32 to vector<8x128xf32>
    %165 = arith.addf %164, %163 : vector<8x128xf32>
    %166 = arith.divf %164, %165 : vector<8x128xf32>
    %167 = vector.extract_strided_slice %160 {offsets = [0, 128], sizes = [8, 128], strides = [1, 1]} : vector<8x512xf32> to vector<8x128xf32>
    %168 = arith.negf %167 : vector<8x128xf32>
    %169 = math.exp %168 : vector<8x128xf32>
    %cst_49 = arith.constant 1.000000e+00 : f32
    %170 = vector.broadcast %cst_49 : f32 to vector<8x128xf32>
    %171 = arith.addf %170, %169 : vector<8x128xf32>
    %172 = arith.divf %170, %171 : vector<8x128xf32>
    %173 = vector.extract_strided_slice %160 {offsets = [0, 256], sizes = [8, 128], strides = [1, 1]} : vector<8x512xf32> to vector<8x128xf32>
    %174 = vector.extract_strided_slice %160 {offsets = [0, 384], sizes = [8, 128], strides = [1, 1]} : vector<8x512xf32> to vector<8x128xf32>
    %175 = arith.mulf %166, %174 : vector<8x128xf32>
    %176 = arith.addf %173, %175 : vector<8x128xf32>
    %177 = math.tanh %176 : vector<8x128xf32>
    %cst_50 = arith.constant 1.000000e+00 : f32
    %178 = vector.broadcast %cst_50 : f32 to vector<8x128xf32>
    %179 = arith.subf %178, %172 : vector<8x128xf32>
    %180 = arith.mulf %179, %177 : vector<8x128xf32>
    %181 = arith.mulf %172, %156 : vector<8x128xf32>
    %182 = arith.addf %180, %181 : vector<8x128xf32>
    %c0_51 = arith.constant 0 : index
    %c0_52 = arith.constant 0 : index
    %183 = vector.load %arg3[%c0_51, %c0_52] : memref<128x512xf32, #tpu.memory_space<vmem>>, vector<128x512xf32>
    %cst_53 = arith.constant dense<0.000000e+00> : vector<8x512xf32>
    %184 = tpu.matmul %182, %183, %cst_53 {dimension_numbers = #tpu.dot_dimension_numbers<[1], [0], [0], [1], [0, 0, 1, 1], [], []>} : vector<8x128xf32>, vector<128x512xf32>, vector<8x512xf32> -> vector<8x512xf32>
    %c48 = arith.constant 48 : index
    %c0_54 = arith.constant 0 : index
    %185 = vector.load %arg8[%c48, %c0_54] : memref<64x512xf32, #tpu.memory_space<vmem>>, vector<8x512xf32>
    %186 = arith.addf %184, %185 : vector<8x512xf32>
    %187 = vector.extract_strided_slice %186 {offsets = [0, 0], sizes = [8, 128], strides = [1, 1]} : vector<8x512xf32> to vector<8x128xf32>
    %188 = arith.negf %187 : vector<8x128xf32>
    %189 = math.exp %188 : vector<8x128xf32>
    %cst_55 = arith.constant 1.000000e+00 : f32
    %190 = vector.broadcast %cst_55 : f32 to vector<8x128xf32>
    %191 = arith.addf %190, %189 : vector<8x128xf32>
    %192 = arith.divf %190, %191 : vector<8x128xf32>
    %193 = vector.extract_strided_slice %186 {offsets = [0, 128], sizes = [8, 128], strides = [1, 1]} : vector<8x512xf32> to vector<8x128xf32>
    %194 = arith.negf %193 : vector<8x128xf32>
    %195 = math.exp %194 : vector<8x128xf32>
    %cst_56 = arith.constant 1.000000e+00 : f32
    %196 = vector.broadcast %cst_56 : f32 to vector<8x128xf32>
    %197 = arith.addf %196, %195 : vector<8x128xf32>
    %198 = arith.divf %196, %197 : vector<8x128xf32>
    %199 = vector.extract_strided_slice %186 {offsets = [0, 256], sizes = [8, 128], strides = [1, 1]} : vector<8x512xf32> to vector<8x128xf32>
    %200 = vector.extract_strided_slice %186 {offsets = [0, 384], sizes = [8, 128], strides = [1, 1]} : vector<8x512xf32> to vector<8x128xf32>
    %201 = arith.mulf %192, %200 : vector<8x128xf32>
    %202 = arith.addf %199, %201 : vector<8x128xf32>
    %203 = math.tanh %202 : vector<8x128xf32>
    %cst_57 = arith.constant 1.000000e+00 : f32
    %204 = vector.broadcast %cst_57 : f32 to vector<8x128xf32>
    %205 = arith.subf %204, %198 : vector<8x128xf32>
    %206 = arith.mulf %205, %203 : vector<8x128xf32>
    %207 = arith.mulf %198, %182 : vector<8x128xf32>
    %208 = arith.addf %206, %207 : vector<8x128xf32>
    %c0_58 = arith.constant 0 : index
    %c0_59 = arith.constant 0 : index
    %209 = vector.load %arg3[%c0_58, %c0_59] : memref<128x512xf32, #tpu.memory_space<vmem>>, vector<128x512xf32>
    %cst_60 = arith.constant dense<0.000000e+00> : vector<8x512xf32>
    %210 = tpu.matmul %208, %209, %cst_60 {dimension_numbers = #tpu.dot_dimension_numbers<[1], [0], [0], [1], [0, 0, 1, 1], [], []>} : vector<8x128xf32>, vector<128x512xf32>, vector<8x512xf32> -> vector<8x512xf32>
    %c56 = arith.constant 56 : index
    %c0_61 = arith.constant 0 : index
    %211 = vector.load %arg8[%c56, %c0_61] : memref<64x512xf32, #tpu.memory_space<vmem>>, vector<8x512xf32>
    %212 = arith.addf %210, %211 : vector<8x512xf32>
    %213 = vector.extract_strided_slice %212 {offsets = [0, 0], sizes = [8, 128], strides = [1, 1]} : vector<8x512xf32> to vector<8x128xf32>
    %214 = arith.negf %213 : vector<8x128xf32>
    %215 = math.exp %214 : vector<8x128xf32>
    %cst_62 = arith.constant 1.000000e+00 : f32
    %216 = vector.broadcast %cst_62 : f32 to vector<8x128xf32>
    %217 = arith.addf %216, %215 : vector<8x128xf32>
    %218 = arith.divf %216, %217 : vector<8x128xf32>
    %219 = vector.extract_strided_slice %212 {offsets = [0, 128], sizes = [8, 128], strides = [1, 1]} : vector<8x512xf32> to vector<8x128xf32>
    %220 = arith.negf %219 : vector<8x128xf32>
    %221 = math.exp %220 : vector<8x128xf32>
    %cst_63 = arith.constant 1.000000e+00 : f32
    %222 = vector.broadcast %cst_63 : f32 to vector<8x128xf32>
    %223 = arith.addf %222, %221 : vector<8x128xf32>
    %224 = arith.divf %222, %223 : vector<8x128xf32>
    %225 = vector.extract_strided_slice %212 {offsets = [0, 256], sizes = [8, 128], strides = [1, 1]} : vector<8x512xf32> to vector<8x128xf32>
    %226 = vector.extract_strided_slice %212 {offsets = [0, 384], sizes = [8, 128], strides = [1, 1]} : vector<8x512xf32> to vector<8x128xf32>
    %227 = arith.mulf %218, %226 : vector<8x128xf32>
    %228 = arith.addf %225, %227 : vector<8x128xf32>
    %229 = math.tanh %228 : vector<8x128xf32>
    %cst_64 = arith.constant 1.000000e+00 : f32
    %230 = vector.broadcast %cst_64 : f32 to vector<8x128xf32>
    %231 = arith.subf %230, %224 : vector<8x128xf32>
    %232 = arith.mulf %231, %229 : vector<8x128xf32>
    %233 = arith.mulf %224, %208 : vector<8x128xf32>
    %234 = arith.addf %232, %233 : vector<8x128xf32>
    %c0_65 = arith.constant 0 : index
    %c0_66 = arith.constant 0 : index
    %235 = vector.load %arg3[%c0_65, %c0_66] : memref<128x512xf32, #tpu.memory_space<vmem>>, vector<128x512xf32>
    %cst_67 = arith.constant dense<0.000000e+00> : vector<8x512xf32>
    %236 = tpu.matmul %234, %235, %cst_67 {dimension_numbers = #tpu.dot_dimension_numbers<[1], [0], [0], [1], [0, 0, 1, 1], [], []>} : vector<8x128xf32>, vector<128x512xf32>, vector<8x512xf32> -> vector<8x512xf32>
    %c0_68 = arith.constant 0 : index
    %c0_69 = arith.constant 0 : index
    %237 = vector.load %arg4[%c0_68, %c0_69] : memref<1x512xf32, #tpu.memory_space<vmem>>, vector<1x512xf32>
    %238 = vector.broadcast %237 : vector<1x512xf32> to vector<8x512xf32>
    %239 = arith.addf %236, %238 : vector<8x512xf32>
    %240 = vector.extract_strided_slice %239 {offsets = [0, 0], sizes = [8, 128], strides = [1, 1]} : vector<8x512xf32> to vector<8x128xf32>
    %241 = arith.negf %240 : vector<8x128xf32>
    %242 = math.exp %241 : vector<8x128xf32>
    %cst_70 = arith.constant 1.000000e+00 : f32
    %243 = vector.broadcast %cst_70 : f32 to vector<8x128xf32>
    %244 = arith.addf %243, %242 : vector<8x128xf32>
    %245 = arith.divf %243, %244 : vector<8x128xf32>
    %246 = vector.extract_strided_slice %239 {offsets = [0, 128], sizes = [8, 128], strides = [1, 1]} : vector<8x512xf32> to vector<8x128xf32>
    %247 = arith.negf %246 : vector<8x128xf32>
    %248 = math.exp %247 : vector<8x128xf32>
    %cst_71 = arith.constant 1.000000e+00 : f32
    %249 = vector.broadcast %cst_71 : f32 to vector<8x128xf32>
    %250 = arith.addf %249, %248 : vector<8x128xf32>
    %251 = arith.divf %249, %250 : vector<8x128xf32>
    %252 = vector.extract_strided_slice %239 {offsets = [0, 256], sizes = [8, 128], strides = [1, 1]} : vector<8x512xf32> to vector<8x128xf32>
    %253 = vector.extract_strided_slice %239 {offsets = [0, 384], sizes = [8, 128], strides = [1, 1]} : vector<8x512xf32> to vector<8x128xf32>
    %254 = arith.mulf %245, %253 : vector<8x128xf32>
    %255 = arith.addf %252, %254 : vector<8x128xf32>
    %256 = math.tanh %255 : vector<8x128xf32>
    %cst_72 = arith.constant 1.000000e+00 : f32
    %257 = vector.broadcast %cst_72 : f32 to vector<8x128xf32>
    %258 = arith.subf %257, %251 : vector<8x128xf32>
    %259 = arith.mulf %258, %256 : vector<8x128xf32>
    %260 = arith.mulf %251, %234 : vector<8x128xf32>
    %261 = arith.addf %259, %260 : vector<8x128xf32>
    %c32_i32_73 = arith.constant 32 : i32
    %262 = vector.broadcast %c32_i32_73 : i32 to vector<8x128xi32>
    %263 = arith.cmpi sge, %8, %262 : vector<8x128xi32>
    %c288_i32 = arith.constant 288 : i32
    %264 = vector.broadcast %c288_i32 : i32 to vector<8x128xi32>
    %265 = arith.cmpi slt, %8, %264 : vector<8x128xi32>
    %266 = arith.andi %263, %265 : vector<8x128xi1>
    %267 = arith.select %266, %261, %234 : vector<8x128xi1>, vector<8x128xf32>
    %c0_74 = arith.constant 0 : index
    %c0_75 = arith.constant 0 : index
    %268 = vector.load %arg3[%c0_74, %c0_75] : memref<128x512xf32, #tpu.memory_space<vmem>>, vector<128x512xf32>
    %cst_76 = arith.constant dense<0.000000e+00> : vector<8x512xf32>
    %269 = tpu.matmul %267, %268, %cst_76 {dimension_numbers = #tpu.dot_dimension_numbers<[1], [0], [0], [1], [0, 0, 1, 1], [], []>} : vector<8x128xf32>, vector<128x512xf32>, vector<8x512xf32> -> vector<8x512xf32>
    %c0_77 = arith.constant 0 : index
    %c0_78 = arith.constant 0 : index
    %270 = vector.load %arg4[%c0_77, %c0_78] : memref<1x512xf32, #tpu.memory_space<vmem>>, vector<1x512xf32>
    %271 = vector.broadcast %270 : vector<1x512xf32> to vector<8x512xf32>
    %272 = arith.addf %269, %271 : vector<8x512xf32>
    %273 = vector.extract_strided_slice %272 {offsets = [0, 0], sizes = [8, 128], strides = [1, 1]} : vector<8x512xf32> to vector<8x128xf32>
    %274 = arith.negf %273 : vector<8x128xf32>
    %275 = math.exp %274 : vector<8x128xf32>
    %cst_79 = arith.constant 1.000000e+00 : f32
    %276 = vector.broadcast %cst_79 : f32 to vector<8x128xf32>
    %277 = arith.addf %276, %275 : vector<8x128xf32>
    %278 = arith.divf %276, %277 : vector<8x128xf32>
    %279 = vector.extract_strided_slice %272 {offsets = [0, 128], sizes = [8, 128], strides = [1, 1]} : vector<8x512xf32> to vector<8x128xf32>
    %280 = arith.negf %279 : vector<8x128xf32>
    %281 = math.exp %280 : vector<8x128xf32>
    %cst_80 = arith.constant 1.000000e+00 : f32
    %282 = vector.broadcast %cst_80 : f32 to vector<8x128xf32>
    %283 = arith.addf %282, %281 : vector<8x128xf32>
    %284 = arith.divf %282, %283 : vector<8x128xf32>
    %285 = vector.extract_strided_slice %272 {offsets = [0, 256], sizes = [8, 128], strides = [1, 1]} : vector<8x512xf32> to vector<8x128xf32>
    %286 = vector.extract_strided_slice %272 {offsets = [0, 384], sizes = [8, 128], strides = [1, 1]} : vector<8x512xf32> to vector<8x128xf32>
    %287 = arith.mulf %278, %286 : vector<8x128xf32>
    %288 = arith.addf %285, %287 : vector<8x128xf32>
    %289 = math.tanh %288 : vector<8x128xf32>
    %cst_81 = arith.constant 1.000000e+00 : f32
    %290 = vector.broadcast %cst_81 : f32 to vector<8x128xf32>
    %291 = arith.subf %290, %284 : vector<8x128xf32>
    %292 = arith.mulf %291, %289 : vector<8x128xf32>
    %293 = arith.mulf %284, %267 : vector<8x128xf32>
    %294 = arith.addf %292, %293 : vector<8x128xf32>
    %c64_i32_82 = arith.constant 64 : i32
    %295 = vector.broadcast %c64_i32_82 : i32 to vector<8x128xi32>
    %296 = arith.cmpi sge, %8, %295 : vector<8x128xi32>
    %c320_i32 = arith.constant 320 : i32
    %297 = vector.broadcast %c320_i32 : i32 to vector<8x128xi32>
    %298 = arith.cmpi slt, %8, %297 : vector<8x128xi32>
    %299 = arith.andi %296, %298 : vector<8x128xi1>
    %300 = arith.select %299, %294, %267 : vector<8x128xi1>, vector<8x128xf32>
    %c0_83 = arith.constant 0 : index
    %c0_84 = arith.constant 0 : index
    %301 = vector.load %arg3[%c0_83, %c0_84] : memref<128x512xf32, #tpu.memory_space<vmem>>, vector<128x512xf32>
    %cst_85 = arith.constant dense<0.000000e+00> : vector<8x512xf32>
    %302 = tpu.matmul %300, %301, %cst_85 {dimension_numbers = #tpu.dot_dimension_numbers<[1], [0], [0], [1], [0, 0, 1, 1], [], []>} : vector<8x128xf32>, vector<128x512xf32>, vector<8x512xf32> -> vector<8x512xf32>
    %c0_86 = arith.constant 0 : index
    %c0_87 = arith.constant 0 : index
    %303 = vector.load %arg4[%c0_86, %c0_87] : memref<1x512xf32, #tpu.memory_space<vmem>>, vector<1x512xf32>
    %304 = vector.broadcast %303 : vector<1x512xf32> to vector<8x512xf32>
    %305 = arith.addf %302, %304 : vector<8x512xf32>
    %306 = vector.extract_strided_slice %305 {offsets = [0, 0], sizes = [8, 128], strides = [1, 1]} : vector<8x512xf32> to vector<8x128xf32>
    %307 = arith.negf %306 : vector<8x128xf32>
    %308 = math.exp %307 : vector<8x128xf32>
    %cst_88 = arith.constant 1.000000e+00 : f32
    %309 = vector.broadcast %cst_88 : f32 to vector<8x128xf32>
    %310 = arith.addf %309, %308 : vector<8x128xf32>
    %311 = arith.divf %309, %310 : vector<8x128xf32>
    %312 = vector.extract_strided_slice %305 {offsets = [0, 128], sizes = [8, 128], strides = [1, 1]} : vector<8x512xf32> to vector<8x128xf32>
    %313 = arith.negf %312 : vector<8x128xf32>
    %314 = math.exp %313 : vector<8x128xf32>
    %cst_89 = arith.constant 1.000000e+00 : f32
    %315 = vector.broadcast %cst_89 : f32 to vector<8x128xf32>
    %316 = arith.addf %315, %314 : vector<8x128xf32>
    %317 = arith.divf %315, %316 : vector<8x128xf32>
    %318 = vector.extract_strided_slice %305 {offsets = [0, 256], sizes = [8, 128], strides = [1, 1]} : vector<8x512xf32> to vector<8x128xf32>
    %319 = vector.extract_strided_slice %305 {offsets = [0, 384], sizes = [8, 128], strides = [1, 1]} : vector<8x512xf32> to vector<8x128xf32>
    %320 = arith.mulf %311, %319 : vector<8x128xf32>
    %321 = arith.addf %318, %320 : vector<8x128xf32>
    %322 = math.tanh %321 : vector<8x128xf32>
    %cst_90 = arith.constant 1.000000e+00 : f32
    %323 = vector.broadcast %cst_90 : f32 to vector<8x128xf32>
    %324 = arith.subf %323, %317 : vector<8x128xf32>
    %325 = arith.mulf %324, %322 : vector<8x128xf32>
    %326 = arith.mulf %317, %300 : vector<8x128xf32>
    %327 = arith.addf %325, %326 : vector<8x128xf32>
    %c96_i32_91 = arith.constant 96 : i32
    %328 = vector.broadcast %c96_i32_91 : i32 to vector<8x128xi32>
    %329 = arith.cmpi sge, %8, %328 : vector<8x128xi32>
    %c352_i32 = arith.constant 352 : i32
    %330 = vector.broadcast %c352_i32 : i32 to vector<8x128xi32>
    %331 = arith.cmpi slt, %8, %330 : vector<8x128xi32>
    %332 = arith.andi %329, %331 : vector<8x128xi1>
    %333 = arith.select %332, %327, %300 : vector<8x128xi1>, vector<8x128xf32>
    %c0_92 = arith.constant 0 : index
    %c0_93 = arith.constant 0 : index
    %334 = vector.load %arg5[%c0_92, %c0_93] : memref<128x8xf32, #tpu.memory_space<vmem>>, vector<128x8xf32>
    %cst_94 = arith.constant dense<0.000000e+00> : vector<8x8xf32>
    %335 = tpu.matmul %333, %334, %cst_94 {dimension_numbers = #tpu.dot_dimension_numbers<[1], [0], [0], [1], [0, 0, 1, 1], [], []>} : vector<8x128xf32>, vector<128x8xf32>, vector<8x8xf32> -> vector<8x8xf32>
    %c0_95 = arith.constant 0 : index
    %c0_96 = arith.constant 0 : index
    %336 = vector.load %arg6[%c0_95, %c0_96] : memref<1x8xf32, #tpu.memory_space<vmem>>, vector<1x8xf32>
    %337 = vector.broadcast %336 : vector<1x8xf32> to vector<8x8xf32>
    %338 = arith.addf %335, %337 : vector<8x8xf32>
    %c0_97 = arith.constant 0 : index
    %c0_98 = arith.constant 0 : index
    %339 = vector.load %arg7[%c0_97, %c0_98] : memref<8x8xf32, #tpu.memory_space<vmem>>, vector<8x8xf32>
    tpu.vector_store %arg7[%c0_97, %c0_98], %338 {strides = array<i32>} : memref<8x8xf32, #tpu.memory_space<vmem>>, vector<8x8xf32>,
    return
  }
}

</mosaic_0001>

<bundles_post_ra>
// kernel: tpu_custom_call.1
= control target key start
LH: loop header
LB: loop body
LE: loop exit
PB: predicated region body
PF: predicated region fallthrough
CT: control target
= control target key end

     0   :  { %12 = vsyncpa [#allocation4], 0  ;;  %s4115_s0 = inlined_call_operand.vmem [shape: f32[64,16], index: 0, kind: input, shape index: {}]   ;;  %s4116_s1 = inlined_call_operand.vmem [shape: f32[16,512], index: 1, kind: input, shape index: {}]   ;;  %s4117_s2 = inlined_call_operand.vmem [shape: f32[1,512], index: 2, kind: input, shape index: {}]   ;;  %s4118_s3 = inlined_call_operand.hbm [shape: f32[128,512], index: 3, kind: input, shape index: {}]   ;;  %s4119_s4 = inlined_call_operand.vmem [shape: f32[1,512], index: 4, kind: input, shape index: {}]   ;;  %s4120_s5 = inlined_call_operand.vmem [shape: f32[128,8], index: 5, kind: input, shape index: {}]   ;;  %s4121_s6 = inlined_call_operand.vmem [shape: f32[1,8], index: 6, kind: input, shape index: {}]   ;;  %s4122_s7 = inlined_call_operand.hbm [shape: f32[8,8], index: 7, kind: output, shape index: {}]  }
   0x1   :  { %13 = vsyncpa [#allocation5], 0  ;;  %s2722_s24 = smov [#allocation3]  }
   0x2   :  { %s25_s25 = sshll.u32 %s2722_s24, 4  ;;  %s26_s25 = int_to_ptr.vmem [resolvable:$true] %s25_s25 }
   0x3   :  { %s2686_s26 = scalar_lea.vmem %s26_s25, 8192  ;;  %p2691_p1 = scmp.lt.s32.totalorder %s26_s25, %s26_s25 }
   0x4   :  { %p2687_p0 = scmp.ne.s32.totalorder %s26_s25, %s2686_s26  ;;  %p2692_p2 = scmp.lt.s32.totalorder %s2686_s26, %s2686_s26 }
   0x6   :  { %p2693_p3 = por %p2692_p2, %p2691_p1 }
   0x8   :  { %p2694_p4 = pnand %p2693_p3, %p2687_p0 }
   0xa   :  { %2697 = shalt.err (!%p2694_p4)
}
   0xb   :  { %s2723_s27 = smov 512   ;;  %s2724_s28 = smov 32  }
   0xc   :  { %31 = dma.hbm_to_vmem [thread:$0]  %s4118_s3, 8192, %s26_s25, [#allocation4], %s2723_s27, %s2723_s27, %s2724_s28  }
   0xd   :  { %2718 = dma.done.wait [#allocation4], 8192  }
   0xe   :  { %2719 = vsyncadd [#allocation4], 4294959104  ;;  %v4123_v0 = vmov 0.0   ;;  %v54_v1 = vld [vmem:[%s4116_s1 + $0x28] sm:$0xff]  ;;  %v56_v2 = vld [vmem:[%s4116_s1 + $0x38] sm:$0xff]  ;;  %vm79_vm0 = vcmask 130048  }
   0xf   :  { %168 = vmatprep.mubr.f32.mxu0 %v4123_v0  ;;  %281 = vmatprep.mubr.f32.mxu1 %v4123_v0  ;;  %v53_v3 = vld [vmem:[%s4116_s1 + $0x20] sm:$0xff]  ;;  %v55_v4 = vld [vmem:[%s4116_s1 + $0x30] sm:$0xff]  ;;  %v50_v5 = vld [vmem:[%s4116_s1 + $0x8] sm:$0xff]  ;;  %vm2726_vm6 = vmmov 0   ;;  %s2727_s20 = smov [#allocation6]   ;;  %vm2370_vm8 = vcmask 64512  }
  0x10   :  { %132 = vmatprep.subr.mxu0 %v54_v1  ;;  %245 = vmatprep.subr.mxu1 %v56_v2  ;;  %v52_v6 = vld [vmem:[%s4116_s1 + $0x18] sm:$0xff]  ;;  %v49_v7 = vld [vmem:[%s4116_s1] sm:$0xff]  ;;  %v51_v8 = vld [vmem:[%s4116_s1 + $0x10] sm:$0xff]  ;;  %s2378_s21 = sshll.u32 %s2727_s20, 4  ;;  %s2379_s21 = int_to_ptr.vmem [resolvable:$true] %s2378_s21 }
  0x11   :  { %133 = vmatpush1.msra.mxu0 %v53_v3  ;;  %246 = vmatpush1.msra.mxu1 %v55_v4  ;;  %v41_v9 = vld [vmem:[%s4115_s0] sm:$0xff]  ;;  %v2800_v10 = vld [vmem:[#allocation3 + $0x1e8] sm:$0xff]  ;;  %v2802_v11 = vld [vmem:[#allocation3 + $0x1f8] sm:$0xff]  ;;  %s2698_s22 = scalar_lea.vmem %s2379_s21, 128  ;;  %p2703_p6 = scmp.lt.s32.totalorder %s2379_s21, %s2379_s21 }
  0x12   :  { %134 = vmatprep.subr.mxu0 %v50_v5  ;;  %247 = vmatprep.subr.mxu1 %v52_v6  ;;  %4232 = vst [vmem:[#allocation9_spill] sm:$0xff] %v2800_v10  ;;  %4233 = vst [vmem:[#allocation10_spill] sm:$0xff] %v2802_v11  ;;  %v2804_v12 = vld [vmem:[#allocation3 + $0x1e0] sm:$0xff]  ;;  %v2806_v13 = vld [vmem:[#allocation3 + $0x1f0] sm:$0xff]  ;;  %p2699_p5 = scmp.ne.s32.totalorder %s2379_s21, %s2698_s22  ;;  %p2704_p7 = scmp.lt.s32.totalorder %s2698_s22, %s2698_s22 }
  0x13   :  { %135 = vmatpush1.msra.mxu0 %v49_v7  ;;  %248 = vmatpush1.msra.mxu1 %v51_v8  ;;  %v2810_v14 = vld [vmem:[#allocation3 + $0x1c8] sm:$0xff]  ;;  %v2812_v15 = vld [vmem:[#allocation3 + $0x1d8] sm:$0xff]  ;;  %v2818_v16 = vld [vmem:[#allocation3 + $0x1c0] sm:$0xff] }
  0x14   :  { %2387 = vmatmul.mubr.msk.f32.vlgmr.msra.gmra.mxu0 %vm79_vm0, %v41_v9  ;;  %2395 = vmatmul.mubr.msk.f32.vlgmr.msra.gmra.mxu1 %vm79_vm0, %v41_v9  ;;  %v2820_v17 = vld [vmem:[#allocation3 + $0x1d0] sm:$0xff]  ;;  %v42_v18 = vld [vmem:[%s4115_s0 + $0x8] sm:$0xff]  ;;  %v2831_v20 = vld [vmem:[#allocation3 + $0x1b8] sm:$0xff]  ;;  %p2705_p8 = por %p2704_p7, %p2703_p6 }
  0x15   :  { %432 = vmatprep.subr.mxu0 %v2800_v10  ;;  %503 = vmatprep.subr.mxu1 %v2802_v11  ;;  %v2829_v19 = vld [vmem:[#allocation3 + $0x1a8] sm:$0xff]  ;;  %v2835_v21 = vld [vmem:[#allocation3 + $0x1a0] sm:$0xff]  ;;  %v2837_v22 = vld [vmem:[#allocation3 + $0x1b0] sm:$0xff] }
  0x16   :  { %433 = vmatpush1.msra.mxu0 %v2804_v12  ;;  %504 = vmatpush1.msra.mxu1 %v2806_v13  ;;  %v2841_v23 = vld [vmem:[#allocation3 + $0x188] sm:$0xff]  ;;  %v2843_v24 = vld [vmem:[#allocation3 + $0x198] sm:$0xff]  ;;  %v2849_v25 = vld [vmem:[#allocation3 + $0x180] sm:$0xff]  ;;  %p2706_p9 = pnand %p2705_p8, %p2699_p5 }
  0x17   :  { %434 = vmatprep.subr.mxu0 %v2810_v14  ;;  %505 = vmatprep.subr.mxu1 %v2812_v15  ;;  %v2851_v26 = vld [vmem:[#allocation3 + $0x190] sm:$0xff]  ;;  %v2860_v28 = vld [vmem:[#allocation3 + $0x168] sm:$0xff]  ;;  %v2862_v29 = vld [vmem:[#allocation3 + $0x178] sm:$0xff] }
  0x18   :  { %174 = vmatprep.mubr.f32.mxu0 %v4123_v0  ;;  %287 = vmatprep.mubr.f32.mxu1 %v4123_v0  ;;  %v43_v27 = vld [vmem:[%s4115_s0 + $0x10] sm:$0xff]  ;;  %v2866_v30 = vld [vmem:[#allocation3 + $0x160] sm:$0xff]  ;;  %v2872_v32 = vld [vmem:[#allocation3 + $0x148] sm:$0xff] }
  0x19   :  { %435 = vmatpush1.msra.mxu0 %v2818_v16  ;;  %506 = vmatpush1.msra.mxu1 %v2820_v17  ;;  %v2868_v31 = vld [vmem:[#allocation3 + $0x170] sm:$0xff]  ;;  %v2874_v33 = vld [vmem:[#allocation3 + $0x158] sm:$0xff]  ;;  %v2880_v34 = vld [vmem:[#allocation3 + $0x140] sm:$0xff] }
  0x1a   :  { %2388 = vmatmul.mubr.msk.f32.gmra.mxu0 %vm79_vm0, %v42_v18  ;;  %2396 = vmatmul.mubr.msk.f32.gmra.mxu1 %vm79_vm0, %v42_v18  ;;  %v2882_v35 = vld [vmem:[#allocation3 + $0x150] sm:$0xff]  ;;  %v44_v36 = vld [vmem:[%s4115_s0 + $0x18] sm:$0xff]  ;;  %v2891_v37 = vld [vmem:[#allocation3 + $0x128] sm:$0xff] }
  0x1b   :  { %436 = vmatprep.subr.mxu0 %v2829_v19  ;;  %507 = vmatprep.subr.mxu1 %v2831_v20  ;;  %v2893_v38 = vld [vmem:[#allocation3 + $0x138] sm:$0xff]  ;;  %v2897_v39 = vld [vmem:[#allocation3 + $0x120] sm:$0xff]  ;;  %v2899_v40 = vld [vmem:[#allocation3 + $0x130] sm:$0xff] }
  0x1c   :  { %437 = vmatpush1.msra.mxu0 %v2835_v21  ;;  %508 = vmatpush1.msra.mxu1 %v2837_v22  ;;  %v2903_v41 = vld [vmem:[#allocation3 + $0x108] sm:$0xff]  ;;  %v2905_v42 = vld [vmem:[#allocation3 + $0x118] sm:$0xff]  ;;  %v2911_v43 = vld [vmem:[#allocation3 + $0x100] sm:$0xff] }
  0x1d   :  { %438 = vmatprep.subr.mxu0 %v2841_v23  ;;  %509 = vmatprep.subr.mxu1 %v2843_v24  ;;  %v2913_v44 = vld [vmem:[#allocation3 + $0x110] sm:$0xff]  ;;  %v45_v45 = vld [vmem:[%s4115_s0 + $0x20] sm:$0xff]  ;;  %v2922_v46 = vld [vmem:[#allocation3 + $0xe8] sm:$0xff] }
  0x1e   :  { %180 = vmatprep.mubr.f32.mxu0 %v4123_v0  ;;  %293 = vmatprep.mubr.f32.mxu1 %v4123_v0  ;;  %v2924_v47 = vld [vmem:[#allocation3 + $0xf8] sm:$0xff]  ;;  %v2928_v48 = vld [vmem:[#allocation3 + $0xe0] sm:$0xff]  ;;  %v2930_v49 = vld [vmem:[#allocation3 + $0xf0] sm:$0xff] }
  0x1f   :  { %439 = vmatpush1.msra.mxu0 %v2849_v25  ;;  %510 = vmatpush1.msra.mxu1 %v2851_v26  ;;  %v2934_v50 = vld [vmem:[#allocation3 + $0xc8] sm:$0xff]  ;;  %v2936_v51 = vld [vmem:[#allocation3 + $0xd8] sm:$0xff]  ;;  %v2942_v52 = vld [vmem:[#allocation3 + $0xc0] sm:$0xff] }
  0x20   :  { %2389 = vmatmul.mubr.msk.f32.gmra.mxu0 %vm79_vm0, %v43_v27  ;;  %2397 = vmatmul.mubr.msk.f32.gmra.mxu1 %vm79_vm0, %v43_v27  ;;  %v2944_v53 = vld [vmem:[#allocation3 + $0xd0] sm:$0xff]  ;;  %v46_v54 = vld [vmem:[%s4115_s0 + $0x28] sm:$0xff]  ;;  %v2955_v56 = vld [vmem:[#allocation3 + $0xb8] sm:$0xff] }
  0x21   :  { %440 = vmatprep.subr.mxu0 %v2860_v28  ;;  %511 = vmatprep.subr.mxu1 %v2862_v29  ;;  %v2953_v55 = vld [vmem:[#allocation3 + $0xa8] sm:$0xff]  ;;  %v2959_v57 = vld [vmem:[#allocation3 + $0xa0] sm:$0xff]  ;;  %v2961_v58 = vld [vmem:[#allocation3 + $0xb0] sm:$0xff] }
  0x22   :  { %441 = vmatpush1.msra.mxu0 %v2866_v30  ;;  %512 = vmatpush1.msra.mxu1 %v2868_v31  ;;  %4234 = vst [vmem:[#allocation11_spill] sm:$0xff] %v2961_v58  ;;  %v2965_v59 = vld [vmem:[#allocation3 + $0x88] sm:$0xff]  ;;  %v2967_v60 = vld [vmem:[#allocation3 + $0x98] sm:$0xff]  ;;  %v2973_v61 = vld [vmem:[#allocation3 + $0x80] sm:$0xff] }
  0x23   :  { %442 = vmatprep.subr.mxu0 %v2872_v32  ;;  %513 = vmatprep.subr.mxu1 %v2874_v33  ;;  %4235 = vst [vmem:[#allocation12_spill] sm:$0xff] %v2965_v59  ;;  %4236 = vst [vmem:[#allocation13_spill] sm:$0xff] %v2967_v60  ;;  %v2975_v62 = vld [vmem:[#allocation3 + $0x90] sm:$0xff]  ;;  %v2984_v1 = vld [vmem:[#allocation3 + $0x68] sm:$0xff] }
  0x24   :  { %186 = vmatprep.mubr.f32.mxu0 %v4123_v0  ;;  %299 = vmatprep.mubr.f32.mxu1 %v4123_v0  ;;  %4237 = vst [vmem:[#allocation14_spill] sm:$0xff] %v2973_v61  ;;  %4238 = vst [vmem:[#allocation15_spill] sm:$0xff] %v2975_v62  ;;  %v47_v63 = vld [vmem:[%s4115_s0 + $0x30] sm:$0xff]  ;;  %v2986_v2 = vld [vmem:[#allocation3 + $0x78] sm:$0xff] }
  0x25   :  { %443 = vmatpush1.msra.mxu0 %v2880_v34  ;;  %514 = vmatpush1.msra.mxu1 %v2882_v35  ;;  %4239 = vst [vmem:[#allocation16_spill] sm:$0xff] %v2984_v1  ;;  %4240 = vst [vmem:[#allocation17_spill] sm:$0xff] %v2986_v2  ;;  %v2990_v3 = vld [vmem:[#allocation3 + $0x60] sm:$0xff]  ;;  %v2992_v4 = vld [vmem:[#allocation3 + $0x70] sm:$0xff] }
  0x26   :  { %2390 = vmatmul.mubr.msk.f32.gmra.mxu0 %vm79_vm0, %v44_v36  ;;  %2398 = vmatmul.mubr.msk.f32.gmra.mxu1 %vm79_vm0, %v44_v36  ;;  %4241 = vst [vmem:[#allocation18_spill] sm:$0xff] %v2990_v3  ;;  %4242 = vst [vmem:[#allocation19_spill] sm:$0xff] %v2992_v4  ;;  %v2996_v5 = vld [vmem:[#allocation3 + $0x48] sm:$0xff]  ;;  %v2998_v6 = vld [vmem:[#allocation3 + $0x58] sm:$0xff] }
  0x27   :  { %444 = vmatprep.subr.mxu0 %v2891_v37  ;;  %515 = vmatprep.subr.mxu1 %v2893_v38  ;;  %4243 = vst [vmem:[#allocation20_spill] sm:$0xff] %v2996_v5  ;;  %4244 = vst [vmem:[#allocation21_spill] sm:$0xff] %v2998_v6  ;;  %v3004_v7 = vld [vmem:[#allocation3 + $0x40] sm:$0xff]  ;;  %v3006_v8 = vld [vmem:[#allocation3 + $0x50] sm:$0xff] }
  0x28   :  { %445 = vmatpush1.msra.mxu0 %v2897_v39  ;;  %516 = vmatpush1.msra.mxu1 %v2899_v40  ;;  %4245 = vst [vmem:[#allocation22_spill] sm:$0xff] %v3004_v7  ;;  %4246 = vst [vmem:[#allocation23_spill] sm:$0xff] %v3006_v8  ;;  %v48_v9 = vld [vmem:[%s4115_s0 + $0x38] sm:$0xff]  ;;  %v3015_v18 = vld [vmem:[#allocation3 + $0x28] sm:$0xff] }
  0x29   :  { %446 = vmatprep.subr.mxu0 %v2903_v41  ;;  %517 = vmatprep.subr.mxu1 %v2905_v42  ;;  %4247 = vst [vmem:[#allocation24_spill] sm:$0xff] %v3015_v18  ;;  %v3017_v27 = vld [vmem:[#allocation3 + $0x38] sm:$0xff]  ;;  %v3021_v36 = vld [vmem:[#allocation3 + $0x20] sm:$0xff] }
  0x2a   :  { %192 = vmatprep.mubr.f32.mxu0 %v4123_v0  ;;  %305 = vmatprep.mubr.f32.mxu1 %v4123_v0  ;;  %4248 = vst [vmem:[#allocation25_spill] sm:$0xff] %v3017_v27  ;;  %4249 = vst [vmem:[#allocation26_spill] sm:$0xff] %v3021_v36 }
  0x2b   :  { %447 = vmatpush1.msra.mxu0 %v2911_v43  ;;  %518 = vmatpush1.msra.mxu1 %v2913_v44 }
  0x2c   :  { %2391 = vmatmul.mubr.msk.f32.gmra.mxu0 %vm79_vm0, %v45_v45  ;;  %2399 = vmatmul.mubr.msk.f32.gmra.mxu1 %vm79_vm0, %v45_v45  ;;  %v3023_v45 = vld [vmem:[#allocation3 + $0x30] sm:$0xff] }
  0x2d   :  { %448 = vmatprep.subr.mxu0 %v2922_v46  ;;  %519 = vmatprep.subr.mxu1 %v2924_v47  ;;  %4250 = vst [vmem:[#allocation27_spill] sm:$0xff] %v3023_v45 }
  0x2e   :  { %449 = vmatpush1.msra.mxu0 %v2928_v48  ;;  %520 = vmatpush1.msra.mxu1 %v2930_v49 }
  0x2f   :  { %450 = vmatprep.subr.mxu0 %v2934_v50  ;;  %521 = vmatprep.subr.mxu1 %v2936_v51 }
  0x30   :  { %198 = vmatprep.mubr.f32.mxu0 %v4123_v0  ;;  %311 = vmatprep.mubr.f32.mxu1 %v4123_v0 }
  0x31   :  { %451 = vmatpush1.msra.mxu0 %v2942_v52  ;;  %522 = vmatpush1.msra.mxu1 %v2944_v53 }
  0x32   :  { %2392 = vmatmul.mubr.msk.f32.gmra.mxu0 %vm79_vm0, %v46_v54  ;;  %2400 = vmatmul.mubr.msk.f32.gmra.mxu1 %vm79_vm0, %v46_v54  ;;  %v3027_v54 = vld [vmem:[#allocation3 + $0x8] sm:$0xff] }
  0x33   :  { %452 = vmatprep.subr.mxu0 %v2953_v55  ;;  %523 = vmatprep.subr.mxu1 %v2955_v56  ;;  %4251 = vst [vmem:[#allocation28_spill] sm:$0xff] %v3027_v54 }
  0x34   :  { %453 = vmatpush1.msra.mxu0 %v2959_v57  ;;  %524 = vmatpush1.msra.mxu1 %v2961_v58 }
  0x35   :  { %454 = vmatprep.subr.mxu0 %v2965_v59  ;;  %525 = vmatprep.subr.mxu1 %v2967_v60 }
  0x36   :  { %204 = vmatprep.mubr.f32.mxu0 %v4123_v0  ;;  %317 = vmatprep.mubr.f32.mxu1 %v4123_v0 }
  0x37   :  { %455 = vmatpush1.msra.mxu0 %v2973_v61  ;;  %526 = vmatpush1.msra.mxu1 %v2975_v62 }
  0x38   :  { %2393 = vmatmul.mubr.msk.f32.gmra.mxu0 %vm79_vm0, %v47_v63  ;;  %2401 = vmatmul.mubr.msk.f32.gmra.mxu1 %vm79_vm0, %v47_v63  ;;  %v3029_v63 = vld [vmem:[#allocation3 + $0x18] sm:$0xff] }
  0x39   :  { %456 = vmatprep.subr.mxu0 %v2984_v1  ;;  %527 = vmatprep.subr.mxu1 %v2986_v2  ;;  %4252 = vst [vmem:[#allocation29_spill] sm:$0xff] %v3029_v63 }
  0x3a   :  { %457 = vmatpush1.msra.mxu0 %v2990_v3  ;;  %528 = vmatpush1.msra.mxu1 %v2992_v4 }
  0x3b   :  { %458 = vmatprep.subr.mxu0 %v2996_v5  ;;  %529 = vmatprep.subr.mxu1 %v2998_v6 }
  0x3c   :  { %210 = vmatprep.mubr.f32.mxu0 %v4123_v0  ;;  %323 = vmatprep.mubr.f32.mxu1 %v4123_v0  ;;  %v3033_v0 = vld [vmem:[#allocation3] sm:$0xff] }
  0x3d   :  { %459 = vmatpush1.msra.mxu0 %v3004_v7  ;;  %530 = vmatpush1.msra.mxu1 %v3006_v8  ;;  %4253 = vst [vmem:[#allocation30_spill] sm:$0xff] %v3033_v0  ;;  %v3037_v8 = vld [vmem:[#allocation3 + $0x10] sm:$0xff] }
  0x3e   :  { %2394 = vmatmul.mubr.msk.f32.gmra.mxu0 %vm79_vm0, %v48_v9  ;;  %2402 = vmatmul.mubr.msk.f32.gmra.mxu1 %vm79_vm0, %v48_v9  ;;  %4254 = vst [vmem:[#allocation31_spill] sm:$0xff] %v3037_v8  ;;  %v4255_v9 = vmov 0.0  }
  0x3f   :  { %460 = vmatprep.subr.mxu0 %v3015_v18  ;;  %531 = vmatprep.subr.mxu1 %v3017_v27 }
  0x40   :  { %461 = vmatpush1.msra.mxu0 %v3021_v36  ;;  %532 = vmatpush1.msra.mxu1 %v3023_v45 }
  0x41   :  { %462 = vmatprep.subr.mxu0 %v3027_v54  ;;  %533 = vmatprep.subr.mxu1 %v3029_v63 }
  0x42   :  { %463 = vmatpush1.msra.mxu0 %v3033_v0  ;;  %496 = vmatprep.mubr.f32.mxu0 %v4255_v9 }
  0x43   :  { %534 = vmatpush1.msra.mxu1 %v3037_v8  ;;  %567 = vmatprep.mubr.f32.mxu1 %v4255_v9 }
  0x44   :  { %497 = vmatmul.mubr.f32.vlgmr.msra.gmra.mxu0 %v4255_v9  ;;  %568 = vmatmul.mubr.f32.vlgmr.msra.gmra.mxu1 %v4255_v9 }
  0x45   :  { %601 = vmatprep.subr.mxu0 %v2800_v10  ;;  %672 = vmatprep.subr.mxu1 %v2802_v11 }
  0x46   :  { %602 = vmatpush1.msra.mxu0 %v2804_v12  ;;  %673 = vmatpush1.msra.mxu1 %v2806_v13 }
  0x47   :  { %603 = vmatprep.subr.mxu0 %v2810_v14  ;;  %674 = vmatprep.subr.mxu1 %v2812_v15 }
  0x48   :  { %604 = vmatpush1.msra.mxu0 %v2818_v16  ;;  %675 = vmatpush1.msra.mxu1 %v2820_v17 }
  0x49   :  { %605 = vmatprep.subr.mxu0 %v2829_v19  ;;  %676 = vmatprep.subr.mxu1 %v2831_v20 }
  0x4a   :  { %606 = vmatpush1.msra.mxu0 %v2835_v21  ;;  %677 = vmatpush1.msra.mxu1 %v2837_v22 }
  0x4b   :  { %607 = vmatprep.subr.mxu0 %v2841_v23  ;;  %678 = vmatprep.subr.mxu1 %v2843_v24 }
  0x4c   :  { %608 = vmatpush1.msra.mxu0 %v2849_v25  ;;  %679 = vmatpush1.msra.mxu1 %v2851_v26 }
  0x4d   :  { %609 = vmatprep.subr.mxu0 %v2860_v28  ;;  %680 = vmatprep.subr.mxu1 %v2862_v29 }
  0x4e   :  { %610 = vmatpush1.msra.mxu0 %v2866_v30  ;;  %681 = vmatpush1.msra.mxu1 %v2868_v31 }
  0x4f   :  { %611 = vmatprep.subr.mxu0 %v2872_v32  ;;  %682 = vmatprep.subr.mxu1 %v2874_v33 }
  0x50   :  { %612 = vmatpush1.msra.mxu0 %v2880_v34  ;;  %683 = vmatpush1.msra.mxu1 %v2882_v35 }
  0x51   :  { %613 = vmatprep.subr.mxu0 %v2891_v37  ;;  %684 = vmatprep.subr.mxu1 %v2893_v38 }
  0x52   :  { %614 = vmatpush1.msra.mxu0 %v2897_v39  ;;  %685 = vmatpush1.msra.mxu1 %v2899_v40 }
  0x53   :  { %615 = vmatprep.subr.mxu0 %v2903_v41  ;;  %686 = vmatprep.subr.mxu1 %v2905_v42 }
  0x54   :  { %616 = vmatpush1.msra.mxu0 %v2911_v43  ;;  %687 = vmatpush1.msra.mxu1 %v2913_v44 }
  0x55   :  { %617 = vmatprep.subr.mxu0 %v2922_v46  ;;  %688 = vmatprep.subr.mxu1 %v2924_v47 }
  0x56   :  { %618 = vmatpush1.msra.mxu0 %v2928_v48  ;;  %689 = vmatpush1.msra.mxu1 %v2930_v49 }
  0x57   :  { %619 = vmatprep.subr.mxu0 %v2934_v50  ;;  %690 = vmatprep.subr.mxu1 %v2936_v51 }
  0x58   :  { %620 = vmatpush1.msra.mxu0 %v2942_v52  ;;  %691 = vmatpush1.msra.mxu1 %v2944_v53 }
  0x59   :  { %621 = vmatprep.subr.mxu0 %v2953_v55  ;;  %692 = vmatprep.subr.mxu1 %v2955_v56 }
  0x5a   :  { %622 = vmatpush1.msra.mxu0 %v2959_v57  ;;  %693 = vmatpush1.msra.mxu1 %v2961_v58 }
  0x5b   :  { %623 = vmatprep.subr.mxu0 %v2965_v59  ;;  %694 = vmatprep.subr.mxu1 %v2967_v60  ;;  %v4256_v59 = vld [vmem:[#allocation23_spill] sm:$0xff] }
  0x5c   :  { %624 = vmatpush1.msra.mxu0 %v2973_v61  ;;  %695 = vmatpush1.msra.mxu1 %v2975_v62 }
  0x5d   :  { %625 = vmatprep.subr.mxu0 %v2984_v1  ;;  %696 = vmatprep.subr.mxu1 %v2986_v2 }
  0x5e   :  { %626 = vmatpush1.msra.mxu0 %v2990_v3  ;;  %697 = vmatpush1.msra.mxu1 %v2992_v4 }
  0x5f   :  { %627 = vmatprep.subr.mxu0 %v2996_v5  ;;  %698 = vmatprep.subr.mxu1 %v2998_v6 }
  0x60   :  { %628 = vmatpush1.msra.mxu0 %v3004_v7  ;;  %699 = vmatpush1.msra.mxu1 %v4256_v59 }
  0x61   :  { %629 = vmatprep.subr.mxu0 %v3015_v18  ;;  %700 = vmatprep.subr.mxu1 %v3017_v27  ;;  %v4148_v27 = vlaneseq }
  0x62   :  { %630 = vmatpush1.msra.mxu0 %v3021_v36  ;;  %701 = vmatpush1.msra.mxu1 %v3023_v45 }
  0x63   :  { %631 = vmatprep.subr.mxu0 %v3027_v54  ;;  %702 = vmatprep.subr.mxu1 %v3029_v63  ;;  %v3116_v36 = vshrl.u32 %v4148_v27, 7 }
  0x64   :  { %632 = vmatpush1.msra.mxu0 %v3033_v0  ;;  %665 = vmatprep.mubr.f32.mxu0 %v4255_v9 }
  0x65   :  { %703 = vmatpush1.msra.mxu1 %v3037_v8  ;;  %736 = vmatprep.mubr.f32.mxu1 %v4255_v9  ;;  %4257 = vst [vmem:[#allocation32_spill] sm:$0xff] %v3116_v36  ;;  %v4165_v0 = vsub.s32 0, %v3116_v36  ;;  %v4168_v63 = vsub.s32 2, %v3116_v36  ;;  %v57_v8 = vld [vmem:[%s4117_s2] sm:$0xf]  ;;  %v4176_v27 = vsub.s32 3, %v3116_v36 }
  0x66   :  { %770 = vmatprep.subr.mxu0 %v2800_v10  ;;  %841 = vmatprep.subr.mxu1 %v2802_v11  ;;  %v4175_v11 = vsub.s32 1, %v3116_v36 }
  0x67   :  { %v62_v18 = vrot.slane %v57_v8, %v4165_v0  ;;  %v3137_v59 = vrot.slane %v57_v8, %v4168_v63  ;;  %v3143_v4 = vrot.slane %v57_v8, %v4176_v27 }
  0x68   :  { %v66_v5 = vrot.slane %v57_v8, %v4175_v11 }
  0xd4   :  { %v3118_v45 = vpop.f32.mrf.mxu0  ;;  %v3120_v54 = vpop.f32.mrf.mxu1 }
  0xd6   :  { %v3127_v9 = vpop.f32.mrf.mxu0  ;;  %v3129_v10 = vpop.f32.mrf.mxu1 }
  0xda   :  { %v176_v7 = vpop.f32.mrf.mxu0  ;;  %v289_v6 = vpop.f32.mrf.mxu1 }
  0xdb   :  { %v3145_v3 = vadd.f32 %v176_v7, %v62_v18  ;;  %v3148_v2 = vadd.f32 %v289_v6, %v3137_v59 }
  0xdc   :  { %v178_v1 = vpop.f32.mrf.mxu0  ;;  %v291_v0 = vpop.f32.mrf.mxu1 }
  0xdd   :  { %4258 = vst [vmem:[#allocation33_spill] sm:$0xff] %v3145_v3  ;;  %4259 = vst [vmem:[#allocation34_spill] sm:$0xff] %v3148_v2  ;;  %v3150_v62 = vadd.f32 %v178_v1, %v66_v5  ;;  %v3153_v63 = vadd.f32 %v291_v0, %v3143_v4 }
  0xdf   :  { %4260 = vst [vmem:[#allocation35_spill] sm:$0xff] %v3150_v62  ;;  %4261 = vst [vmem:[#allocation36_spill] sm:$0xff] %v3153_v63  ;;  %v173_v62 = vadd.f32 %v3127_v9, %v66_v5 }
  0xe0   :  { %v182_v61 = vpop.f32.mrf.mxu0  ;;  %v295_v60 = vpop.f32.mrf.mxu1 }
  0xe1   :  { %v3155_v58 = vadd.f32 %v182_v61, %v62_v18  ;;  %v3158_v11 = vadd.f32 %v295_v60, %v3137_v59 }
  0xe2   :  { %v184_v8 = vpop.f32.mrf.mxu0  ;;  %v297_v7 = vpop.f32.mrf.mxu1 }
  0xe3   :  { %4262 = vst [vmem:[#allocation37_spill] sm:$0xff] %v3155_v58  ;;  %4263 = vst [vmem:[#allocation38_spill] sm:$0xff] %v3158_v11  ;;  %v3160_v27 = vadd.f32 %v184_v8, %v66_v5  ;;  %v3163_v6 = vadd.f32 %v297_v7, %v3143_v4 }
  0xe5   :  { %4264 = vst [vmem:[#allocation39_spill] sm:$0xff] %v3160_v27  ;;  %4265 = vst [vmem:[#allocation40_spill] sm:$0xff] %v3163_v6 }
  0xe6   :  { %v188_v36 = vpop.f32.mrf.mxu0  ;;  %v301_v1 = vpop.f32.mrf.mxu1 }
  0xe7   :  { %v3165_v2 = vadd.f32 %v188_v36, %v62_v18  ;;  %v3168_v0 = vadd.f32 %v301_v1, %v3137_v59 }
  0xe8   :  { %v190_v63 = vpop.f32.mrf.mxu0  ;;  %v303_v61 = vpop.f32.mrf.mxu1 }
  0xe9   :  { %4266 = vst [vmem:[#allocation41_spill] sm:$0xff] %v3165_v2  ;;  %4267 = vst [vmem:[#allocation42_spill] sm:$0xff] %v3168_v0  ;;  %v3170_v58 = vadd.f32 %v190_v63, %v66_v5  ;;  %v3173_v60 = vadd.f32 %v303_v61, %v3143_v4 }
  0xeb   :  { %4268 = vst [vmem:[#allocation43_spill] sm:$0xff] %v3170_v58  ;;  %4269 = vst [vmem:[#allocation44_spill] sm:$0xff] %v3173_v60 }
  0xec   :  { %v194_v11 = vpop.f32.mrf.mxu0  ;;  %v307_v8 = vpop.f32.mrf.mxu1 }
  0xed   :  { %v3175_v27 = vadd.f32 %v194_v11, %v62_v18  ;;  %v3178_v7 = vadd.f32 %v307_v8, %v3137_v59 }
  0xee   :  { %v196_v6 = vpop.f32.mrf.mxu0  ;;  %v309_v36 = vpop.f32.mrf.mxu1 }
  0xef   :  { %4270 = vst [vmem:[#allocation45_spill] sm:$0xff] %v3175_v27  ;;  %4271 = vst [vmem:[#allocation46_spill] sm:$0xff] %v3178_v7  ;;  %v3180_v2 = vadd.f32 %v196_v6, %v66_v5  ;;  %v3183_v1 = vadd.f32 %v309_v36, %v3143_v4 }
  0xf1   :  { %4272 = vst [vmem:[#allocation47_spill] sm:$0xff] %v3180_v2  ;;  %4273 = vst [vmem:[#allocation48_spill] sm:$0xff] %v3183_v1 }
  0xf2   :  { %v200_v0 = vpop.f32.mrf.mxu0  ;;  %v313_v63 = vpop.f32.mrf.mxu1 }
  0xf3   :  { %v3185_v58 = vadd.f32 %v200_v0, %v62_v18  ;;  %v3188_v61 = vadd.f32 %v313_v63, %v3137_v59 }
  0xf4   :  { %v202_v60 = vpop.f32.mrf.mxu0  ;;  %v315_v11 = vpop.f32.mrf.mxu1 }
  0xf5   :  { %4274 = vst [vmem:[#allocation49_spill] sm:$0xff] %v3185_v58  ;;  %4275 = vst [vmem:[#allocation50_spill] sm:$0xff] %v3188_v61  ;;  %v3190_v27 = vadd.f32 %v202_v60, %v66_v5  ;;  %v3193_v8 = vadd.f32 %v315_v11, %v3143_v4 }
  0xf7   :  { %4276 = vst [vmem:[#allocation51_spill] sm:$0xff] %v3190_v27  ;;  %4277 = vst [vmem:[#allocation52_spill] sm:$0xff] %v3193_v8 }
  0xf8   :  { %v206_v7 = vpop.f32.mrf.mxu0  ;;  %v319_v6 = vpop.f32.mrf.mxu1 }
  0xf9   :  { %v3195_v2 = vadd.f32 %v206_v7, %v62_v18  ;;  %v3198_v36 = vadd.f32 %v319_v6, %v3137_v59 }
  0xfa   :  { %v208_v1 = vpop.f32.mrf.mxu0  ;;  %v321_v0 = vpop.f32.mrf.mxu1 }
  0xfb   :  { %4278 = vst [vmem:[#allocation53_spill] sm:$0xff] %v3195_v2  ;;  %4279 = vst [vmem:[#allocation54_spill] sm:$0xff] %v3198_v36  ;;  %v3200_v58 = vadd.f32 %v208_v1, %v66_v5  ;;  %v3203_v63 = vadd.f32 %v321_v0, %v3143_v4  ;;  %v171_v1 = vadd.f32 %v3118_v45, %v62_v18 }
  0xfd   :  { %4280 = vst [vmem:[#allocation55_spill] sm:$0xff] %v3200_v58  ;;  %4281 = vst [vmem:[#allocation56_spill] sm:$0xff] %v3203_v63 }
  0xfe   :  { %v212_v61 = vpop.f32.mrf.mxu0  ;;  %v325_v60 = vpop.f32.mrf.mxu1 }
  0xff   :  { %v3205_v27 = vadd.f32 %v212_v61, %v62_v18  ;;  %v3208_v11 = vadd.f32 %v325_v60, %v3137_v59  ;;  %v286_v18 = vadd.f32 %v3129_v10, %v3143_v4 }
 0x100   :  { %v214_v8 = vpop.f32.mrf.mxu0  ;;  %v327_v7 = vpop.f32.mrf.mxu1 }
 0x101   :  { %4282 = vst [vmem:[#allocation57_spill] sm:$0xff] %v3205_v27  ;;  %4283 = vst [vmem:[#allocation58_spill] sm:$0xff] %v3208_v11  ;;  %v3210_v2 = vadd.f32 %v214_v8, %v66_v5  ;;  %v3213_v6 = vadd.f32 %v327_v7, %v3143_v4  ;;  %v284_v7 = vadd.f32 %v3120_v54, %v3137_v59  ;;  %v4290_v4 = vld [vmem:[#allocation13_spill] sm:$0xff]  ;;  %v4291_v54 = vld [vmem:[#allocation14_spill] sm:$0xff] }
 0x103   :  { %4284 = vst [vmem:[#allocation59_spill] sm:$0xff] %v3210_v2  ;;  %4285 = vst [vmem:[#allocation60_spill] sm:$0xff] %v3213_v6  ;;  %v4308_v6 = vmov 0.0  }
 0x104   :  { %v498_v36 = vpop.f32.mrf.mxu0  ;;  %v569_v8 = vpop.f32.mrf.mxu1 }
 0x105   :  { %v499_v58 = vadd.f32 %v498_v36, %v171_v1  ;;  %v570_v5 = vadd.f32 %v569_v8, %v284_v7  ;;  %v4292_v8 = vld [vmem:[#allocation15_spill] sm:$0xff]  ;;  %v4293_v7 = vld [vmem:[#allocation16_spill] sm:$0xff] }
 0x106   :  { %v500_v63 = vpop.f32.mrf.mxu0  ;;  %v571_v3 = vpop.f32.mrf.mxu1 }
 0x107   :  { %v2403_v0 = vmul.f32 -1.442695, %v499_v58  ;;  %v501_v61 = vadd.f32 %v500_v63, %v173_v62  ;;  %v572_v45 = vadd.f32 %v571_v3, %v286_v18  ;;  %v4286_v63 = vlaneseq  ;;  %v4289_v3 = vld [vmem:[#allocation12_spill] sm:$0xff]  ;;  %v4294_v18 = vld [vmem:[#allocation17_spill] sm:$0xff] }
 0x109   :  { %2486 = vpow2.f32 %v2403_v0  ;;  %v2404_v27 = vmul.f32 -1.442695, %v501_v61 }
 0x10b   :  { %2488 = vpow2.f32 %v2404_v27 }
 0x116   :  { %v2487_v60 = vpop.eup %2486 }
 0x117   :  { %v577_v11 = vadd.f32 1.0, %v2487_v60 }
 0x118   :  { %v2489_v2 = vpop.eup %2488 }
 0x119   :  { %2490 = vrcp.f32 %v577_v11  ;;  %v583_v58 = vadd.f32 1.0, %v2489_v2  ;;  %v3222_v11 = vand.u32 127, %v4286_v63  ;;  %v4288_v2 = vld [vmem:[#allocation11_spill] sm:$0xff]  ;;  %v4302_v63 = vld [vmem:[#allocation25_spill] sm:$0xff] }
 0x11b   :  { %2492 = vrcp.f32 %v583_v58  ;;  %4287 = vst [vmem:[#allocation61_spill] sm:$0xff] %v3222_v11  ;;  %vm594_vm1 = vcmp.lt.s32.totalorder %v3222_v11, 32  ;;  %v4295_v58 = vld [vmem:[#allocation18_spill] sm:$0xff]  ;;  %vm763_vm2 = vcmp.lt.s32.totalorder %v3222_v11, 64  ;;  %vm932_vm3 = vcmp.lt.s32.totalorder %v3222_v11, 96  ;;  %v3637_v11 = vld [vmem:[#allocation3 + $0x18] sm:$0xff] }
 0x126   :  { %v2491_v36 = vpop.eup %2490 }
 0x127   :  { %v586_v62 = vmul.f32 %v2491_v36, %v572_v45  ;;  %v4296_v45 = vld [vmem:[#allocation19_spill] sm:$0xff]  ;;  %v4297_v36 = vld [vmem:[#allocation20_spill] sm:$0xff] }
 0x128   :  { %v2493_v27 = vpop.eup %2492 }
 0x129   :  { %v587_v9 = vadd.f32 %v586_v62, %v570_v5  ;;  %v589_v1 = vsub.f32 1.0, %v2493_v27  ;;  %v591_v60 = vmul.f32 0.0, %v2493_v27  ;;  %v4298_v5 = vld [vmem:[#allocation21_spill] sm:$0xff]  ;;  %v4299_v62 = vld [vmem:[#allocation22_spill] sm:$0xff]  ;;  %v4301_v27 = vld [vmem:[#allocation24_spill] sm:$0xff] }
 0x12b   :  { %2494 = vtanh.f32 %v587_v9  ;;  %v4300_v9 = vld [vmem:[#allocation23_spill] sm:$0xff] }
 0x138   :  { %v2495_v0 = vpop.eup %2494 }
 0x139   :  { %v590_v61 = vmul.f32 %v2495_v0, %v589_v1  ;;  %v4303_v1 = vld [vmem:[#allocation26_spill] sm:$0xff]  ;;  %v4304_v0 = vld [vmem:[#allocation27_spill] sm:$0xff] }
 0x13b   :  { %v592_v59 = vadd.f32 %v591_v60, %v590_v61  ;;  %v4305_v61 = vld [vmem:[#allocation28_spill] sm:$0xff]  ;;  %v4306_v60 = vld [vmem:[#allocation29_spill] sm:$0xff] }
 0x13d   :  { %2405 = vmatmul.mubr.msk.f32.vlgmr.msra.gmra.mxu0 %vm594_vm1, %v592_v59  ;;  %2406 = vmatmul.mubr.msk.f32.vlgmr.msra.gmra.mxu1 %vm594_vm1, %v592_v59  ;;  %v3225_v10 = vsel %vm594_vm1, %v592_v59, 0.0  ;;  %v4307_v59 = vld [vmem:[#allocation30_spill] sm:$0xff] }
 0x13e   :  { %771 = vmatpush1.msra.mxu0 %v2804_v12  ;;  %842 = vmatpush1.msra.mxu1 %v2806_v13 }
 0x13f   :  { %772 = vmatprep.subr.mxu0 %v2810_v14  ;;  %843 = vmatprep.subr.mxu1 %v2812_v15 }
 0x140   :  { %773 = vmatpush1.msra.mxu0 %v2818_v16  ;;  %844 = vmatpush1.msra.mxu1 %v2820_v17 }
 0x141   :  { %774 = vmatprep.subr.mxu0 %v2829_v19  ;;  %845 = vmatprep.subr.mxu1 %v2831_v20 }
 0x142   :  { %775 = vmatpush1.msra.mxu0 %v2835_v21  ;;  %846 = vmatpush1.msra.mxu1 %v2837_v22 }
 0x143   :  { %776 = vmatprep.subr.mxu0 %v2841_v23  ;;  %847 = vmatprep.subr.mxu1 %v2843_v24 }
 0x144   :  { %777 = vmatpush1.msra.mxu0 %v2849_v25  ;;  %848 = vmatpush1.msra.mxu1 %v2851_v26 }
 0x145   :  { %778 = vmatprep.subr.mxu0 %v2860_v28  ;;  %849 = vmatprep.subr.mxu1 %v2862_v29 }
 0x146   :  { %779 = vmatpush1.msra.mxu0 %v2866_v30  ;;  %850 = vmatpush1.msra.mxu1 %v2868_v31 }
 0x147   :  { %780 = vmatprep.subr.mxu0 %v2872_v32  ;;  %851 = vmatprep.subr.mxu1 %v2874_v33 }
 0x148   :  { %781 = vmatpush1.msra.mxu0 %v2880_v34  ;;  %852 = vmatpush1.msra.mxu1 %v2882_v35 }
 0x149   :  { %782 = vmatprep.subr.mxu0 %v2891_v37  ;;  %853 = vmatprep.subr.mxu1 %v2893_v38 }
 0x14a   :  { %783 = vmatpush1.msra.mxu0 %v2897_v39  ;;  %854 = vmatpush1.msra.mxu1 %v2899_v40 }
 0x14b   :  { %784 = vmatprep.subr.mxu0 %v2903_v41  ;;  %855 = vmatprep.subr.mxu1 %v2905_v42 }
 0x14c   :  { %785 = vmatpush1.msra.mxu0 %v2911_v43  ;;  %856 = vmatpush1.msra.mxu1 %v2913_v44 }
 0x14d   :  { %786 = vmatprep.subr.mxu0 %v2922_v46  ;;  %857 = vmatprep.subr.mxu1 %v2924_v47 }
 0x14e   :  { %787 = vmatpush1.msra.mxu0 %v2928_v48  ;;  %858 = vmatpush1.msra.mxu1 %v2930_v49 }
 0x14f   :  { %788 = vmatprep.subr.mxu0 %v2934_v50  ;;  %859 = vmatprep.subr.mxu1 %v2936_v51 }
 0x150   :  { %789 = vmatpush1.msra.mxu0 %v2942_v52  ;;  %860 = vmatpush1.msra.mxu1 %v2944_v53 }
 0x151   :  { %790 = vmatprep.subr.mxu0 %v2953_v55  ;;  %861 = vmatprep.subr.mxu1 %v2955_v56 }
 0x152   :  { %791 = vmatpush1.msra.mxu0 %v2959_v57  ;;  %862 = vmatpush1.msra.mxu1 %v4288_v2 }
 0x153   :  { %792 = vmatprep.subr.mxu0 %v4289_v3  ;;  %863 = vmatprep.subr.mxu1 %v4290_v4 }
 0x154   :  { %793 = vmatpush1.msra.mxu0 %v4291_v54  ;;  %864 = vmatpush1.msra.mxu1 %v4292_v8  ;;  %v4315_v54 = vld [vmem:[#allocation34_spill] sm:$0xff] }
 0x155   :  { %794 = vmatprep.subr.mxu0 %v4293_v7  ;;  %865 = vmatprep.subr.mxu1 %v4294_v18  ;;  %v4314_v7 = vld [vmem:[#allocation36_spill] sm:$0xff] }
 0x156   :  { %795 = vmatpush1.msra.mxu0 %v4295_v58  ;;  %866 = vmatpush1.msra.mxu1 %v4296_v45 }
 0x157   :  { %796 = vmatprep.subr.mxu0 %v4297_v36  ;;  %867 = vmatprep.subr.mxu1 %v4298_v5  ;;  %v4309_v5 = vld [vmem:[#allocation31_spill] sm:$0xff] }
 0x158   :  { %797 = vmatpush1.msra.mxu0 %v4299_v62  ;;  %868 = vmatpush1.msra.mxu1 %v4300_v9  ;;  %v4310_v9 = vld [vmem:[#allocation9_spill] sm:$0xff] }
 0x159   :  { %798 = vmatprep.subr.mxu0 %v4301_v27  ;;  %869 = vmatprep.subr.mxu1 %v4302_v63  ;;  %v4311_v27 = vld [vmem:[#allocation10_spill] sm:$0xff] }
 0x15a   :  { %799 = vmatpush1.msra.mxu0 %v4303_v1  ;;  %870 = vmatpush1.msra.mxu1 %v4304_v0  ;;  %v4312_v1 = vld [vmem:[#allocation33_spill] sm:$0xff] }
 0x15b   :  { %800 = vmatprep.subr.mxu0 %v4305_v61  ;;  %871 = vmatprep.subr.mxu1 %v4306_v60  ;;  %v4313_v61 = vld [vmem:[#allocation35_spill] sm:$0xff] }
 0x15c   :  { %801 = vmatpush1.msra.mxu0 %v4307_v59  ;;  %834 = vmatprep.mubr.f32.mxu0 %v4308_v6 }
 0x15d   :  { %872 = vmatpush1.msra.mxu1 %v4309_v5  ;;  %905 = vmatprep.mubr.f32.mxu1 %v4308_v6 }
 0x15e   :  { %939 = vmatprep.subr.mxu0 %v4310_v9  ;;  %1010 = vmatprep.subr.mxu1 %v4311_v27 }
 0x1fd   :  { %v667_v63 = vpop.f32.mrf.mxu0  ;;  %v738_v6 = vpop.f32.mrf.mxu1 }
 0x1fe   :  { %v668_v62 = vadd.f32 %v667_v63, %v4312_v1  ;;  %v739_v63 = vadd.f32 %v738_v6, %v4315_v54  ;;  %v4334_v6 = vmov 0.0   ;;  %v4337_v54 = vld [vmem:[#allocation10_spill] sm:$0xff] }
 0x1ff   :  { %v669_v0 = vpop.f32.mrf.mxu0  ;;  %v740_v9 = vpop.f32.mrf.mxu1 }
 0x200   :  { %v2407_v36 = vmul.f32 -1.442695, %v668_v62  ;;  %v670_v45 = vadd.f32 %v669_v0, %v4313_v61  ;;  %v741_v27 = vadd.f32 %v740_v9, %v4314_v7  ;;  %v4338_v7 = vld [vmem:[#allocation37_spill] sm:$0xff] }
 0x202   :  { %2496 = vpow2.f32 %v2407_v36  ;;  %v2408_v60 = vmul.f32 -1.442695, %v670_v45 }
 0x204   :  { %2498 = vpow2.f32 %v2408_v60  ;;  %v4339_v60 = vld [vmem:[#allocation39_spill] sm:$0xff] }
 0x20f   :  { %v2497_v59 = vpop.eup %2496 }
 0x210   :  { %v746_v58 = vadd.f32 1.0, %v2497_v59 }
 0x211   :  { %v2499_v18 = vpop.eup %2498 }
 0x212   :  { %2500 = vrcp.f32 %v746_v58  ;;  %v752_v5 = vadd.f32 1.0, %v2499_v18 }
 0x214   :  { %2502 = vrcp.f32 %v752_v5 }
 0x21f   :  { %v2501_v8 = vpop.eup %2500 }
 0x220   :  { %v755_v1 = vmul.f32 %v2501_v8, %v741_v27 }
 0x221   :  { %v2503_v62 = vpop.eup %2502 }
 0x222   :  { %v756_v4 = vadd.f32 %v755_v1, %v739_v63  ;;  %v760_v36 = vmul.f32 %v2503_v62, %v3225_v10  ;;  %v758_v45 = vsub.f32 1.0, %v2503_v62 }
 0x224   :  { %2504 = vtanh.f32 %v756_v4  ;;  %v4336_v4 = vld [vmem:[#allocation9_spill] sm:$0xff] }
 0x231   :  { %v2505_v0 = vpop.eup %2504 }
 0x232   :  { %v759_v61 = vmul.f32 %v2505_v0, %v758_v45 }
 0x234   :  { %v761_v18 = vadd.f32 %v760_v36, %v759_v61 }
 0x236   :  { %v3300_v58 = vsel %vm763_vm2, %v761_v18, %v3225_v10  ;;  %v4335_v10 = vld [vmem:[#allocation31_spill] sm:$0xff]  ;;  %v4340_v18 = vld [vmem:[#allocation40_spill] sm:$0xff] }
 0x237   :  { %835 = vmatmul.mubr.f32.vlgmr.msra.gmra.mxu0 %v3300_v58  ;;  %906 = vmatmul.mubr.f32.vlgmr.msra.gmra.mxu1 %v3300_v58 }
 0x238   :  { %940 = vmatpush1.msra.mxu0 %v2804_v12  ;;  %1011 = vmatpush1.msra.mxu1 %v2806_v13  ;;  %v4316_v12 = vld [vmem:[#allocation13_spill] sm:$0xff]  ;;  %v4317_v13 = vld [vmem:[#allocation14_spill] sm:$0xff] }
 0x239   :  { %941 = vmatprep.subr.mxu0 %v2810_v14  ;;  %1012 = vmatprep.subr.mxu1 %v2812_v15  ;;  %v4318_v14 = vld [vmem:[#allocation15_spill] sm:$0xff]  ;;  %v4319_v15 = vld [vmem:[#allocation16_spill] sm:$0xff] }
 0x23a   :  { %942 = vmatpush1.msra.mxu0 %v2818_v16  ;;  %1013 = vmatpush1.msra.mxu1 %v2820_v17  ;;  %v4320_v16 = vld [vmem:[#allocation17_spill] sm:$0xff]  ;;  %v4321_v17 = vld [vmem:[#allocation18_spill] sm:$0xff] }
 0x23b   :  { %943 = vmatprep.subr.mxu0 %v2829_v19  ;;  %1014 = vmatprep.subr.mxu1 %v2831_v20  ;;  %v4322_v19 = vld [vmem:[#allocation19_spill] sm:$0xff]  ;;  %v4323_v20 = vld [vmem:[#allocation20_spill] sm:$0xff] }
 0x23c   :  { %944 = vmatpush1.msra.mxu0 %v2835_v21  ;;  %1015 = vmatpush1.msra.mxu1 %v2837_v22  ;;  %v4324_v21 = vld [vmem:[#allocation21_spill] sm:$0xff]  ;;  %v4325_v22 = vld [vmem:[#allocation22_spill] sm:$0xff] }
 0x23d   :  { %945 = vmatprep.subr.mxu0 %v2841_v23  ;;  %1016 = vmatprep.subr.mxu1 %v2843_v24  ;;  %v4326_v23 = vld [vmem:[#allocation23_spill] sm:$0xff]  ;;  %v4327_v24 = vld [vmem:[#allocation24_spill] sm:$0xff] }
 0x23e   :  { %946 = vmatpush1.msra.mxu0 %v2849_v25  ;;  %1017 = vmatpush1.msra.mxu1 %v2851_v26  ;;  %v4328_v25 = vld [vmem:[#allocation25_spill] sm:$0xff]  ;;  %v4329_v26 = vld [vmem:[#allocation26_spill] sm:$0xff]  ;;  %4365 = vst [vmem:[#allocation24_spill] sm:$0xff] %v3637_v11 }
 0x23f   :  { %947 = vmatprep.subr.mxu0 %v2860_v28  ;;  %1018 = vmatprep.subr.mxu1 %v2862_v29  ;;  %v4330_v28 = vld [vmem:[#allocation27_spill] sm:$0xff]  ;;  %v4331_v29 = vld [vmem:[#allocation28_spill] sm:$0xff] }
 0x240   :  { %948 = vmatpush1.msra.mxu0 %v2866_v30  ;;  %1019 = vmatpush1.msra.mxu1 %v2868_v31  ;;  %v4332_v30 = vld [vmem:[#allocation29_spill] sm:$0xff]  ;;  %v4333_v31 = vld [vmem:[#allocation30_spill] sm:$0xff] }
 0x241   :  { %949 = vmatprep.subr.mxu0 %v2872_v32  ;;  %1020 = vmatprep.subr.mxu1 %v2874_v33 }
 0x242   :  { %950 = vmatpush1.msra.mxu0 %v2880_v34  ;;  %1021 = vmatpush1.msra.mxu1 %v2882_v35 }
 0x243   :  { %951 = vmatprep.subr.mxu0 %v2891_v37  ;;  %1022 = vmatprep.subr.mxu1 %v2893_v38 }
 0x244   :  { %952 = vmatpush1.msra.mxu0 %v2897_v39  ;;  %1023 = vmatpush1.msra.mxu1 %v2899_v40 }
 0x245   :  { %953 = vmatprep.subr.mxu0 %v2903_v41  ;;  %1024 = vmatprep.subr.mxu1 %v2905_v42 }
 0x246   :  { %954 = vmatpush1.msra.mxu0 %v2911_v43  ;;  %1025 = vmatpush1.msra.mxu1 %v2913_v44 }
 0x247   :  { %955 = vmatprep.subr.mxu0 %v2922_v46  ;;  %1026 = vmatprep.subr.mxu1 %v2924_v47 }
 0x248   :  { %956 = vmatpush1.msra.mxu0 %v2928_v48  ;;  %1027 = vmatpush1.msra.mxu1 %v2930_v49 }
 0x249   :  { %957 = vmatprep.subr.mxu0 %v2934_v50  ;;  %1028 = vmatprep.subr.mxu1 %v2936_v51 }
 0x24a   :  { %958 = vmatpush1.msra.mxu0 %v2942_v52  ;;  %1029 = vmatpush1.msra.mxu1 %v2944_v53 }
 0x24b   :  { %959 = vmatprep.subr.mxu0 %v2953_v55  ;;  %1030 = vmatprep.subr.mxu1 %v2955_v56 }
 0x24c   :  { %960 = vmatpush1.msra.mxu0 %v2959_v57  ;;  %1031 = vmatpush1.msra.mxu1 %v4288_v2 }
 0x24d   :  { %961 = vmatprep.subr.mxu0 %v4289_v3  ;;  %1032 = vmatprep.subr.mxu1 %v4316_v12 }
 0x24e   :  { %962 = vmatpush1.msra.mxu0 %v4317_v13  ;;  %1033 = vmatpush1.msra.mxu1 %v4318_v14 }
 0x24f   :  { %963 = vmatprep.subr.mxu0 %v4319_v15  ;;  %1034 = vmatprep.subr.mxu1 %v4320_v16 }
 0x250   :  { %964 = vmatpush1.msra.mxu0 %v4321_v17  ;;  %1035 = vmatpush1.msra.mxu1 %v4322_v19 }
 0x251   :  { %965 = vmatprep.subr.mxu0 %v4323_v20  ;;  %1036 = vmatprep.subr.mxu1 %v4324_v21 }
 0x252   :  { %966 = vmatpush1.msra.mxu0 %v4325_v22  ;;  %1037 = vmatpush1.msra.mxu1 %v4326_v23 }
 0x253   :  { %967 = vmatprep.subr.mxu0 %v4327_v24  ;;  %1038 = vmatprep.subr.mxu1 %v4328_v25 }
 0x254   :  { %968 = vmatpush1.msra.mxu0 %v4329_v26  ;;  %1039 = vmatpush1.msra.mxu1 %v4330_v28 }
 0x255   :  { %969 = vmatprep.subr.mxu0 %v4331_v29  ;;  %1040 = vmatprep.subr.mxu1 %v4332_v30 }
 0x256   :  { %970 = vmatpush1.msra.mxu0 %v4333_v31  ;;  %1003 = vmatprep.mubr.f32.mxu0 %v4334_v6 }
 0x257   :  { %1041 = vmatpush1.msra.mxu1 %v4335_v10  ;;  %1074 = vmatprep.mubr.f32.mxu1 %v4334_v6  ;;  %v4341_v10 = vld [vmem:[#allocation38_spill] sm:$0xff] }
 0x258   :  { %1104 = vmatprep.subr.mxu0 %v4336_v4  ;;  %1175 = vmatprep.subr.mxu1 %v4337_v54 }
 0x2f7   :  { %v836_v8 = vpop.f32.mrf.mxu0  ;;  %v907_v36 = vpop.f32.mrf.mxu1 }
 0x2f8   :  { %v837_v5 = vadd.f32 %v836_v8, %v4338_v7  ;;  %v908_v6 = vadd.f32 %v907_v36, %v4341_v10  ;;  %v3381_v10 = vld [vmem:[#allocation3 + $0x1e0] sm:$0xff]  ;;  %v3390_v36 = vld [vmem:[#allocation3 + $0x1d8] sm:$0xff] }
 0x2f9   :  { %v838_v27 = vpop.f32.mrf.mxu0  ;;  %v909_v0 = vpop.f32.mrf.mxu1 }
 0x2fa   :  { %v2409_v9 = vmul.f32 -1.442695, %v837_v5  ;;  %v839_v59 = vadd.f32 %v838_v27, %v4339_v60  ;;  %v910_v4 = vadd.f32 %v909_v0, %v4340_v18  ;;  %v3399_v0 = vld [vmem:[#allocation3 + $0x1a8] sm:$0xff]  ;;  %v3405_v18 = vld [vmem:[#allocation3 + $0x1a0] sm:$0xff] }
 0x2fc   :  { %2506 = vpow2.f32 %v2409_v9  ;;  %v2410_v63 = vmul.f32 -1.442695, %v839_v59 }
 0x2fe   :  { %2508 = vpow2.f32 %v2410_v63 }
 0x309   :  { %v2507_v1 = vpop.eup %2506 }
 0x30a   :  { %v915_v62 = vadd.f32 1.0, %v2507_v1 }
 0x30b   :  { %v2509_v45 = vpop.eup %2508 }
 0x30c   :  { %2510 = vrcp.f32 %v915_v62  ;;  %v921_v61 = vadd.f32 1.0, %v2509_v45  ;;  %v3387_v62 = vld [vmem:[#allocation3 + $0x1c8] sm:$0xff]  ;;  %v3396_v45 = vld [vmem:[#allocation3 + $0x1d0] sm:$0xff] }
 0x30e   :  { %2512 = vrcp.f32 %v921_v61  ;;  %v3402_v61 = vld [vmem:[#allocation3 + $0x1b8] sm:$0xff] }
 0x319   :  { %v2511_v54 = vpop.eup %2510 }
 0x31a   :  { %v924_v8 = vmul.f32 %v2511_v54, %v910_v4  ;;  %v3408_v4 = vld [vmem:[#allocation3 + $0x1b0] sm:$0xff]  ;;  %v3411_v54 = vld [vmem:[#allocation3 + $0x188] sm:$0xff] }
 0x31b   :  { %v2513_v5 = vpop.eup %2512 }
 0x31c   :  { %v925_v7 = vadd.f32 %v924_v8, %v908_v6  ;;  %v927_v9 = vsub.f32 1.0, %v2513_v5  ;;  %v929_v59 = vmul.f32 %v2513_v5, %v3300_v58  ;;  %v3384_v6 = vld [vmem:[#allocation3 + $0x1f0] sm:$0xff]  ;;  %v3414_v8 = vld [vmem:[#allocation3 + $0x198] sm:$0xff] }
 0x31d   :  { %v3420_v5 = vld [vmem:[#allocation3 + $0x190] sm:$0xff] }
 0x31e   :  { %2514 = vtanh.f32 %v925_v7  ;;  %v3417_v7 = vld [vmem:[#allocation3 + $0x180] sm:$0xff] }
 0x32b   :  { %v2515_v27 = vpop.eup %2514 }
 0x32c   :  { %v928_v60 = vmul.f32 %v2515_v27, %v927_v9  ;;  %v3423_v9 = vld [vmem:[#allocation3 + $0x168] sm:$0xff]  ;;  %v3426_v27 = vld [vmem:[#allocation3 + $0x178] sm:$0xff] }
 0x32e   :  { %v930_v63 = vadd.f32 %v929_v59, %v928_v60  ;;  %v3429_v60 = vld [vmem:[#allocation3 + $0x160] sm:$0xff]  ;;  %v3432_v59 = vld [vmem:[#allocation3 + $0x170] sm:$0xff] }
 0x330   :  { %v3377_v1 = vsel %vm932_vm3, %v930_v63, %v3300_v58  ;;  %v3393_v58 = vld [vmem:[#allocation3 + $0x1c0] sm:$0xff]  ;;  %v3550_v63 = vld [vmem:[#allocation3 + $0xe8] sm:$0xff] }
 0x331   :  { %1004 = vmatmul.mubr.f32.vlgmr.msra.gmra.mxu0 %v3377_v1  ;;  %1075 = vmatmul.mubr.f32.vlgmr.msra.gmra.mxu1 %v3377_v1 }
 0x332   :  { %1105 = vmatpush1.msra.mxu0 %v3381_v10  ;;  %1176 = vmatpush1.msra.mxu1 %v3384_v6 }
 0x333   :  { %1106 = vmatprep.subr.mxu0 %v3387_v62  ;;  %1177 = vmatprep.subr.mxu1 %v3390_v36 }
 0x334   :  { %1107 = vmatpush1.msra.mxu0 %v3393_v58  ;;  %1178 = vmatpush1.msra.mxu1 %v3396_v45 }
 0x335   :  { %1108 = vmatprep.subr.mxu0 %v3399_v0  ;;  %1179 = vmatprep.subr.mxu1 %v3402_v61 }
 0x336   :  { %1109 = vmatpush1.msra.mxu0 %v3405_v18  ;;  %1180 = vmatpush1.msra.mxu1 %v3408_v4 }
 0x337   :  { %1110 = vmatprep.subr.mxu0 %v3411_v54  ;;  %1181 = vmatprep.subr.mxu1 %v3414_v8 }
 0x338   :  { %1111 = vmatpush1.msra.mxu0 %v3417_v7  ;;  %1182 = vmatpush1.msra.mxu1 %v3420_v5 }
 0x339   :  { %1112 = vmatprep.subr.mxu0 %v3423_v9  ;;  %1183 = vmatprep.subr.mxu1 %v3426_v27 }
 0x33a   :  { %1113 = vmatpush1.msra.mxu0 %v3429_v60  ;;  %1184 = vmatpush1.msra.mxu1 %v3432_v59 }
 0x33b   :  { %1114 = vmatprep.subr.mxu0 %v2872_v32  ;;  %1185 = vmatprep.subr.mxu1 %v2874_v33  ;;  %v4342_v32 = vmov 0.0   ;;  %v4343_v33 = vld [vmem:[#allocation31_spill] sm:$0xff] }
 0x33c   :  { %1115 = vmatpush1.msra.mxu0 %v2880_v34  ;;  %1186 = vmatpush1.msra.mxu1 %v2882_v35  ;;  %v3481_v34 = vld [vmem:[#allocation3 + $0x1e8] sm:$0xff]  ;;  %v3484_v35 = vld [vmem:[#allocation3 + $0x1f8] sm:$0xff] }
 0x33d   :  { %1116 = vmatprep.subr.mxu0 %v2891_v37  ;;  %1187 = vmatprep.subr.mxu1 %v2893_v38  ;;  %4344 = vst [vmem:[#allocation11_spill] sm:$0xff] %v3481_v34  ;;  %4345 = vst [vmem:[#allocation12_spill] sm:$0xff] %v3484_v35  ;;  %v4346_v38 = vld [vmem:[#allocation41_spill] sm:$0xff] }
 0x33e   :  { %1117 = vmatpush1.msra.mxu0 %v2897_v39  ;;  %1188 = vmatpush1.msra.mxu1 %v2899_v40 }
 0x33f   :  { %1118 = vmatprep.subr.mxu0 %v2903_v41  ;;  %1189 = vmatprep.subr.mxu1 %v2905_v42  ;;  %v4347_v42 = vld [vmem:[#allocation43_spill] sm:$0xff] }
 0x340   :  { %1119 = vmatpush1.msra.mxu0 %v2911_v43  ;;  %1190 = vmatpush1.msra.mxu1 %v2913_v44 }
 0x341   :  { %1120 = vmatprep.subr.mxu0 %v2922_v46  ;;  %1191 = vmatprep.subr.mxu1 %v2924_v47 }
 0x342   :  { %1121 = vmatpush1.msra.mxu0 %v2928_v48  ;;  %1192 = vmatpush1.msra.mxu1 %v2930_v49 }
 0x343   :  { %1122 = vmatprep.subr.mxu0 %v2934_v50  ;;  %1193 = vmatprep.subr.mxu1 %v2936_v51 }
 0x344   :  { %1123 = vmatpush1.msra.mxu0 %v2942_v52  ;;  %1194 = vmatpush1.msra.mxu1 %v2944_v53  ;;  %v4348_v52 = vld [vmem:[#allocation44_spill] sm:$0xff] }
 0x345   :  { %1124 = vmatprep.subr.mxu0 %v2953_v55  ;;  %1195 = vmatprep.subr.mxu1 %v2955_v56  ;;  %v4349_v56 = vld [vmem:[#allocation42_spill] sm:$0xff] }
 0x346   :  { %1125 = vmatpush1.msra.mxu0 %v2959_v57  ;;  %1196 = vmatpush1.msra.mxu1 %v4288_v2 }
 0x347   :  { %1126 = vmatprep.subr.mxu0 %v4289_v3  ;;  %1197 = vmatprep.subr.mxu1 %v4316_v12 }
 0x348   :  { %1127 = vmatpush1.msra.mxu0 %v4317_v13  ;;  %1198 = vmatpush1.msra.mxu1 %v4318_v14 }
 0x349   :  { %1128 = vmatprep.subr.mxu0 %v4319_v15  ;;  %1199 = vmatprep.subr.mxu1 %v4320_v16 }
 0x34a   :  { %1129 = vmatpush1.msra.mxu0 %v4321_v17  ;;  %1200 = vmatpush1.msra.mxu1 %v4322_v19  ;;  %v3514_v19 = vld [vmem:[#allocation3 + $0x148] sm:$0xff] }
 0x34b   :  { %1130 = vmatprep.subr.mxu0 %v4323_v20  ;;  %1201 = vmatprep.subr.mxu1 %v4324_v21  ;;  %v3517_v20 = vld [vmem:[#allocation3 + $0x158] sm:$0xff]  ;;  %v3520_v21 = vld [vmem:[#allocation3 + $0x140] sm:$0xff] }
 0x34c   :  { %1131 = vmatpush1.msra.mxu0 %v4325_v22  ;;  %1202 = vmatpush1.msra.mxu1 %v4326_v23  ;;  %v3523_v22 = vld [vmem:[#allocation3 + $0x150] sm:$0xff]  ;;  %v3526_v23 = vld [vmem:[#allocation3 + $0x128] sm:$0xff] }
 0x34d   :  { %1132 = vmatprep.subr.mxu0 %v4327_v24  ;;  %1203 = vmatprep.subr.mxu1 %v4328_v25  ;;  %v3529_v24 = vld [vmem:[#allocation3 + $0x138] sm:$0xff]  ;;  %v3532_v25 = vld [vmem:[#allocation3 + $0x120] sm:$0xff] }
 0x34e   :  { %1133 = vmatpush1.msra.mxu0 %v4329_v26  ;;  %1204 = vmatpush1.msra.mxu1 %v4330_v28  ;;  %v3535_v26 = vld [vmem:[#allocation3 + $0x130] sm:$0xff]  ;;  %v3538_v28 = vld [vmem:[#allocation3 + $0x108] sm:$0xff] }
 0x34f   :  { %1134 = vmatprep.subr.mxu0 %v4331_v29  ;;  %1205 = vmatprep.subr.mxu1 %v4332_v30  ;;  %v3541_v29 = vld [vmem:[#allocation3 + $0x118] sm:$0xff]  ;;  %v3544_v30 = vld [vmem:[#allocation3 + $0x100] sm:$0xff] }
 0x350   :  { %1135 = vmatpush1.msra.mxu0 %v4333_v31  ;;  %1168 = vmatprep.mubr.f32.mxu0 %v4342_v32  ;;  %v3547_v31 = vld [vmem:[#allocation3 + $0x110] sm:$0xff] }
 0x351   :  { %1206 = vmatpush1.msra.mxu1 %v4343_v33  ;;  %1239 = vmatprep.mubr.f32.mxu1 %v4342_v32  ;;  %v3556_v33 = vld [vmem:[#allocation3 + $0xe0] sm:$0xff] }
 0x352   :  { %1269 = vmatprep.subr.mxu0 %v3481_v34  ;;  %1340 = vmatprep.subr.mxu1 %v3484_v35 }
 0x3f1   :  { %v1005_v37 = vpop.f32.mrf.mxu0  ;;  %v1076_v48 = vpop.f32.mrf.mxu1 }
 0x3f2   :  { %v1006_v39 = vadd.f32 %v1005_v37, %v4346_v38  ;;  %v1077_v57 = vadd.f32 %v1076_v48, %v4349_v56  ;;  %v3559_v37 = vld [vmem:[#allocation3 + $0xf0] sm:$0xff]  ;;  %v3562_v38 = vld [vmem:[#allocation3 + $0xc8] sm:$0xff]  ;;  %v3589_v48 = vld [vmem:[#allocation3 + $0x98] sm:$0xff] }
 0x3f3   :  { %v1007_v41 = vpop.f32.mrf.mxu0  ;;  %v1078_v50 = vpop.f32.mrf.mxu1  ;;  %v3610_v56 = vld [vmem:[#allocation3 + $0x48] sm:$0xff] }
 0x3f4   :  { %v2411_v40 = vmul.f32 -1.442695, %v1006_v39  ;;  %v1008_v43 = vadd.f32 %v1007_v41, %v4347_v42  ;;  %v1079_v53 = vadd.f32 %v1078_v50, %v4348_v52  ;;  %v3565_v39 = vld [vmem:[#allocation3 + $0xd8] sm:$0xff]  ;;  %v3571_v41 = vld [vmem:[#allocation3 + $0xd0] sm:$0xff]  ;;  %v3574_v42 = vld [vmem:[#allocation3 + $0xa8] sm:$0xff]  ;;  %4356 = vst [vmem:[#allocation15_spill] sm:$0xff] %v3610_v56 }
 0x3f5   :  { %v3595_v50 = vld [vmem:[#allocation3 + $0x90] sm:$0xff]  ;;  %v3601_v52 = vld [vmem:[#allocation3 + $0x78] sm:$0xff] }
 0x3f6   :  { %2516 = vpow2.f32 %v2411_v40  ;;  %v2412_v44 = vmul.f32 -1.442695, %v1008_v43  ;;  %v3568_v40 = vld [vmem:[#allocation3 + $0xc0] sm:$0xff]  ;;  %v3577_v43 = vld [vmem:[#allocation3 + $0xb8] sm:$0xff]  ;;  %4351 = vst [vmem:[#allocation35_spill] sm:$0xff] %v3595_v50  ;;  %4353 = vst [vmem:[#allocation34_spill] sm:$0xff] %v3601_v52 }
 0x3f8   :  { %2518 = vpow2.f32 %v2412_v44  ;;  %v3580_v44 = vld [vmem:[#allocation3 + $0xa0] sm:$0xff] }
 0x403   :  { %v2517_v46 = vpop.eup %2516 }
 0x404   :  { %v1084_v47 = vadd.f32 1.0, %v2517_v46  ;;  %v3583_v46 = vld [vmem:[#allocation3 + $0xb0] sm:$0xff] }
 0x405   :  { %v2519_v49 = vpop.eup %2518 }
 0x406   :  { %2520 = vrcp.f32 %v1084_v47  ;;  %v1090_v51 = vadd.f32 1.0, %v2519_v49  ;;  %v3586_v47 = vld [vmem:[#allocation3 + $0x88] sm:$0xff]  ;;  %v3592_v49 = vld [vmem:[#allocation3 + $0x80] sm:$0xff] }
 0x407   :  { %4350 = vst [vmem:[#allocation33_spill] sm:$0xff] %v3592_v49 }
 0x408   :  { %2522 = vrcp.f32 %v1090_v51  ;;  %v3598_v51 = vld [vmem:[#allocation3 + $0x68] sm:$0xff] }
 0x409   :  { %4352 = vst [vmem:[#allocation36_spill] sm:$0xff] %v3598_v51 }
 0x413   :  { %v2521_v55 = vpop.eup %2520 }
 0x414   :  { %v1093_v2 = vmul.f32 %v2521_v55, %v1079_v53  ;;  %v3604_v53 = vld [vmem:[#allocation3 + $0x60] sm:$0xff]  ;;  %v3607_v55 = vld [vmem:[#allocation3 + $0x70] sm:$0xff] }
 0x415   :  { %v2523_v12 = vpop.eup %2522  ;;  %4354 = vst [vmem:[#allocation13_spill] sm:$0xff] %v3604_v53  ;;  %4355 = vst [vmem:[#allocation14_spill] sm:$0xff] %v3607_v55 }
 0x416   :  { %v1094_v3 = vadd.f32 %v1093_v2, %v1077_v57  ;;  %v1096_v13 = vsub.f32 1.0, %v2523_v12  ;;  %v1098_v16 = vmul.f32 %v2523_v12, %v3377_v1  ;;  %v3553_v1 = vld [vmem:[#allocation3 + $0xf8] sm:$0xff]  ;;  %v3616_v2 = vld [vmem:[#allocation3 + $0x40] sm:$0xff]  ;;  %v3622_v12 = vld [vmem:[#allocation3 + $0x28] sm:$0xff] }
 0x417   :  { %v3613_v57 = vld [vmem:[#allocation3 + $0x58] sm:$0xff]  ;;  %4358 = vst [vmem:[#allocation17_spill] sm:$0xff] %v3616_v2  ;;  %4360 = vst [vmem:[#allocation19_spill] sm:$0xff] %v3622_v12 }
 0x418   :  { %2524 = vtanh.f32 %v1094_v3  ;;  %4357 = vst [vmem:[#allocation16_spill] sm:$0xff] %v3613_v57  ;;  %v3619_v3 = vld [vmem:[#allocation3 + $0x50] sm:$0xff] }
 0x419   :  { %4359 = vst [vmem:[#allocation18_spill] sm:$0xff] %v3619_v3 }
 0x425   :  { %v2525_v14 = vpop.eup %2524 }
 0x426   :  { %v1097_v15 = vmul.f32 %v2525_v14, %v1096_v13  ;;  %v3625_v13 = vld [vmem:[#allocation3 + $0x38] sm:$0xff]  ;;  %v3628_v14 = vld [vmem:[#allocation3 + $0x20] sm:$0xff] }
 0x427   :  { %4361 = vst [vmem:[#allocation20_spill] sm:$0xff] %v3625_v13  ;;  %4362 = vst [vmem:[#allocation21_spill] sm:$0xff] %v3628_v14 }
 0x428   :  { %v3492_v17 = vadd.f32 %v1098_v16, %v1097_v15  ;;  %v3631_v15 = vld [vmem:[#allocation3 + $0x30] sm:$0xff]  ;;  %v3634_v16 = vld [vmem:[#allocation3 + $0x8] sm:$0xff] }
 0x429   :  { %4363 = vst [vmem:[#allocation22_spill] sm:$0xff] %v3631_v15  ;;  %4364 = vst [vmem:[#allocation23_spill] sm:$0xff] %v3634_v16 }
 0x42a   :  { %1169 = vmatmul.mubr.f32.vlgmr.msra.gmra.mxu0 %v3492_v17  ;;  %1240 = vmatmul.mubr.f32.vlgmr.msra.gmra.mxu1 %v3492_v17 }
 0x42b   :  { %1270 = vmatpush1.msra.mxu0 %v3381_v10  ;;  %1341 = vmatpush1.msra.mxu1 %v3384_v6 }
 0x42c   :  { %1271 = vmatprep.subr.mxu0 %v3387_v62  ;;  %1342 = vmatprep.subr.mxu1 %v3390_v36 }
 0x42d   :  { %1272 = vmatpush1.msra.mxu0 %v3393_v58  ;;  %1343 = vmatpush1.msra.mxu1 %v3396_v45 }
 0x42e   :  { %1273 = vmatprep.subr.mxu0 %v3399_v0  ;;  %1344 = vmatprep.subr.mxu1 %v3402_v61 }
 0x42f   :  { %1274 = vmatpush1.msra.mxu0 %v3405_v18  ;;  %1345 = vmatpush1.msra.mxu1 %v3408_v4 }
 0x430   :  { %1275 = vmatprep.subr.mxu0 %v3411_v54  ;;  %1346 = vmatprep.subr.mxu1 %v3414_v8 }
 0x431   :  { %1276 = vmatpush1.msra.mxu0 %v3417_v7  ;;  %1347 = vmatpush1.msra.mxu1 %v3420_v5 }
 0x432   :  { %1277 = vmatprep.subr.mxu0 %v3423_v9  ;;  %1348 = vmatprep.subr.mxu1 %v3426_v27 }
 0x433   :  { %1278 = vmatpush1.msra.mxu0 %v3429_v60  ;;  %1349 = vmatpush1.msra.mxu1 %v3432_v59 }
 0x434   :  { %1279 = vmatprep.subr.mxu0 %v3514_v19  ;;  %1350 = vmatprep.subr.mxu1 %v3517_v20 }
 0x435   :  { %1280 = vmatpush1.msra.mxu0 %v3520_v21  ;;  %1351 = vmatpush1.msra.mxu1 %v3523_v22 }
 0x436   :  { %1281 = vmatprep.subr.mxu0 %v3526_v23  ;;  %1352 = vmatprep.subr.mxu1 %v3529_v24 }
 0x437   :  { %1282 = vmatpush1.msra.mxu0 %v3532_v25  ;;  %1353 = vmatpush1.msra.mxu1 %v3535_v26 }
 0x438   :  { %1283 = vmatprep.subr.mxu0 %v3538_v28  ;;  %1354 = vmatprep.subr.mxu1 %v3541_v29 }
 0x439   :  { %1284 = vmatpush1.msra.mxu0 %v3544_v30  ;;  %1355 = vmatpush1.msra.mxu1 %v3547_v31 }
 0x43a   :  { %1285 = vmatprep.subr.mxu0 %v3550_v63  ;;  %1356 = vmatprep.subr.mxu1 %v3553_v1 }
 0x43b   :  { %1286 = vmatpush1.msra.mxu0 %v3556_v33  ;;  %1357 = vmatpush1.msra.mxu1 %v3559_v37 }
 0x43c   :  { %1287 = vmatprep.subr.mxu0 %v3562_v38  ;;  %1358 = vmatprep.subr.mxu1 %v3565_v39 }
 0x43d   :  { %1288 = vmatpush1.msra.mxu0 %v3568_v40  ;;  %1359 = vmatpush1.msra.mxu1 %v3571_v41 }
 0x43e   :  { %1289 = vmatprep.subr.mxu0 %v3574_v42  ;;  %1360 = vmatprep.subr.mxu1 %v3577_v43 }
 0x43f   :  { %1290 = vmatpush1.msra.mxu0 %v3580_v44  ;;  %1361 = vmatpush1.msra.mxu1 %v3583_v46 }
 0x440   :  { %1291 = vmatprep.subr.mxu0 %v3586_v47  ;;  %1362 = vmatprep.subr.mxu1 %v3589_v48 }
 0x441   :  { %1292 = vmatpush1.msra.mxu0 %v3592_v49  ;;  %1363 = vmatpush1.msra.mxu1 %v3595_v50  ;;  %v4371_v50 = vld [vmem:[#allocation46_spill] sm:$0xff] }
 0x442   :  { %1293 = vmatprep.subr.mxu0 %v3598_v51  ;;  %1364 = vmatprep.subr.mxu1 %v3601_v52 }
 0x443   :  { %1294 = vmatpush1.msra.mxu0 %v3604_v53  ;;  %1365 = vmatpush1.msra.mxu1 %v3607_v55 }
 0x444   :  { %1295 = vmatprep.subr.mxu0 %v3610_v56  ;;  %1366 = vmatprep.subr.mxu1 %v3613_v57 }
 0x445   :  { %1296 = vmatpush1.msra.mxu0 %v3616_v2  ;;  %1367 = vmatpush1.msra.mxu1 %v3619_v3  ;;  %v4369_v2 = vld [vmem:[#allocation47_spill] sm:$0xff] }
 0x446   :  { %1297 = vmatprep.subr.mxu0 %v3622_v12  ;;  %1368 = vmatprep.subr.mxu1 %v3625_v13  ;;  %v3640_v12 = vld [vmem:[#allocation3] sm:$0xff]  ;;  %v3644_v13 = vld [vmem:[#allocation3 + $0x10] sm:$0xff] }
 0x447   :  { %1298 = vmatpush1.msra.mxu0 %v3628_v14  ;;  %1369 = vmatpush1.msra.mxu1 %v3631_v15  ;;  %4366 = vst [vmem:[#allocation25_spill] sm:$0xff] %v3640_v12  ;;  %4367 = vst [vmem:[#allocation26_spill] sm:$0xff] %v3644_v13  ;;  %v4368_v15 = vld [vmem:[#allocation45_spill] sm:$0xff] }
 0x448   :  { %1299 = vmatprep.subr.mxu0 %v3634_v16  ;;  %1370 = vmatprep.subr.mxu1 %v3637_v11 }
 0x449   :  { %1300 = vmatpush1.msra.mxu0 %v3640_v12  ;;  %1333 = vmatprep.mubr.f32.mxu0 %v4342_v32 }
 0x44a   :  { %1371 = vmatpush1.msra.mxu1 %v3644_v13  ;;  %1404 = vmatprep.mubr.f32.mxu1 %v4342_v32 }
 0x44b   :  { %1434 = vmatprep.subr.mxu0 %v3481_v34  ;;  %1505 = vmatprep.subr.mxu1 %v3484_v35  ;;  %v4370_v34 = vld [vmem:[#allocation48_spill] sm:$0xff] }
 0x4ea   :  { %v1170_v16 = vpop.f32.mrf.mxu0  ;;  %v1241_v13 = vpop.f32.mrf.mxu1 }
 0x4eb   :  { %v1171_v14 = vadd.f32 %v1170_v16, %v4368_v15  ;;  %v1242_v49 = vadd.f32 %v1241_v13, %v4371_v50  ;;  %v4377_v50 = vld [vmem:[#allocation14_spill] sm:$0xff]  ;;  %v4382_v13 = vld [vmem:[#allocation19_spill] sm:$0xff]  ;;  %v4383_v16 = vld [vmem:[#allocation20_spill] sm:$0xff] }
 0x4ec   :  { %v1172_v3 = vpop.f32.mrf.mxu0  ;;  %v1243_v32 = vpop.f32.mrf.mxu1 }
 0x4ed   :  { %v2413_v11 = vmul.f32 -1.442695, %v1171_v14  ;;  %v1173_v12 = vadd.f32 %v1172_v3, %v4369_v2  ;;  %v1244_v51 = vadd.f32 %v1243_v32, %v4370_v34  ;;  %v4372_v32 = vld [vmem:[#allocation33_spill] sm:$0xff]  ;;  %v4373_v34 = vld [vmem:[#allocation35_spill] sm:$0xff] }
 0x4ef   :  { %2526 = vpow2.f32 %v2413_v11  ;;  %v2414_v57 = vmul.f32 -1.442695, %v1173_v12  ;;  %v4381_v12 = vld [vmem:[#allocation18_spill] sm:$0xff] }
 0x4f1   :  { %2528 = vpow2.f32 %v2414_v57 }
 0x4fc   :  { %v2527_v56 = vpop.eup %2526 }
 0x4fd   :  { %v1249_v55 = vadd.f32 1.0, %v2527_v56 }
 0x4fe   :  { %v2529_v53 = vpop.eup %2528 }
 0x4ff   :  { %2530 = vrcp.f32 %v1249_v55  ;;  %v1255_v52 = vadd.f32 1.0, %v2529_v53  ;;  %v4380_v53 = vld [vmem:[#allocation17_spill] sm:$0xff] }
 0x501   :  { %2532 = vrcp.f32 %v1255_v52  ;;  %v4379_v52 = vld [vmem:[#allocation16_spill] sm:$0xff] }
 0x50c   :  { %v2531_v35 = vpop.eup %2530 }
 0x50d   :  { %v1258_v14 = vmul.f32 %v2531_v35, %v1244_v51  ;;  %v4374_v35 = vld [vmem:[#allocation36_spill] sm:$0xff]  ;;  %v4378_v51 = vld [vmem:[#allocation15_spill] sm:$0xff] }
 0x50e   :  { %v2533_v11 = vpop.eup %2532 }
 0x50f   :  { %v1259_v15 = vadd.f32 %v1258_v14, %v1242_v49  ;;  %v1261_v2 = vsub.f32 1.0, %v2533_v11  ;;  %v1263_v56 = vmul.f32 %v2533_v11, %v3492_v17  ;;  %v4375_v17 = vld [vmem:[#allocation34_spill] sm:$0xff]  ;;  %v4376_v49 = vld [vmem:[#allocation13_spill] sm:$0xff]  ;;  %v4386_v11 = vld [vmem:[#allocation23_spill] sm:$0xff] }
 0x510   :  { %v4384_v14 = vld [vmem:[#allocation21_spill] sm:$0xff] }
 0x511   :  { %2534 = vtanh.f32 %v1259_v15  ;;  %v4385_v15 = vld [vmem:[#allocation22_spill] sm:$0xff] }
 0x51e   :  { %v2535_v3 = vpop.eup %2534 }
 0x51f   :  { %v1262_v57 = vmul.f32 %v2535_v3, %v1261_v2  ;;  %v4387_v2 = vld [vmem:[#allocation24_spill] sm:$0xff]  ;;  %v4388_v3 = vld [vmem:[#allocation25_spill] sm:$0xff] }
 0x521   :  { %v3655_v55 = vadd.f32 %v1263_v56, %v1262_v57  ;;  %v4389_v57 = vmov 0.0   ;;  %v4390_v56 = vld [vmem:[#allocation26_spill] sm:$0xff] }
 0x523   :  { %1334 = vmatmul.mubr.f32.vlgmr.msra.gmra.mxu0 %v3655_v55  ;;  %1405 = vmatmul.mubr.f32.vlgmr.msra.gmra.mxu1 %v3655_v55 }
 0x524   :  { %1435 = vmatpush1.msra.mxu0 %v3381_v10  ;;  %1506 = vmatpush1.msra.mxu1 %v3384_v6 }
 0x525   :  { %1436 = vmatprep.subr.mxu0 %v3387_v62  ;;  %1507 = vmatprep.subr.mxu1 %v3390_v36 }
 0x526   :  { %1437 = vmatpush1.msra.mxu0 %v3393_v58  ;;  %1508 = vmatpush1.msra.mxu1 %v3396_v45 }
 0x527   :  { %1438 = vmatprep.subr.mxu0 %v3399_v0  ;;  %1509 = vmatprep.subr.mxu1 %v3402_v61 }
 0x528   :  { %1439 = vmatpush1.msra.mxu0 %v3405_v18  ;;  %1510 = vmatpush1.msra.mxu1 %v3408_v4 }
 0x529   :  { %1440 = vmatprep.subr.mxu0 %v3411_v54  ;;  %1511 = vmatprep.subr.mxu1 %v3414_v8 }
 0x52a   :  { %1441 = vmatpush1.msra.mxu0 %v3417_v7  ;;  %1512 = vmatpush1.msra.mxu1 %v3420_v5 }
 0x52b   :  { %1442 = vmatprep.subr.mxu0 %v3423_v9  ;;  %1513 = vmatprep.subr.mxu1 %v3426_v27 }
 0x52c   :  { %1443 = vmatpush1.msra.mxu0 %v3429_v60  ;;  %1514 = vmatpush1.msra.mxu1 %v3432_v59 }
 0x52d   :  { %1444 = vmatprep.subr.mxu0 %v3514_v19  ;;  %1515 = vmatprep.subr.mxu1 %v3517_v20 }
 0x52e   :  { %1445 = vmatpush1.msra.mxu0 %v3520_v21  ;;  %1516 = vmatpush1.msra.mxu1 %v3523_v22 }
 0x52f   :  { %1446 = vmatprep.subr.mxu0 %v3526_v23  ;;  %1517 = vmatprep.subr.mxu1 %v3529_v24 }
 0x530   :  { %1447 = vmatpush1.msra.mxu0 %v3532_v25  ;;  %1518 = vmatpush1.msra.mxu1 %v3535_v26 }
 0x531   :  { %1448 = vmatprep.subr.mxu0 %v3538_v28  ;;  %1519 = vmatprep.subr.mxu1 %v3541_v29 }
 0x532   :  { %1449 = vmatpush1.msra.mxu0 %v3544_v30  ;;  %1520 = vmatpush1.msra.mxu1 %v3547_v31 }
 0x533   :  { %1450 = vmatprep.subr.mxu0 %v3550_v63  ;;  %1521 = vmatprep.subr.mxu1 %v3553_v1 }
 0x534   :  { %1451 = vmatpush1.msra.mxu0 %v3556_v33  ;;  %1522 = vmatpush1.msra.mxu1 %v3559_v37 }
 0x535   :  { %1452 = vmatprep.subr.mxu0 %v3562_v38  ;;  %1523 = vmatprep.subr.mxu1 %v3565_v39 }
 0x536   :  { %1453 = vmatpush1.msra.mxu0 %v3568_v40  ;;  %1524 = vmatpush1.msra.mxu1 %v3571_v41 }
 0x537   :  { %1454 = vmatprep.subr.mxu0 %v3574_v42  ;;  %1525 = vmatprep.subr.mxu1 %v3577_v43 }
 0x538   :  { %1455 = vmatpush1.msra.mxu0 %v3580_v44  ;;  %1526 = vmatpush1.msra.mxu1 %v3583_v46 }
 0x539   :  { %1456 = vmatprep.subr.mxu0 %v3586_v47  ;;  %1527 = vmatprep.subr.mxu1 %v3589_v48 }
 0x53a   :  { %1457 = vmatpush1.msra.mxu0 %v4372_v32  ;;  %1528 = vmatpush1.msra.mxu1 %v4373_v34  ;;  %v4396_v34 = vld [vmem:[#allocation50_spill] sm:$0xff] }
 0x53b   :  { %1458 = vmatprep.subr.mxu0 %v4374_v35  ;;  %1529 = vmatprep.subr.mxu1 %v4375_v17 }
 0x53c   :  { %1459 = vmatpush1.msra.mxu0 %v4376_v49  ;;  %1530 = vmatpush1.msra.mxu1 %v4377_v50 }
 0x53d   :  { %1460 = vmatprep.subr.mxu0 %v4378_v51  ;;  %1531 = vmatprep.subr.mxu1 %v4379_v52 }
 0x53e   :  { %1461 = vmatpush1.msra.mxu0 %v4380_v53  ;;  %1532 = vmatpush1.msra.mxu1 %v4381_v12  ;;  %v4391_v12 = vld [vmem:[#allocation11_spill] sm:$0xff] }
 0x53f   :  { %1462 = vmatprep.subr.mxu0 %v4382_v13  ;;  %1533 = vmatprep.subr.mxu1 %v4383_v16  ;;  %v4392_v13 = vld [vmem:[#allocation12_spill] sm:$0xff] }
 0x540   :  { %1463 = vmatpush1.msra.mxu0 %v4384_v14  ;;  %1534 = vmatpush1.msra.mxu1 %v4385_v15  ;;  %v4393_v14 = vld [vmem:[#allocation49_spill] sm:$0xff] }
 0x541   :  { %1464 = vmatprep.subr.mxu0 %v4386_v11  ;;  %1535 = vmatprep.subr.mxu1 %v4387_v2  ;;  %v4394_v11 = vld [vmem:[#allocation51_spill] sm:$0xff] }
 0x542   :  { %1465 = vmatpush1.msra.mxu0 %v4388_v3  ;;  %1498 = vmatprep.mubr.f32.mxu0 %v4389_v57 }
 0x543   :  { %1536 = vmatpush1.msra.mxu1 %v4390_v56  ;;  %1569 = vmatprep.mubr.f32.mxu1 %v4389_v57 }
 0x544   :  { %1599 = vmatprep.subr.mxu0 %v4391_v12  ;;  %1670 = vmatprep.subr.mxu1 %v4392_v13  ;;  %v4395_v12 = vld [vmem:[#allocation52_spill] sm:$0xff] }
 0x5e3   :  { %v1335_v16 = vpop.f32.mrf.mxu0  ;;  %v1406_v56 = vpop.f32.mrf.mxu1 }
 0x5e4   :  { %v1336_v53 = vadd.f32 %v1335_v16, %v4393_v14  ;;  %v1407_v32 = vadd.f32 %v1406_v56, %v4396_v34  ;;  %v4399_v34 = vld [vmem:[#allocation36_spill] sm:$0xff] }
 0x5e5   :  { %v1337_v52 = vpop.f32.mrf.mxu0  ;;  %v1408_v57 = vpop.f32.mrf.mxu1  ;;  %v4408_v56 = vld [vmem:[#allocation20_spill] sm:$0xff] }
 0x5e6   :  { %v2415_v15 = vmul.f32 -1.442695, %v1336_v53  ;;  %v1338_v2 = vadd.f32 %v1337_v52, %v4394_v11  ;;  %v1409_v35 = vadd.f32 %v1408_v57, %v4395_v12  ;;  %v4403_v12 = vld [vmem:[#allocation15_spill] sm:$0xff] }
 0x5e7   :  { %v4407_v57 = vld [vmem:[#allocation19_spill] sm:$0xff] }
 0x5e8   :  { %2536 = vpow2.f32 %v2415_v15  ;;  %v2416_v51 = vmul.f32 -1.442695, %v1338_v2  ;;  %v4405_v2 = vld [vmem:[#allocation17_spill] sm:$0xff] }
 0x5ea   :  { %2538 = vpow2.f32 %v2416_v51 }
 0x5f5   :  { %v2537_v3 = vpop.eup %2536 }
 0x5f6   :  { %v1414_v50 = vadd.f32 1.0, %v2537_v3  ;;  %v4406_v3 = vld [vmem:[#allocation18_spill] sm:$0xff] }
 0x5f7   :  { %v2539_v49 = vpop.eup %2538 }
 0x5f8   :  { %2540 = vrcp.f32 %v1414_v50  ;;  %v1420_v17 = vadd.f32 1.0, %v2539_v49  ;;  %v4402_v49 = vld [vmem:[#allocation14_spill] sm:$0xff] }
 0x5fa   :  { %2542 = vrcp.f32 %v1420_v17  ;;  %v4401_v17 = vld [vmem:[#allocation13_spill] sm:$0xff] }
 0x605   :  { %v2541_v13 = vpop.eup %2540 }
 0x606   :  { %v1423_v53 = vmul.f32 %v2541_v13, %v1409_v35  ;;  %v4400_v35 = vld [vmem:[#allocation34_spill] sm:$0xff]  ;;  %v4404_v13 = vld [vmem:[#allocation16_spill] sm:$0xff] }
 0x607   :  { %v2543_v14 = vpop.eup %2542 }
 0x608   :  { %v1424_v16 = vadd.f32 %v1423_v53, %v1407_v32  ;;  %v1426_v52 = vsub.f32 1.0, %v2543_v14  ;;  %v1428_v11 = vmul.f32 %v2543_v14, %v3655_v55  ;;  %v4397_v55 = vld [vmem:[#allocation33_spill] sm:$0xff]  ;;  %v4398_v32 = vld [vmem:[#allocation35_spill] sm:$0xff] }
 0x609   :  { %v4409_v53 = vld [vmem:[#allocation21_spill] sm:$0xff]  ;;  %v4411_v14 = vld [vmem:[#allocation23_spill] sm:$0xff] }
 0x60a   :  { %2544 = vtanh.f32 %v1424_v16  ;;  %v4410_v16 = vld [vmem:[#allocation22_spill] sm:$0xff] }
 0x617   :  { %v2545_v15 = vpop.eup %2544 }
 0x618   :  { %v1427_v51 = vmul.f32 %v2545_v15, %v1426_v52  ;;  %v4412_v52 = vld [vmem:[#allocation24_spill] sm:$0xff]  ;;  %v4413_v15 = vld [vmem:[#allocation25_spill] sm:$0xff] }
 0x61a   :  { %v3730_v50 = vadd.f32 %v1428_v11, %v1427_v51  ;;  %v4414_v51 = vmov 0.0   ;;  %v4415_v11 = vld [vmem:[#allocation26_spill] sm:$0xff] }
 0x61c   :  { %1499 = vmatmul.mubr.f32.vlgmr.msra.gmra.mxu0 %v3730_v50  ;;  %1570 = vmatmul.mubr.f32.vlgmr.msra.gmra.mxu1 %v3730_v50 }
 0x61d   :  { %1600 = vmatpush1.msra.mxu0 %v3381_v10  ;;  %1671 = vmatpush1.msra.mxu1 %v3384_v6 }
 0x61e   :  { %1601 = vmatprep.subr.mxu0 %v3387_v62  ;;  %1672 = vmatprep.subr.mxu1 %v3390_v36 }
 0x61f   :  { %1602 = vmatpush1.msra.mxu0 %v3393_v58  ;;  %1673 = vmatpush1.msra.mxu1 %v3396_v45 }
 0x620   :  { %1603 = vmatprep.subr.mxu0 %v3399_v0  ;;  %1674 = vmatprep.subr.mxu1 %v3402_v61 }
 0x621   :  { %1604 = vmatpush1.msra.mxu0 %v3405_v18  ;;  %1675 = vmatpush1.msra.mxu1 %v3408_v4 }
 0x622   :  { %1605 = vmatprep.subr.mxu0 %v3411_v54  ;;  %1676 = vmatprep.subr.mxu1 %v3414_v8 }
 0x623   :  { %1606 = vmatpush1.msra.mxu0 %v3417_v7  ;;  %1677 = vmatpush1.msra.mxu1 %v3420_v5 }
 0x624   :  { %1607 = vmatprep.subr.mxu0 %v3423_v9  ;;  %1678 = vmatprep.subr.mxu1 %v3426_v27 }
 0x625   :  { %1608 = vmatpush1.msra.mxu0 %v3429_v60  ;;  %1679 = vmatpush1.msra.mxu1 %v3432_v59 }
 0x626   :  { %1609 = vmatprep.subr.mxu0 %v3514_v19  ;;  %1680 = vmatprep.subr.mxu1 %v3517_v20 }
 0x627   :  { %1610 = vmatpush1.msra.mxu0 %v3520_v21  ;;  %1681 = vmatpush1.msra.mxu1 %v3523_v22 }
 0x628   :  { %1611 = vmatprep.subr.mxu0 %v3526_v23  ;;  %1682 = vmatprep.subr.mxu1 %v3529_v24 }
 0x629   :  { %1612 = vmatpush1.msra.mxu0 %v3532_v25  ;;  %1683 = vmatpush1.msra.mxu1 %v3535_v26 }
 0x62a   :  { %1613 = vmatprep.subr.mxu0 %v3538_v28  ;;  %1684 = vmatprep.subr.mxu1 %v3541_v29 }
 0x62b   :  { %1614 = vmatpush1.msra.mxu0 %v3544_v30  ;;  %1685 = vmatpush1.msra.mxu1 %v3547_v31 }
 0x62c   :  { %1615 = vmatprep.subr.mxu0 %v3550_v63  ;;  %1686 = vmatprep.subr.mxu1 %v3553_v1 }
 0x62d   :  { %1616 = vmatpush1.msra.mxu0 %v3556_v33  ;;  %1687 = vmatpush1.msra.mxu1 %v3559_v37 }
 0x62e   :  { %1617 = vmatprep.subr.mxu0 %v3562_v38  ;;  %1688 = vmatprep.subr.mxu1 %v3565_v39 }
 0x62f   :  { %1618 = vmatpush1.msra.mxu0 %v3568_v40  ;;  %1689 = vmatpush1.msra.mxu1 %v3571_v41 }
 0x630   :  { %1619 = vmatprep.subr.mxu0 %v3574_v42  ;;  %1690 = vmatprep.subr.mxu1 %v3577_v43 }
 0x631   :  { %1620 = vmatpush1.msra.mxu0 %v3580_v44  ;;  %1691 = vmatpush1.msra.mxu1 %v3583_v46 }
 0x632   :  { %1621 = vmatprep.subr.mxu0 %v3586_v47  ;;  %1692 = vmatprep.subr.mxu1 %v3589_v48 }
 0x633   :  { %1622 = vmatpush1.msra.mxu0 %v4397_v55  ;;  %1693 = vmatpush1.msra.mxu1 %v4398_v32  ;;  %v4421_v32 = vld [vmem:[#allocation54_spill] sm:$0xff] }
 0x634   :  { %1623 = vmatprep.subr.mxu0 %v4399_v34  ;;  %1694 = vmatprep.subr.mxu1 %v4400_v35 }
 0x635   :  { %1624 = vmatpush1.msra.mxu0 %v4401_v17  ;;  %1695 = vmatpush1.msra.mxu1 %v4402_v49 }
 0x636   :  { %1625 = vmatprep.subr.mxu0 %v4403_v12  ;;  %1696 = vmatprep.subr.mxu1 %v4404_v13 }
 0x637   :  { %1626 = vmatpush1.msra.mxu0 %v4405_v2  ;;  %1697 = vmatpush1.msra.mxu1 %v4406_v3  ;;  %v4416_v3 = vld [vmem:[#allocation11_spill] sm:$0xff] }
 0x638   :  { %1627 = vmatprep.subr.mxu0 %v4407_v57  ;;  %1698 = vmatprep.subr.mxu1 %v4408_v56  ;;  %v4417_v57 = vld [vmem:[#allocation12_spill] sm:$0xff] }
 0x639   :  { %1628 = vmatpush1.msra.mxu0 %v4409_v53  ;;  %1699 = vmatpush1.msra.mxu1 %v4410_v16  ;;  %v4418_v53 = vld [vmem:[#allocation53_spill] sm:$0xff] }
 0x63a   :  { %1629 = vmatprep.subr.mxu0 %v4411_v14  ;;  %1700 = vmatprep.subr.mxu1 %v4412_v52  ;;  %v4419_v14 = vld [vmem:[#allocation55_spill] sm:$0xff] }
 0x63b   :  { %1630 = vmatpush1.msra.mxu0 %v4413_v15  ;;  %1663 = vmatprep.mubr.f32.mxu0 %v4414_v51 }
 0x63c   :  { %1701 = vmatpush1.msra.mxu1 %v4415_v11  ;;  %1734 = vmatprep.mubr.f32.mxu1 %v4414_v51 }
 0x63d   :  { %1782 = vmatprep.subr.mxu0 %v4416_v3  ;;  %1853 = vmatprep.subr.mxu1 %v4417_v57  ;;  %v4420_v3 = vld [vmem:[#allocation56_spill] sm:$0xff] }
 0x6dc   :  { %v1500_v56 = vpop.f32.mrf.mxu0  ;;  %v1571_v11 = vpop.f32.mrf.mxu1 }
 0x6dd   :  { %v1501_v2 = vadd.f32 %v1500_v56, %v4418_v53  ;;  %v1572_v55 = vadd.f32 %v1571_v11, %v4421_v32  ;;  %v4424_v32 = vld [vmem:[#allocation36_spill] sm:$0xff] }
 0x6de   :  { %v1502_v13 = vpop.f32.mrf.mxu0  ;;  %v1573_v51 = vpop.f32.mrf.mxu1  ;;  %v4433_v11 = vld [vmem:[#allocation20_spill] sm:$0xff] }
 0x6df   :  { %v2417_v16 = vmul.f32 -1.442695, %v1501_v2  ;;  %v1503_v52 = vadd.f32 %v1502_v13, %v4419_v14  ;;  %v1574_v34 = vadd.f32 %v1573_v51, %v4420_v3  ;;  %v4428_v3 = vld [vmem:[#allocation15_spill] sm:$0xff] }
 0x6e0   :  { %v4432_v51 = vld [vmem:[#allocation19_spill] sm:$0xff] }
 0x6e1   :  { %2546 = vpow2.f32 %v2417_v16  ;;  %v2418_v12 = vmul.f32 -1.442695, %v1503_v52  ;;  %v4430_v52 = vld [vmem:[#allocation17_spill] sm:$0xff] }
 0x6e3   :  { %2548 = vpow2.f32 %v2418_v12 }
 0x6ee   :  { %v2547_v15 = vpop.eup %2546 }
 0x6ef   :  { %v1579_v49 = vadd.f32 1.0, %v2547_v15  ;;  %v4431_v15 = vld [vmem:[#allocation18_spill] sm:$0xff] }
 0x6f0   :  { %v2549_v17 = vpop.eup %2548 }
 0x6f1   :  { %2550 = vrcp.f32 %v1579_v49  ;;  %v1585_v35 = vadd.f32 1.0, %v2549_v17  ;;  %v4427_v17 = vld [vmem:[#allocation14_spill] sm:$0xff] }
 0x6f3   :  { %2552 = vrcp.f32 %v1585_v35  ;;  %v4426_v35 = vld [vmem:[#allocation13_spill] sm:$0xff] }
 0x6fe   :  { %v2551_v57 = vpop.eup %2550 }
 0x6ff   :  { %v1588_v2 = vmul.f32 %v2551_v57, %v1574_v34  ;;  %v4425_v34 = vld [vmem:[#allocation34_spill] sm:$0xff]  ;;  %v4429_v57 = vld [vmem:[#allocation16_spill] sm:$0xff] }
 0x700   :  { %v2553_v53 = vpop.eup %2552 }
 0x701   :  { %v1589_v56 = vadd.f32 %v1588_v2, %v1572_v55  ;;  %v1591_v13 = vsub.f32 1.0, %v2553_v53  ;;  %v1593_v14 = vmul.f32 %v2553_v53, %v3730_v50  ;;  %v4422_v50 = vld [vmem:[#allocation33_spill] sm:$0xff]  ;;  %v4423_v55 = vld [vmem:[#allocation35_spill] sm:$0xff] }
 0x702   :  { %v4434_v2 = vld [vmem:[#allocation21_spill] sm:$0xff]  ;;  %v4436_v53 = vld [vmem:[#allocation23_spill] sm:$0xff] }
 0x703   :  { %2554 = vtanh.f32 %v1589_v56  ;;  %v4435_v56 = vld [vmem:[#allocation22_spill] sm:$0xff] }
 0x710   :  { %v2555_v16 = vpop.eup %2554 }
 0x711   :  { %v1592_v12 = vmul.f32 %v2555_v16, %v1591_v13  ;;  %v4437_v13 = vld [vmem:[#allocation24_spill] sm:$0xff]  ;;  %v4438_v16 = vld [vmem:[#allocation25_spill] sm:$0xff] }
 0x713   :  { %v3805_v49 = vadd.f32 %v1593_v14, %v1592_v12  ;;  %v4439_v12 = vmov 0.0   ;;  %v4440_v14 = vld [vmem:[#allocation26_spill] sm:$0xff] }
 0x715   :  { %1664 = vmatmul.mubr.f32.vlgmr.msra.gmra.mxu0 %v3805_v49  ;;  %1735 = vmatmul.mubr.f32.vlgmr.msra.gmra.mxu1 %v3805_v49 }
 0x716   :  { %1783 = vmatpush1.msra.mxu0 %v3381_v10  ;;  %1854 = vmatpush1.msra.mxu1 %v3384_v6 }
 0x717   :  { %1784 = vmatprep.subr.mxu0 %v3387_v62  ;;  %1855 = vmatprep.subr.mxu1 %v3390_v36 }
 0x718   :  { %1785 = vmatpush1.msra.mxu0 %v3393_v58  ;;  %1856 = vmatpush1.msra.mxu1 %v3396_v45 }
 0x719   :  { %1786 = vmatprep.subr.mxu0 %v3399_v0  ;;  %1857 = vmatprep.subr.mxu1 %v3402_v61 }
 0x71a   :  { %1787 = vmatpush1.msra.mxu0 %v3405_v18  ;;  %1858 = vmatpush1.msra.mxu1 %v3408_v4 }
 0x71b   :  { %1788 = vmatprep.subr.mxu0 %v3411_v54  ;;  %1859 = vmatprep.subr.mxu1 %v3414_v8 }
 0x71c   :  { %1789 = vmatpush1.msra.mxu0 %v3417_v7  ;;  %1860 = vmatpush1.msra.mxu1 %v3420_v5 }
 0x71d   :  { %1790 = vmatprep.subr.mxu0 %v3423_v9  ;;  %1861 = vmatprep.subr.mxu1 %v3426_v27 }
 0x71e   :  { %1791 = vmatpush1.msra.mxu0 %v3429_v60  ;;  %1862 = vmatpush1.msra.mxu1 %v3432_v59 }
 0x71f   :  { %1792 = vmatprep.subr.mxu0 %v3514_v19  ;;  %1863 = vmatprep.subr.mxu1 %v3517_v20 }
 0x720   :  { %1793 = vmatpush1.msra.mxu0 %v3520_v21  ;;  %1864 = vmatpush1.msra.mxu1 %v3523_v22 }
 0x721   :  { %1794 = vmatprep.subr.mxu0 %v3526_v23  ;;  %1865 = vmatprep.subr.mxu1 %v3529_v24 }
 0x722   :  { %1795 = vmatpush1.msra.mxu0 %v3532_v25  ;;  %1866 = vmatpush1.msra.mxu1 %v3535_v26 }
 0x723   :  { %1796 = vmatprep.subr.mxu0 %v3538_v28  ;;  %1867 = vmatprep.subr.mxu1 %v3541_v29 }
 0x724   :  { %1797 = vmatpush1.msra.mxu0 %v3544_v30  ;;  %1868 = vmatpush1.msra.mxu1 %v3547_v31 }
 0x725   :  { %1798 = vmatprep.subr.mxu0 %v3550_v63  ;;  %1869 = vmatprep.subr.mxu1 %v3553_v1 }
 0x726   :  { %1799 = vmatpush1.msra.mxu0 %v3556_v33  ;;  %1870 = vmatpush1.msra.mxu1 %v3559_v37 }
 0x727   :  { %1800 = vmatprep.subr.mxu0 %v3562_v38  ;;  %1871 = vmatprep.subr.mxu1 %v3565_v39 }
 0x728   :  { %1801 = vmatpush1.msra.mxu0 %v3568_v40  ;;  %1872 = vmatpush1.msra.mxu1 %v3571_v41 }
 0x729   :  { %1802 = vmatprep.subr.mxu0 %v3574_v42  ;;  %1873 = vmatprep.subr.mxu1 %v3577_v43 }
 0x72a   :  { %1803 = vmatpush1.msra.mxu0 %v3580_v44  ;;  %1874 = vmatpush1.msra.mxu1 %v3583_v46 }
 0x72b   :  { %1804 = vmatprep.subr.mxu0 %v3586_v47  ;;  %1875 = vmatprep.subr.mxu1 %v3589_v48 }
 0x72c   :  { %1805 = vmatpush1.msra.mxu0 %v4422_v50  ;;  %1876 = vmatpush1.msra.mxu1 %v4423_v55  ;;  %v4446_v55 = vld [vmem:[#allocation58_spill] sm:$0xff] }
 0x72d   :  { %1806 = vmatprep.subr.mxu0 %v4424_v32  ;;  %1877 = vmatprep.subr.mxu1 %v4425_v34 }
 0x72e   :  { %1807 = vmatpush1.msra.mxu0 %v4426_v35  ;;  %1878 = vmatpush1.msra.mxu1 %v4427_v17 }
 0x72f   :  { %1808 = vmatprep.subr.mxu0 %v4428_v3  ;;  %1879 = vmatprep.subr.mxu1 %v4429_v57 }
 0x730   :  { %1809 = vmatpush1.msra.mxu0 %v4430_v52  ;;  %1880 = vmatpush1.msra.mxu1 %v4431_v15  ;;  %v4441_v15 = vld [vmem:[#allocation11_spill] sm:$0xff] }
 0x731   :  { %1810 = vmatprep.subr.mxu0 %v4432_v51  ;;  %1881 = vmatprep.subr.mxu1 %v4433_v11  ;;  %v4442_v51 = vld [vmem:[#allocation12_spill] sm:$0xff] }
 0x732   :  { %1811 = vmatpush1.msra.mxu0 %v4434_v2  ;;  %1882 = vmatpush1.msra.mxu1 %v4435_v56  ;;  %v4443_v2 = vld [vmem:[#allocation57_spill] sm:$0xff] }
 0x733   :  { %1812 = vmatprep.subr.mxu0 %v4436_v53  ;;  %1883 = vmatprep.subr.mxu1 %v4437_v13  ;;  %v4444_v53 = vld [vmem:[#allocation59_spill] sm:$0xff] }
 0x734   :  { %1813 = vmatpush1.msra.mxu0 %v4438_v16  ;;  %1846 = vmatprep.mubr.f32.mxu0 %v4439_v12 }
 0x735   :  { %1884 = vmatpush1.msra.mxu1 %v4440_v14  ;;  %1917 = vmatprep.mubr.f32.mxu1 %v4439_v12 }
 0x736   :  { %1947 = vmatprep.subr.mxu0 %v4441_v15  ;;  %2018 = vmatprep.subr.mxu1 %v4442_v51  ;;  %v4445_v15 = vld [vmem:[#allocation60_spill] sm:$0xff] }
 0x7d5   :  { %v1665_v11 = vpop.f32.mrf.mxu0  ;;  %v1736_v14 = vpop.f32.mrf.mxu1 }
 0x7d6   :  { %v1666_v52 = vadd.f32 %v1665_v11, %v4443_v2  ;;  %v1737_v50 = vadd.f32 %v1736_v14, %v4446_v55  ;;  %v4467_v55 = vld [vmem:[#allocation12_spill] sm:$0xff] }
 0x7d7   :  { %v1667_v57 = vpop.f32.mrf.mxu0  ;;  %v1738_v12 = vpop.f32.mrf.mxu1 }
 0x7d8   :  { %v2419_v56 = vmul.f32 -1.442695, %v1666_v52  ;;  %v1668_v13 = vadd.f32 %v1667_v57, %v4444_v53  ;;  %v1739_v32 = vadd.f32 %v1738_v12, %v4445_v15 }
 0x7da   :  { %2556 = vpow2.f32 %v2419_v56  ;;  %v2420_v3 = vmul.f32 -1.442695, %v1668_v13 }
 0x7dc   :  { %2558 = vpow2.f32 %v2420_v3 }
 0x7e7   :  { %v2557_v16 = vpop.eup %2556 }
 0x7e8   :  { %v1744_v17 = vadd.f32 1.0, %v2557_v16 }
 0x7e9   :  { %v2559_v35 = vpop.eup %2558 }
 0x7ea   :  { %2560 = vrcp.f32 %v1744_v17  ;;  %v1750_v34 = vadd.f32 1.0, %v2559_v35 }
 0x7ec   :  { %2562 = vrcp.f32 %v1750_v34  ;;  %v4468_v34 = vld [vmem:[#allocation32_spill] sm:$0xff] }
 0x7ed   :  { %v4469_v35 = vsub.s32 0, %v4468_v34  ;;  %v4471_v12 = vsub.s32 1, %v4468_v34 }
 0x7f7   :  { %v2561_v51 = vpop.eup %2560 }
 0x7f8   :  { %v1753_v52 = vmul.f32 %v2561_v51, %v1739_v32  ;;  %v1760_v32 = vld [vmem:[%s4119_s4] sm:$0xf] }
 0x7f9   :  { %v2563_v2 = vpop.eup %2562  ;;  %v3955_v15 = vrot.slane %v1760_v32, %v4469_v35  ;;  %v3960_v14 = vrot.slane %v1760_v32, %v4471_v12 }
 0x7fa   :  { %v1754_v11 = vadd.f32 %v1753_v52, %v1737_v50  ;;  %v1756_v57 = vsub.f32 1.0, %v2563_v2  ;;  %v1758_v53 = vmul.f32 %v2563_v2, %v3805_v49  ;;  %v4465_v49 = vld [vmem:[#allocation26_spill] sm:$0xff]  ;;  %v4466_v50 = vld [vmem:[#allocation11_spill] sm:$0xff] }
 0x7fb   :  { %4470 = vst [vmem:[#allocation27_spill] sm:$0xff] %v3955_v15  ;;  %4472 = vst [vmem:[#allocation28_spill] sm:$0xff] %v3960_v14 }
 0x7fc   :  { %2564 = vtanh.f32 %v1754_v11 }
 0x809   :  { %v2565_v56 = vpop.eup %2564 }
 0x80a   :  { %v1757_v3 = vmul.f32 %v2565_v56, %v1756_v57 }
 0x80c   :  { %v3880_v17 = vadd.f32 %v1758_v53, %v1757_v3 }
 0x80e   :  { %1847 = vmatmul.mubr.f32.vlgmr.msra.gmra.mxu0 %v3880_v17  ;;  %1918 = vmatmul.mubr.f32.vlgmr.msra.gmra.mxu1 %v3880_v17 }
 0x80f   :  { %1948 = vmatpush1.msra.mxu0 %v3381_v10  ;;  %2019 = vmatpush1.msra.mxu1 %v3384_v6  ;;  %v4447_v10 = vld [vmem:[#allocation33_spill] sm:$0xff]  ;;  %v4448_v6 = vld [vmem:[#allocation35_spill] sm:$0xff] }
 0x810   :  { %1949 = vmatprep.subr.mxu0 %v3387_v62  ;;  %2020 = vmatprep.subr.mxu1 %v3390_v36  ;;  %v4449_v62 = vld [vmem:[#allocation36_spill] sm:$0xff]  ;;  %v4450_v36 = vld [vmem:[#allocation34_spill] sm:$0xff] }
 0x811   :  { %1950 = vmatpush1.msra.mxu0 %v3393_v58  ;;  %2021 = vmatpush1.msra.mxu1 %v3396_v45  ;;  %v4451_v58 = vld [vmem:[#allocation13_spill] sm:$0xff]  ;;  %v4452_v45 = vld [vmem:[#allocation14_spill] sm:$0xff] }
 0x812   :  { %1951 = vmatprep.subr.mxu0 %v3399_v0  ;;  %2022 = vmatprep.subr.mxu1 %v3402_v61  ;;  %v4453_v0 = vld [vmem:[#allocation15_spill] sm:$0xff]  ;;  %v4454_v61 = vld [vmem:[#allocation16_spill] sm:$0xff] }
 0x813   :  { %1952 = vmatpush1.msra.mxu0 %v3405_v18  ;;  %2023 = vmatpush1.msra.mxu1 %v3408_v4  ;;  %v4455_v18 = vld [vmem:[#allocation17_spill] sm:$0xff]  ;;  %v4456_v4 = vld [vmem:[#allocation18_spill] sm:$0xff] }
 0x814   :  { %1953 = vmatprep.subr.mxu0 %v3411_v54  ;;  %2024 = vmatprep.subr.mxu1 %v3414_v8  ;;  %v4457_v54 = vld [vmem:[#allocation19_spill] sm:$0xff]  ;;  %v4458_v8 = vld [vmem:[#allocation20_spill] sm:$0xff] }
 0x815   :  { %1954 = vmatpush1.msra.mxu0 %v3417_v7  ;;  %2025 = vmatpush1.msra.mxu1 %v3420_v5  ;;  %v4459_v7 = vld [vmem:[#allocation21_spill] sm:$0xff]  ;;  %v4460_v5 = vld [vmem:[#allocation22_spill] sm:$0xff] }
 0x816   :  { %1955 = vmatprep.subr.mxu0 %v3423_v9  ;;  %2026 = vmatprep.subr.mxu1 %v3426_v27  ;;  %v4461_v9 = vld [vmem:[#allocation23_spill] sm:$0xff]  ;;  %v4462_v27 = vld [vmem:[#allocation24_spill] sm:$0xff] }
 0x817   :  { %1956 = vmatpush1.msra.mxu0 %v3429_v60  ;;  %2027 = vmatpush1.msra.mxu1 %v3432_v59  ;;  %v4463_v60 = vld [vmem:[#allocation25_spill] sm:$0xff]  ;;  %v4464_v59 = vmov 0.0  }
 0x818   :  { %1957 = vmatprep.subr.mxu0 %v3514_v19  ;;  %2028 = vmatprep.subr.mxu1 %v3517_v20 }
 0x819   :  { %1958 = vmatpush1.msra.mxu0 %v3520_v21  ;;  %2029 = vmatpush1.msra.mxu1 %v3523_v22 }
 0x81a   :  { %1959 = vmatprep.subr.mxu0 %v3526_v23  ;;  %2030 = vmatprep.subr.mxu1 %v3529_v24 }
 0x81b   :  { %1960 = vmatpush1.msra.mxu0 %v3532_v25  ;;  %2031 = vmatpush1.msra.mxu1 %v3535_v26 }
 0x81c   :  { %1961 = vmatprep.subr.mxu0 %v3538_v28  ;;  %2032 = vmatprep.subr.mxu1 %v3541_v29 }
 0x81d   :  { %1962 = vmatpush1.msra.mxu0 %v3544_v30  ;;  %2033 = vmatpush1.msra.mxu1 %v3547_v31 }
 0x81e   :  { %1963 = vmatprep.subr.mxu0 %v3550_v63  ;;  %2034 = vmatprep.subr.mxu1 %v3553_v1 }
 0x81f   :  { %1964 = vmatpush1.msra.mxu0 %v3556_v33  ;;  %2035 = vmatpush1.msra.mxu1 %v3559_v37 }
 0x820   :  { %1965 = vmatprep.subr.mxu0 %v3562_v38  ;;  %2036 = vmatprep.subr.mxu1 %v3565_v39 }
 0x821   :  { %1966 = vmatpush1.msra.mxu0 %v3568_v40  ;;  %2037 = vmatpush1.msra.mxu1 %v3571_v41 }
 0x822   :  { %1967 = vmatprep.subr.mxu0 %v3574_v42  ;;  %2038 = vmatprep.subr.mxu1 %v3577_v43 }
 0x823   :  { %1968 = vmatpush1.msra.mxu0 %v3580_v44  ;;  %2039 = vmatpush1.msra.mxu1 %v3583_v46 }
 0x824   :  { %1969 = vmatprep.subr.mxu0 %v3586_v47  ;;  %2040 = vmatprep.subr.mxu1 %v3589_v48 }
 0x825   :  { %1970 = vmatpush1.msra.mxu0 %v4447_v10  ;;  %2041 = vmatpush1.msra.mxu1 %v4448_v6 }
 0x826   :  { %1971 = vmatprep.subr.mxu0 %v4449_v62  ;;  %2042 = vmatprep.subr.mxu1 %v4450_v36 }
 0x827   :  { %1972 = vmatpush1.msra.mxu0 %v4451_v58  ;;  %2043 = vmatpush1.msra.mxu1 %v4452_v45 }
 0x828   :  { %1973 = vmatprep.subr.mxu0 %v4453_v0  ;;  %2044 = vmatprep.subr.mxu1 %v4454_v61 }
 0x829   :  { %1974 = vmatpush1.msra.mxu0 %v4455_v18  ;;  %2045 = vmatpush1.msra.mxu1 %v4456_v4 }
 0x82a   :  { %1975 = vmatprep.subr.mxu0 %v4457_v54  ;;  %2046 = vmatprep.subr.mxu1 %v4458_v8 }
 0x82b   :  { %1976 = vmatpush1.msra.mxu0 %v4459_v7  ;;  %2047 = vmatpush1.msra.mxu1 %v4460_v5 }
 0x82c   :  { %1977 = vmatprep.subr.mxu0 %v4461_v9  ;;  %2048 = vmatprep.subr.mxu1 %v4462_v27 }
 0x82d   :  { %1978 = vmatpush1.msra.mxu0 %v4463_v60  ;;  %2011 = vmatprep.mubr.f32.mxu0 %v4464_v59 }
 0x82e   :  { %2049 = vmatpush1.msra.mxu1 %v4465_v49  ;;  %2082 = vmatprep.mubr.f32.mxu1 %v4464_v59  ;;  %v4475_v59 = vld [vmem:[#allocation61_spill] sm:$0xff] }
 0x82f   :  { %2112 = vmatprep.subr.mxu0 %v4466_v50  ;;  %2183 = vmatprep.subr.mxu1 %v4467_v55  ;;  %v4473_v50 = vsub.s32 3, %v4468_v34  ;;  %vm1943_vm4 = vcmp.ge.s32.totalorder %v4475_v59, 32  ;;  %vm2108_vm5 = vcmp.ge.s32.totalorder %v4475_v59, 64  ;;  %vm2273_vm7 = vcmp.ge.s32.totalorder %v4475_v59, 96 }
 0x831   :  { %v3965_v55 = vrot.slane %v1760_v32, %v4473_v50 }
 0x8ce   :  { %v1848_v51 = vpop.f32.mrf.mxu0  ;;  %v1919_v3 = vpop.f32.mrf.mxu1 }
 0x8cf   :  { %v1849_v13 = vadd.f32 %v1848_v51, %v3955_v15  ;;  %v4474_v51 = vsub.s32 2, %v4468_v34 }
 0x8d0   :  { %v1850_v52 = vpop.f32.mrf.mxu0  ;;  %v1921_v35 = vpop.f32.mrf.mxu1 }
 0x8d1   :  { %v2421_v16 = vmul.f32 -1.442695, %v1849_v13  ;;  %v1851_v11 = vadd.f32 %v1850_v52, %v3960_v14  ;;  %v3969_v13 = vrot.slane %v1760_v32, %v4474_v51  ;;  %v2663_v51 = vld [vmem:[#allocation3 + $0x1d8] sm:$0xff] }
 0x8d3   :  { %2566 = vpow2.f32 %v2421_v16  ;;  %v2422_v2 = vmul.f32 -1.442695, %v1851_v11  ;;  %v1922_v16 = vadd.f32 %v1921_v35, %v3965_v55  ;;  %v1920_v11 = vadd.f32 %v1919_v3, %v3969_v13  ;;  %v2660_v3 = vld [vmem:[#allocation3 + $0x1e0] sm:$0xff]  ;;  %v2662_v35 = vld [vmem:[#allocation3 + $0x1c8] sm:$0xff] }
 0x8d5   :  { %2568 = vpow2.f32 %v2422_v2 }
 0x8e0   :  { %v2567_v57 = vpop.eup %2566 }
 0x8e1   :  { %v1927_v56 = vadd.f32 1.0, %v2567_v57 }
 0x8e2   :  { %v2569_v53 = vpop.eup %2568 }
 0x8e3   :  { %2570 = vrcp.f32 %v1927_v56  ;;  %v1933_v12 = vadd.f32 1.0, %v2569_v53  ;;  %v2661_v53 = vld [vmem:[#allocation3 + $0x1f0] sm:$0xff] }
 0x8e5   :  { %2572 = vrcp.f32 %v1933_v12  ;;  %v2668_v12 = vld [vmem:[#allocation3 + $0x1a0] sm:$0xff] }
 0x8f0   :  { %v2571_v52 = vpop.eup %2570 }
 0x8f1   :  { %v1936_v2 = vmul.f32 %v2571_v52, %v1922_v16  ;;  %v2669_v16 = vld [vmem:[#allocation3 + $0x1b0] sm:$0xff]  ;;  %v2670_v52 = vld [vmem:[#allocation3 + $0x188] sm:$0xff] }
 0x8f2   :  { %v2573_v56 = vpop.eup %2572 }
 0x8f3   :  { %v1937_v57 = vadd.f32 %v1936_v2, %v1920_v11  ;;  %v1939_v14 = vsub.f32 1.0, %v2573_v56  ;;  %v1941_v49 = vmul.f32 %v2573_v56, %v3880_v17  ;;  %v2671_v11 = vld [vmem:[#allocation3 + $0x198] sm:$0xff]  ;;  %v2672_v2 = vld [vmem:[#allocation3 + $0x180] sm:$0xff]  ;;  %v2674_v56 = vld [vmem:[#allocation3 + $0x168] sm:$0xff] }
 0x8f5   :  { %2574 = vtanh.f32 %v1937_v57  ;;  %v2673_v57 = vld [vmem:[#allocation3 + $0x190] sm:$0xff] }
 0x902   :  { %v2575_v15 = vpop.eup %2574 }
 0x903   :  { %v1940_v50 = vmul.f32 %v2575_v15, %v1939_v14  ;;  %v2664_v15 = vld [vmem:[#allocation3 + $0x1c0] sm:$0xff]  ;;  %v2665_v14 = vld [vmem:[#allocation3 + $0x1d0] sm:$0xff] }
 0x905   :  { %v1942_v32 = vadd.f32 %v1941_v49, %v1940_v50  ;;  %v2666_v49 = vld [vmem:[#allocation3 + $0x1a8] sm:$0xff]  ;;  %v2675_v50 = vld [vmem:[#allocation3 + $0x178] sm:$0xff] }
 0x907   :  { %v3976_v34 = vsel %vm1943_vm4, %v1942_v32, %v3880_v17  ;;  %v2667_v17 = vld [vmem:[#allocation3 + $0x1b8] sm:$0xff]  ;;  %v2676_v32 = vld [vmem:[#allocation3 + $0x160] sm:$0xff] }
 0x908   :  { %2012 = vmatmul.mubr.f32.vlgmr.msra.gmra.mxu0 %v3976_v34  ;;  %2083 = vmatmul.mubr.f32.vlgmr.msra.gmra.mxu1 %v3976_v34 }
 0x909   :  { %2113 = vmatpush1.msra.mxu0 %v2660_v3  ;;  %2184 = vmatpush1.msra.mxu1 %v2661_v53  ;;  %v2677_v3 = vld [vmem:[#allocation3 + $0x170] sm:$0xff] }
 0x90a   :  { %2114 = vmatprep.subr.mxu0 %v2662_v35  ;;  %2185 = vmatprep.subr.mxu1 %v2663_v51 }
 0x90b   :  { %2115 = vmatpush1.msra.mxu0 %v2664_v15  ;;  %2186 = vmatpush1.msra.mxu1 %v2665_v14 }
 0x90c   :  { %2116 = vmatprep.subr.mxu0 %v2666_v49  ;;  %2187 = vmatprep.subr.mxu1 %v2667_v17 }
 0x90d   :  { %2117 = vmatpush1.msra.mxu0 %v2668_v12  ;;  %2188 = vmatpush1.msra.mxu1 %v2669_v16 }
 0x90e   :  { %2118 = vmatprep.subr.mxu0 %v2670_v52  ;;  %2189 = vmatprep.subr.mxu1 %v2671_v11 }
 0x90f   :  { %2119 = vmatpush1.msra.mxu0 %v2672_v2  ;;  %2190 = vmatpush1.msra.mxu1 %v2673_v57 }
 0x910   :  { %2120 = vmatprep.subr.mxu0 %v2674_v56  ;;  %2191 = vmatprep.subr.mxu1 %v2675_v50 }
 0x911   :  { %2121 = vmatpush1.msra.mxu0 %v2676_v32  ;;  %2192 = vmatpush1.msra.mxu1 %v2677_v3 }
 0x912   :  { %2122 = vmatprep.subr.mxu0 %v3514_v19  ;;  %2193 = vmatprep.subr.mxu1 %v3517_v20  ;;  %v4476_v19 = vmov 0.0   ;;  %v4477_v20 = vld [vmem:[#allocation26_spill] sm:$0xff] }
 0x913   :  { %2123 = vmatpush1.msra.mxu0 %v3520_v21  ;;  %2194 = vmatpush1.msra.mxu1 %v3523_v22  ;;  %v4478_v22 = vld [vmem:[#allocation27_spill] sm:$0xff] }
 0x914   :  { %2124 = vmatprep.subr.mxu0 %v3526_v23  ;;  %2195 = vmatprep.subr.mxu1 %v3529_v24 }
 0x915   :  { %2125 = vmatpush1.msra.mxu0 %v3532_v25  ;;  %2196 = vmatpush1.msra.mxu1 %v3535_v26  ;;  %v4479_v26 = vld [vmem:[#allocation28_spill] sm:$0xff] }
 0x916   :  { %2126 = vmatprep.subr.mxu0 %v3538_v28  ;;  %2197 = vmatprep.subr.mxu1 %v3541_v29 }
 0x917   :  { %2127 = vmatpush1.msra.mxu0 %v3544_v30  ;;  %2198 = vmatpush1.msra.mxu1 %v3547_v31 }
 0x918   :  { %2128 = vmatprep.subr.mxu0 %v3550_v63  ;;  %2199 = vmatprep.subr.mxu1 %v3553_v1 }
 0x919   :  { %2129 = vmatpush1.msra.mxu0 %v3556_v33  ;;  %2200 = vmatpush1.msra.mxu1 %v3559_v37 }
 0x91a   :  { %2130 = vmatprep.subr.mxu0 %v3562_v38  ;;  %2201 = vmatprep.subr.mxu1 %v3565_v39 }
 0x91b   :  { %2131 = vmatpush1.msra.mxu0 %v3568_v40  ;;  %2202 = vmatpush1.msra.mxu1 %v3571_v41 }
 0x91c   :  { %2132 = vmatprep.subr.mxu0 %v3574_v42  ;;  %2203 = vmatprep.subr.mxu1 %v3577_v43 }
 0x91d   :  { %2133 = vmatpush1.msra.mxu0 %v3580_v44  ;;  %2204 = vmatpush1.msra.mxu1 %v3583_v46 }
 0x91e   :  { %2134 = vmatprep.subr.mxu0 %v3586_v47  ;;  %2205 = vmatprep.subr.mxu1 %v3589_v48 }
 0x91f   :  { %2135 = vmatpush1.msra.mxu0 %v4447_v10  ;;  %2206 = vmatpush1.msra.mxu1 %v4448_v6 }
 0x920   :  { %2136 = vmatprep.subr.mxu0 %v4449_v62  ;;  %2207 = vmatprep.subr.mxu1 %v4450_v36  ;;  %v2292_v62 = vld [vmem:[%s4120_s5 + $0x78] sm:$0xff]  ;;  %v2291_v36 = vld [vmem:[%s4120_s5 + $0x70] sm:$0xff] }
 0x921   :  { %2137 = vmatpush1.msra.mxu0 %v4451_v58  ;;  %2208 = vmatpush1.msra.mxu1 %v4452_v45  ;;  %v2290_v58 = vld [vmem:[%s4120_s5 + $0x68] sm:$0xff]  ;;  %v2289_v45 = vld [vmem:[%s4120_s5 + $0x60] sm:$0xff] }
 0x922   :  { %2138 = vmatprep.subr.mxu0 %v4453_v0  ;;  %2209 = vmatprep.subr.mxu1 %v4454_v61  ;;  %v2288_v0 = vld [vmem:[%s4120_s5 + $0x58] sm:$0xff]  ;;  %v2287_v61 = vld [vmem:[%s4120_s5 + $0x50] sm:$0xff] }
 0x923   :  { %2139 = vmatpush1.msra.mxu0 %v4455_v18  ;;  %2210 = vmatpush1.msra.mxu1 %v4456_v4  ;;  %v2286_v18 = vld [vmem:[%s4120_s5 + $0x48] sm:$0xff]  ;;  %v2285_v4 = vld [vmem:[%s4120_s5 + $0x40] sm:$0xff] }
 0x924   :  { %2140 = vmatprep.subr.mxu0 %v4457_v54  ;;  %2211 = vmatprep.subr.mxu1 %v4458_v8  ;;  %v2284_v54 = vld [vmem:[%s4120_s5 + $0x38] sm:$0xff]  ;;  %v2283_v8 = vld [vmem:[%s4120_s5 + $0x30] sm:$0xff] }
 0x925   :  { %2141 = vmatpush1.msra.mxu0 %v4459_v7  ;;  %2212 = vmatpush1.msra.mxu1 %v4460_v5  ;;  %v2282_v7 = vld [vmem:[%s4120_s5 + $0x28] sm:$0xff]  ;;  %v2281_v5 = vld [vmem:[%s4120_s5 + $0x20] sm:$0xff] }
 0x926   :  { %2142 = vmatprep.subr.mxu0 %v4461_v9  ;;  %2213 = vmatprep.subr.mxu1 %v4462_v27  ;;  %v2280_v9 = vld [vmem:[%s4120_s5 + $0x18] sm:$0xff]  ;;  %v2279_v27 = vld [vmem:[%s4120_s5 + $0x10] sm:$0xff] }
 0x927   :  { %2143 = vmatpush1.msra.mxu0 %v4463_v60  ;;  %2176 = vmatprep.mubr.f32.mxu0 %v4476_v19  ;;  %v2278_v60 = vld [vmem:[%s4120_s5 + $0x8] sm:$0xff] }
 0x928   :  { %2214 = vmatpush1.msra.mxu1 %v4477_v20  ;;  %2247 = vmatprep.mubr.f32.mxu1 %v4476_v19 }
 0x929   :  { %2445 = vmatprep.subr.mxu0 %v4476_v19 }
 0x9c8   :  { %v2013_v21 = vpop.f32.mrf.mxu0  ;;  %v2084_v63 = vpop.f32.mrf.mxu1 }
 0x9c9   :  { %v2014_v23 = vadd.f32 %v2013_v21, %v4478_v22  ;;  %v2085_v40 = vadd.f32 %v2084_v63, %v3969_v13 }
 0x9ca   :  { %v2015_v25 = vpop.f32.mrf.mxu0  ;;  %v2086_v33 = vpop.f32.mrf.mxu1 }
 0x9cb   :  { %v2423_v24 = vmul.f32 -1.442695, %v2014_v23  ;;  %v2016_v28 = vadd.f32 %v2015_v25, %v4479_v26  ;;  %v2087_v38 = vadd.f32 %v2086_v33, %v3965_v55 }
 0x9cd   :  { %2576 = vpow2.f32 %v2423_v24  ;;  %v2424_v29 = vmul.f32 -1.442695, %v2016_v28 }
 0x9cf   :  { %2578 = vpow2.f32 %v2424_v29 }
 0x9da   :  { %v2577_v30 = vpop.eup %2576 }
 0x9db   :  { %v2092_v31 = vadd.f32 1.0, %v2577_v30 }
 0x9dc   :  { %v2579_v1 = vpop.eup %2578 }
 0x9dd   :  { %2580 = vrcp.f32 %v2092_v31  ;;  %v2098_v37 = vadd.f32 1.0, %v2579_v1 }
 0x9df   :  { %2582 = vrcp.f32 %v2098_v37 }
 0x9ea   :  { %v2581_v39 = vpop.eup %2580 }
 0x9eb   :  { %v2101_v41 = vmul.f32 %v2581_v39, %v2087_v38 }
 0x9ec   :  { %v2583_v43 = vpop.eup %2582 }
 0x9ed   :  { %v2102_v42 = vadd.f32 %v2101_v41, %v2085_v40  ;;  %v2104_v44 = vsub.f32 1.0, %v2583_v43  ;;  %v2106_v48 = vmul.f32 %v2583_v43, %v3976_v34 }
 0x9ef   :  { %2584 = vtanh.f32 %v2102_v42 }
 0x9fc   :  { %v2585_v46 = vpop.eup %2584 }
 0x9fd   :  { %v2105_v47 = vmul.f32 %v2585_v46, %v2104_v44 }
 0x9ff   :  { %v2107_v10 = vadd.f32 %v2106_v48, %v2105_v47 }
 0xa01   :  { %v4034_v6 = vsel %vm2108_vm5, %v2107_v10, %v3976_v34  ;;  %v2277_v34 = vld [vmem:[%s4120_s5] sm:$0xff] }
 0xa02   :  { %2177 = vmatmul.mubr.f32.vlgmr.msra.gmra.mxu0 %v4034_v6  ;;  %2248 = vmatmul.mubr.f32.vlgmr.msra.gmra.mxu1 %v4034_v6 }
 0xa03   :  { %2446 = vmatpush3.msra.mxu0 %v2292_v62  ;;  %2477 = vmatprep.mubr.msk.f32.mxu0 %vm2726_vm6, %v4476_v19 }
 0xa04   :  { %2447 = vmatprep.subr.mxu0 %v4476_v19 }
 0xa05   :  { %2448 = vmatpush3.msra.mxu0 %v2291_v36 }
 0xa06   :  { %2449 = vmatprep.subr.mxu0 %v4476_v19 }
 0xa07   :  { %2450 = vmatpush3.msra.mxu0 %v2290_v58 }
 0xa08   :  { %2451 = vmatprep.subr.mxu0 %v4476_v19 }
 0xa09   :  { %2452 = vmatpush3.msra.mxu0 %v2289_v45 }
 0xa0a   :  { %2453 = vmatprep.subr.mxu0 %v4476_v19 }
 0xa0b   :  { %2454 = vmatpush3.msra.mxu0 %v2288_v0 }
 0xa0c   :  { %2455 = vmatprep.subr.mxu0 %v4476_v19 }
 0xa0d   :  { %2456 = vmatpush3.msra.mxu0 %v2287_v61 }
 0xa0e   :  { %2457 = vmatprep.subr.mxu0 %v4476_v19 }
 0xa0f   :  { %2458 = vmatpush3.msra.mxu0 %v2286_v18 }
 0xa10   :  { %2459 = vmatprep.subr.mxu0 %v4476_v19 }
 0xa11   :  { %2460 = vmatpush3.msra.mxu0 %v2285_v4 }
 0xa12   :  { %2461 = vmatprep.subr.mxu0 %v4476_v19 }
 0xa13   :  { %2462 = vmatpush3.msra.mxu0 %v2284_v54 }
 0xa14   :  { %2463 = vmatprep.subr.mxu0 %v4476_v19 }
 0xa15   :  { %2464 = vmatpush3.msra.mxu0 %v2283_v8 }
 0xa16   :  { %2465 = vmatprep.subr.mxu0 %v4476_v19 }
 0xa17   :  { %2466 = vmatpush3.msra.mxu0 %v2282_v7 }
 0xa18   :  { %2467 = vmatprep.subr.mxu0 %v4476_v19 }
 0xa19   :  { %2468 = vmatpush3.msra.mxu0 %v2281_v5 }
 0xa1a   :  { %2469 = vmatprep.subr.mxu0 %v4476_v19 }
 0xa1b   :  { %2470 = vmatpush3.msra.mxu0 %v2280_v9 }
 0xa1c   :  { %2471 = vmatprep.subr.mxu0 %v4476_v19 }
 0xa1d   :  { %2472 = vmatpush3.msra.mxu0 %v2279_v27 }
 0xa1e   :  { %2473 = vmatprep.subr.mxu0 %v4476_v19 }
 0xa1f   :  { %2474 = vmatpush3.msra.mxu0 %v2278_v60 }
 0xa20   :  { %2475 = vmatprep.subr.mxu0 %v4476_v19 }
 0xa21   :  { %2476 = vmatpush3.msra.mxu0 %v2277_v34 }
 0xac2   :  { %v2178_v53 = vpop.f32.mrf.mxu0  ;;  %v2249_v16 = vpop.f32.mrf.mxu1 }
 0xac3   :  { %v2179_v35 = vadd.f32 %v2178_v53, %v4478_v22  ;;  %v2250_v50 = vadd.f32 %v2249_v16, %v3969_v13 }
 0xac4   :  { %v2180_v15 = vpop.f32.mrf.mxu0  ;;  %v2251_v11 = vpop.f32.mrf.mxu1 }
 0xac5   :  { %v2425_v51 = vmul.f32 -1.442695, %v2179_v35  ;;  %v2181_v14 = vadd.f32 %v2180_v15, %v4479_v26  ;;  %v2252_v57 = vadd.f32 %v2251_v11, %v3965_v55  ;;  %v2427_v55 = vld [vmem:[%s4121_s6] ss:$0 sm:$0xff] }
 0xac7   :  { %2586 = vpow2.f32 %v2425_v51  ;;  %v2426_v49 = vmul.f32 -1.442695, %v2181_v14 }
 0xac9   :  { %2588 = vpow2.f32 %v2426_v49 }
 0xad4   :  { %v2587_v17 = vpop.eup %2586 }
 0xad5   :  { %v2257_v12 = vadd.f32 1.0, %v2587_v17 }
 0xad6   :  { %v2589_v52 = vpop.eup %2588 }
 0xad7   :  { %2590 = vrcp.f32 %v2257_v12  ;;  %v2263_v2 = vadd.f32 1.0, %v2589_v52 }
 0xad9   :  { %2592 = vrcp.f32 %v2263_v2 }
 0xae4   :  { %v2591_v56 = vpop.eup %2590 }
 0xae5   :  { %v2266_v32 = vmul.f32 %v2591_v56, %v2252_v57 }
 0xae6   :  { %v2593_v19 = vpop.eup %2592 }
 0xae7   :  { %v2267_v3 = vadd.f32 %v2266_v32, %v2250_v50  ;;  %v2269_v20 = vsub.f32 1.0, %v2593_v19  ;;  %v2271_v23 = vmul.f32 %v2593_v19, %v4034_v6 }
 0xae9   :  { %2594 = vtanh.f32 %v2267_v3 }
 0xaf6   :  { %v2595_v21 = vpop.eup %2594 }
 0xaf7   :  { %v2270_v22 = vmul.f32 %v2595_v21, %v2269_v20 }
 0xaf9   :  { %v2272_v24 = vadd.f32 %v2271_v23, %v2270_v22 }
 0xafb   :  { %v2276_v25 = vsel %vm2273_vm7, %v2272_v24, %v4034_v6 }
 0xafc   :  { %2478 = vmatmul.mubr.f32.vlgmr.msra.gmra.mxu0 %v2276_v25 }
 0xbbc   :  { %v2366_v13 = vpop.f32.mrf.mxu0 }
 0xbbd   :  { %v2367_v26 = vadd.f32 %v2427_v55, %v2366_v13 }
 0xbbe   :  { %v2479_v28 = vpop.f32.mrf.mxu0 }
 0xbbf   :  { %2371 = vst.msk [vmem:[#allocation6] sm:$0xff] %vm2370_vm8, %v2367_v26 }
 0xbc0   :  { %2709 = shalt.err (!%p2706_p9)
}
 0xbc1   :  { %2381 = dma.vmem_to_hbm [thread:$0]  %s2379_s21, 128, %s4122_s7, [#allocation5]  }
 0xbc2   :  { %2720 = dma.done.wait [#allocation5], 128  }
 0xbc3   :  { %2721 = vsyncadd [#allocation5], 4294967168 }
 0xbc4   :  { %2385 = vsyncpa [#allocation4], 1 }
 0xbc5   :  { %2386 = vsyncpa [#allocation5], 1 }

</bundles_post_ra>
